<compile_context>
chip_gen: v5e
topology: v5e:2x2
jax: 0.10.0
libtpu: 0.0.40
codegen_flags: <defaults>
</compile_context>

<pallas_src>
import functools
import math

import numpy as np

import jax
import jax.numpy as jnp
from jax.experimental import pallas as pl


# ----------------------------- Pallas kernels ------------------------------


def _fused_matmul_kernel(*refs, n_mm, relu, add_residual):
    """refs = (a, w0, b0, ..., w{n-1}, b{n-1}, [res], o0, ..., o{n-1}).

    o_m = relu_m(a @ w_m + b_m);  if add_residual, `res` is added to the LAST
    output after its ReLU (matching `x = x + layer(x)` in the reference).
    A single shared A (the im2col patch matrix) feeds all n_mm matmuls.
    """
    a = refs[0][...]                                     # (M, K) bf16
    n_in = 1 + 2 * n_mm + (1 if add_residual else 0)
    out_refs = refs[n_in:]
    res = refs[n_in - 1][...] if add_residual else None  # (M, cout_last) f32
    for m in range(n_mm):
        w = refs[1 + 2 * m][...]                         # (K, cout_m) bf16
        b = refs[2 + 2 * m][...]                         # (1, cout_m) f32
        acc = jnp.dot(a, w, preferred_element_type=jnp.float32) + b
        if relu[m]:
            acc = jnp.maximum(acc, 0.0)
        if add_residual and m == n_mm - 1:
            acc = acc + res
        out_refs[m][...] = acc.astype(out_refs[m].dtype)


def _upsample_add_kernel(x_ref, k_ref, y_ref, o_ref, *, batch, src_is_point):
    """o[n] = kron_interp @ x[n] + y[n]  (bilinear upsample fused with residual add)."""
    kmat = k_ref[...]                                    # (Ht*Wt, Hs*Ws) f32
    for b in range(batch):
        xs = x_ref[b]                                    # (Hs*Ws, C) f32
        if src_is_point:
            up = kmat * xs                               # (T,1)*(1,C) outer-product broadcast
        else:
            up = jnp.dot(kmat, xs, preferred_element_type=jnp.float32)
        o_ref[b] = up + y_ref[b]


# ----------------------------- host-side glue ------------------------------


def _im2col(x, k, stride):
    """NHWC 'same'-padded im2col -> (N*Ho*Wo, k*k*C) bf16 patch matrix."""
    N, H, W, C = x.shape
    pad = k // 2
    xp = jnp.pad(x, ((0, 0), (pad, pad), (pad, pad), (0, 0)))
    Ho = (H + 2 * pad - k) // stride + 1
    Wo = (W + 2 * pad - k) // stride + 1
    cols = []
    for dy in range(k):
        for dx in range(k):
            cols.append(xp[:, dy:dy + stride * (Ho - 1) + 1:stride,
                           dx:dx + stride * (Wo - 1) + 1:stride, :])
    patches = jnp.concatenate(cols, axis=-1).reshape(N * Ho * Wo, k * k * C)
    return patches.astype(jnp.bfloat16), Ho, Wo


def fused_conv_call(x, layers, residual=None):
    """Apply 1..n same-(k,stride) convs to the SAME NHWC input x in ONE pallas_call.

    The im2col patch matrix is built once and shared by every conv; bias, the
    per-conv ReLU and the optional residual add (on the last conv's output)
    run in the kernel epilogue.  Returns a tuple of NHWC outputs.
    """
    N = x.shape[0]
    k = layers[0]["ksize"]
    stride = layers[0]["stride"]
    patches, Ho, Wo = _im2col(x, k, stride)
    M = N * Ho * Wo

    operands = [patches]
    relu_flags = []
    out_shapes = []
    for layer in layers:
        operands += [layer["wmat"], layer["bias"]]
        relu_flags.append(layer["relu"])
        out_shapes.append(
            jax.ShapeDtypeStruct((M, layer["wmat"].shape[1]), jnp.float32))

    add_res = residual is not None
    if add_res:
        operands.append(residual.reshape(M, -1).astype(jnp.float32))

    kern = functools.partial(_fused_matmul_kernel, n_mm=len(layers),
                             relu=tuple(relu_flags), add_residual=add_res)
    outs = pl.pallas_call(kern, out_shape=tuple(out_shapes))(*operands)
    return tuple(o.reshape(N, Ho, Wo, -1) for o in outs)


def _interp_matrix(src, dst):
    """align_corners=True 1-D bilinear interpolation matrix (dst, src)."""
    m = np.zeros((dst, src), np.float32)
    scale = (src - 1) / (dst - 1) if dst > 1 else 0.0
    for i in range(dst):
        s = i * scale
        lo = int(math.floor(s))
        hi = min(lo + 1, src - 1)
        f = s - lo
        m[i, lo] += 1.0 - f
        m[i, hi] += f
    return m


def upsample_add(x, out_hw, y):
    """nn.Upsample(size=out_hw, mode='bilinear', align_corners=True)(x) + y, fused."""
    N, Hs, Ws, C = x.shape
    Ht, Wt = out_hw
    kmat = jnp.asarray(np.kron(_interp_matrix(Hs, Ht), _interp_matrix(Ws, Wt)))
    xf = x.reshape(N, Hs * Ws, C)
    yf = y.reshape(N, Ht * Wt, C)
    kern = functools.partial(_upsample_add_kernel, batch=N,
                             src_is_point=(Hs * Ws == 1))
    out = pl.pallas_call(
        kern, out_shape=jax.ShapeDtypeStruct((N, Ht * Wt, C), jnp.float32)
    )(xf, kmat, yf)
    return out.reshape(N, Ht, Wt, C)


# ------------------------------ model definition ----------------------------


def _make_conv(key, k, cin, cout, stride, relu):
    # xavier-uniform, deterministic via key; weights pre-packed for the matmul
    # kernel (reshape once at build time + bf16 cast -> no per-call reshapes/pads).
    fan_in = cin * k * k
    fan_out = cout * k * k
    limit = math.sqrt(6.0 / (fan_in + fan_out))
    w = jax.random.uniform(key, (k, k, cin, cout), jnp.float32, -limit, limit)
    return {
        "type": "conv",
        "wmat": w.reshape(k * k * cin, cout).astype(jnp.bfloat16),
        "bias": jnp.zeros((1, cout), jnp.float32),
        "stride": stride,
        "relu": relu,
        "ksize": k,
    }


def build_fpnssd_params(key, num_classes=3, num_anchors=2, channels=8):
    keys = iter(jax.random.split(key, 64))
    C = channels

    def conv(k, stride, cin, cout, relu):
        return _make_conv(next(keys), k, cin, cout, stride, relu)

    loops = [(1, None, 2)] * 4
    up_sizes = [(16, 16), (8, 8), (4, 4), (2, 2)]  # scaled-down FPN pyramid

    base_net = []
    for _ in range(4):
        base_net.append(conv(3, 1, C, C, True))      # j == 0  -> lateral y
        base_net.append(conv(3, 1, C, C, True))      # residual layer (n = 1)
        base_net.append(conv(3, 2, C, C, True))      # base_net[end] (downsample)
        base_net.append(conv(3, 1, C, C, True))      # segment B, k = 0
        base_net.append({                             # k = f-1, has .conv path
            "type": "block",
            "conv": [conv(3, 1, C, C, False), {"type": "relu"},
                     conv(3, 2, C, C, False), {"type": "relu"}],
        })

    extra_layers = [conv(3, 1, C, C, True) for _ in range(2)]

    n_headers = 5
    regression_headers = [conv(3, 1, C, 4 * num_anchors, False)
                          for _ in range(n_headers)]
    classification_headers = [conv(3, 1, C, num_classes * num_anchors, False)
                              for _ in range(n_headers)]

    return dict(
        num_classes=num_classes,
        loops=loops,
        up_sizes=up_sizes,
        base_net=base_net,
        extra_layers=extra_layers,
        regression_headers=regression_headers,
        classification_headers=classification_headers,
    )


def apply_path(layers, x):
    """Apply a [conv, relu, conv, relu, ...] path, fusing each conv with its ReLU."""
    idx = 0
    while idx < len(layers):
        layer = layers[idx]
        if layer["type"] == "conv":
            fuse_relu = (idx + 1 < len(layers)
                         and layers[idx + 1].get("type") == "relu")
            eff = dict(layer)
            eff["relu"] = layer["relu"] or fuse_relu
            (x,) = fused_conv_call(x, [eff])
            idx += 2 if fuse_relu else 1
        elif layer["type"] == "relu":
            # standalone ReLU fallback (never produced by the synthetic config)
            x = jnp.maximum(x, 0.0)
            idx += 1
        else:
            raise ValueError(layer["type"])
    return x


def compute_headers(params, i, x):
    # regression + classification headers fused into ONE kernel (shared patches).
    loc_nhwc, conf_nhwc = fused_conv_call(
        x, [params["regression_headers"][i], params["classification_headers"][i]])
    N = x.shape[0]
    loc = loc_nhwc.reshape(N, -1, 4)
    conf = conf_nhwc.reshape(N, -1, params["num_classes"])
    return conf, loc


def fpnssd_forward(params, x):
    """Mirrors FPNSSD.forward (is_test=False). x is NHWC."""
    confidences = []
    locations = []
    start = 0
    header_index = 0
    y = x
    base_net = params["base_net"]
    for i, loop in enumerate(params["loops"]):
        n, _, f = loop
        end = start + n + 1
        seg = base_net[start:end]
        if n == 1 and all(l.get("type") == "conv" and l["stride"] == 1 for l in seg):
            # y = L0(x); x = x + L1(x): both convs read the SAME x, so they share
            # one im2col + one fused kernel (ReLUs + residual add in the epilogue).
            y, x = fused_conv_call(x, [seg[0], seg[1]], residual=x)
        else:
            # generic fallback, not hit by the synthetic config
            for j, layer in enumerate(seg):
                if j == 0:
                    (y,) = fused_conv_call(x, [layer])
                else:
                    (x,) = fused_conv_call(x, [layer], residual=x)
        (x,) = fused_conv_call(x, [base_net[end]])          # stride-2 downsample
        x = upsample_add(x, params["up_sizes"][i], y)        # bilinear up + add, one kernel
        start = end + 1
        end = start + f
        for k, layer in enumerate(base_net[start:end]):
            if k == f - 1:
                path = layer["conv"]
                x = apply_path(path[:-2], x)
                y = x
                x = apply_path(path[-2:], x)
                if i == 3:
                    conf, loc = compute_headers(params, header_index, x)
                    confidences.append(conf)
                    locations.append(loc)
                    header_index += 1
            else:
                (x,) = fused_conv_call(x, [layer])
        if i >= 2:
            conf, loc = compute_headers(params, header_index, y)
            confidences.append(conf)
            locations.append(loc)
            header_index += 1
        start = end
    for layer in params["extra_layers"]:
        (x,) = fused_conv_call(x, [layer])
        conf, loc = compute_headers(params, header_index, x)
        confidences.append(conf)
        locations.append(loc)
        header_index += 1
    confidences = jnp.concatenate(confidences, axis=1)
    locations = jnp.concatenate(locations, axis=1)
    return confidences, locations


# ----------------------------------- main -----------------------------------


if __name__ == "__main__":
    root = jax.random.PRNGKey(0)
    k_params, k_input = jax.random.split(root)

    num_classes, num_anchors, channels = 3, 2, 8
    params = build_fpnssd_params(k_params, num_classes, num_anchors, channels)

    # PyTorch-style NCHW input, converted to the NHWC kernel layout.
    x_nchw = jax.random.normal(k_input, (2, channels, 16, 16), jnp.float32)
    x = jnp.transpose(x_nchw, (0, 2, 3, 1))

    # Whole forward compiled as one executable; weights are closure constants.
    forward = jax.jit(lambda inp: fpnssd_forward(params, inp))

    confidences, locations = forward(x)
    jax.block_until_ready((confidences, locations))

    # priors: 4*4*2 (i=2,y) + 1*1*2 (i=3,x) + 2*2*2 (i=3,y) + 2*(1*1*2) extras = 46
    assert confidences.shape == (2, 46, num_classes), confidences.shape
    assert locations.shape == (2, 46, 4), locations.shape
    assert confidences.dtype == jnp.float32 and locations.dtype == jnp.float32

    print("KERNEL_OK")
</pallas_src>

<mosaic_0001>
module attributes {stable_mosaic.version = 11 : i64} {
  func.func @_fused_matmul_kernel(%arg0: memref<512x72xbf16, #tpu.memory_space<vmem>>, %arg1: memref<72x8xbf16, #tpu.memory_space<vmem>>, %arg2: memref<1x8xf32, #tpu.memory_space<vmem>>, %arg3: memref<72x8xbf16, #tpu.memory_space<vmem>>, %arg4: memref<1x8xf32, #tpu.memory_space<vmem>>, %arg5: memref<512x8xf32, #tpu.memory_space<vmem>>, %arg6: memref<512x8xf32, #tpu.memory_space<vmem>>, %arg7: memref<512x8xf32, #tpu.memory_space<vmem>>) attributes {dimension_semantics = [], scalar_prefetch = 0 : i64, scratch_operands = 0 : i64, tpu.core_type = #tpu.core_type<tc>} {
    %c0 = arith.constant 0 : index
    %c0_0 = arith.constant 0 : index
    %0 = vector.load %arg0[%c0, %c0_0] : memref<512x72xbf16, #tpu.memory_space<vmem>>, vector<512x72xbf16>
    %c0_1 = arith.constant 0 : index
    %c0_2 = arith.constant 0 : index
    %1 = vector.load %arg5[%c0_1, %c0_2] : memref<512x8xf32, #tpu.memory_space<vmem>>, vector<512x8xf32>
    %c0_3 = arith.constant 0 : index
    %c0_4 = arith.constant 0 : index
    %2 = vector.load %arg1[%c0_3, %c0_4] : memref<72x8xbf16, #tpu.memory_space<vmem>>, vector<72x8xbf16>
    %c0_5 = arith.constant 0 : index
    %c0_6 = arith.constant 0 : index
    %3 = vector.load %arg2[%c0_5, %c0_6] : memref<1x8xf32, #tpu.memory_space<vmem>>, vector<1x8xf32>
    %cst = arith.constant dense<0.000000e+00> : vector<512x8xf32>
    %4 = tpu.matmul %0, %2, %cst {dimension_numbers = #tpu.dot_dimension_numbers<[1], [0], [0], [1], [0, 0, 1, 1], [], []>} : vector<512x72xbf16>, vector<72x8xbf16>, vector<512x8xf32> -> vector<512x8xf32>
    %5 = vector.broadcast %3 : vector<1x8xf32> to vector<512x8xf32>
    %6 = arith.addf %4, %5 : vector<512x8xf32>
    %cst_7 = arith.constant 0.000000e+00 : f32
    %7 = vector.broadcast %cst_7 : f32 to vector<512x8xf32>
    %8 = arith.maximumf %6, %7 : vector<512x8xf32>
    %c0_8 = arith.constant 0 : index
    %c0_9 = arith.constant 0 : index
    %9 = vector.load %arg6[%c0_8, %c0_9] : memref<512x8xf32, #tpu.memory_space<vmem>>, vector<512x8xf32>
    tpu.vector_store %arg6[%c0_8, %c0_9], %8 {strides = array<i32>} : memref<512x8xf32, #tpu.memory_space<vmem>>, vector<512x8xf32>,
    %c0_10 = arith.constant 0 : index
    %c0_11 = arith.constant 0 : index
    %10 = vector.load %arg3[%c0_10, %c0_11] : memref<72x8xbf16, #tpu.memory_space<vmem>>, vector<72x8xbf16>
    %c0_12 = arith.constant 0 : index
    %c0_13 = arith.constant 0 : index
    %11 = vector.load %arg4[%c0_12, %c0_13] : memref<1x8xf32, #tpu.memory_space<vmem>>, vector<1x8xf32>
    %cst_14 = arith.constant dense<0.000000e+00> : vector<512x8xf32>
    %12 = tpu.matmul %0, %10, %cst_14 {dimension_numbers = #tpu.dot_dimension_numbers<[1], [0], [0], [1], [0, 0, 1, 1], [], []>} : vector<512x72xbf16>, vector<72x8xbf16>, vector<512x8xf32> -> vector<512x8xf32>
    %13 = vector.broadcast %11 : vector<1x8xf32> to vector<512x8xf32>
    %14 = arith.addf %12, %13 : vector<512x8xf32>
    %cst_15 = arith.constant 0.000000e+00 : f32
    %15 = vector.broadcast %cst_15 : f32 to vector<512x8xf32>
    %16 = arith.maximumf %14, %15 : vector<512x8xf32>
    %17 = arith.addf %16, %1 : vector<512x8xf32>
    %c0_16 = arith.constant 0 : index
    %c0_17 = arith.constant 0 : index
    %18 = vector.load %arg7[%c0_16, %c0_17] : memref<512x8xf32, #tpu.memory_space<vmem>>, vector<512x8xf32>
    tpu.vector_store %arg7[%c0_16, %c0_17], %17 {strides = array<i32>} : memref<512x8xf32, #tpu.memory_space<vmem>>, vector<512x8xf32>,
    return
  }
}

module attributes {stable_mosaic.version = 11 : i64} {
  func.func @_upsample_add_kernel(%arg0: memref<2x64x8xf32, #tpu.memory_space<vmem>>, %arg1: memref<256x64xf32, #tpu.memory_space<vmem>>, %arg2: memref<2x256x8xf32, #tpu.memory_space<vmem>>, %arg3: memref<2x256x8xf32, #tpu.memory_space<vmem>>) attributes {dimension_semantics = [], scalar_prefetch = 0 : i64, scratch_operands = 0 : i64, tpu.core_type = #tpu.core_type<tc>} {
    %c0 = arith.constant 0 : index
    %c0_0 = arith.constant 0 : index
    %0 = vector.load %arg1[%c0, %c0_0] : memref<256x64xf32, #tpu.memory_space<vmem>>, vector<256x64xf32>
    %c0_1 = arith.constant 0 : index
    %c0_2 = arith.constant 0 : index
    %c0_3 = arith.constant 0 : index
    %1 = vector.load %arg0[%c0_1, %c0_2, %c0_3] : memref<2x64x8xf32, #tpu.memory_space<vmem>>, vector<1x64x8xf32>
    %2 = vector.shape_cast %1 : vector<1x64x8xf32> to vector<64x8xf32>
    %cst = arith.constant dense<0.000000e+00> : vector<256x8xf32>
    %3 = tpu.matmul %0, %2, %cst {dimension_numbers = #tpu.dot_dimension_numbers<[1], [0], [0], [1], [0, 0, 1, 1], [], []>} : vector<256x64xf32>, vector<64x8xf32>, vector<256x8xf32> -> vector<256x8xf32>
    %c0_4 = arith.constant 0 : index
    %c0_5 = arith.constant 0 : index
    %c0_6 = arith.constant 0 : index
    %4 = vector.load %arg2[%c0_4, %c0_5, %c0_6] : memref<2x256x8xf32, #tpu.memory_space<vmem>>, vector<1x256x8xf32>
    %5 = vector.shape_cast %4 : vector<1x256x8xf32> to vector<256x8xf32>
    %6 = arith.addf %3, %5 : vector<256x8xf32>
    %c0_7 = arith.constant 0 : index
    %c0_8 = arith.constant 0 : index
    %c0_9 = arith.constant 0 : index
    %7 = vector.load %arg3[%c0_7, %c0_8, %c0_9] : memref<2x256x8xf32, #tpu.memory_space<vmem>>, vector<1x256x8xf32>
    %8 = vector.shape_cast %7 : vector<1x256x8xf32> to vector<256x8xf32>
    %9 = vector.shape_cast %6 : vector<256x8xf32> to vector<1x256x8xf32>
    tpu.vector_store %arg3[%c0_7, %c0_8, %c0_9], %9 {strides = array<i32>} : memref<2x256x8xf32, #tpu.memory_space<vmem>>, vector<1x256x8xf32>,
    %c1 = arith.constant 1 : index
    %c0_10 = arith.constant 0 : index
    %c0_11 = arith.constant 0 : index
    %10 = vector.load %arg0[%c1, %c0_10, %c0_11] : memref<2x64x8xf32, #tpu.memory_space<vmem>>, vector<1x64x8xf32>
    %11 = vector.shape_cast %10 : vector<1x64x8xf32> to vector<64x8xf32>
    %cst_12 = arith.constant dense<0.000000e+00> : vector<256x8xf32>
    %12 = tpu.matmul %0, %11, %cst_12 {dimension_numbers = #tpu.dot_dimension_numbers<[1], [0], [0], [1], [0, 0, 1, 1], [], []>} : vector<256x64xf32>, vector<64x8xf32>, vector<256x8xf32> -> vector<256x8xf32>
    %c1_13 = arith.constant 1 : index
    %c0_14 = arith.constant 0 : index
    %c0_15 = arith.constant 0 : index
    %13 = vector.load %arg2[%c1_13, %c0_14, %c0_15] : memref<2x256x8xf32, #tpu.memory_space<vmem>>, vector<1x256x8xf32>
    %14 = vector.shape_cast %13 : vector<1x256x8xf32> to vector<256x8xf32>
    %15 = arith.addf %12, %14 : vector<256x8xf32>
    %c1_16 = arith.constant 1 : index
    %c0_17 = arith.constant 0 : index
    %c0_18 = arith.constant 0 : index
    %16 = vector.load %arg3[%c1_16, %c0_17, %c0_18] : memref<2x256x8xf32, #tpu.memory_space<vmem>>, vector<1x256x8xf32>
    %17 = vector.shape_cast %16 : vector<1x256x8xf32> to vector<256x8xf32>
    %18 = vector.shape_cast %15 : vector<256x8xf32> to vector<1x256x8xf32>
    tpu.vector_store %arg3[%c1_16, %c0_17, %c0_18], %18 {strides = array<i32>} : memref<2x256x8xf32, #tpu.memory_space<vmem>>, vector<1x256x8xf32>,
    return
  }
}

module attributes {stable_mosaic.version = 11 : i64} {
  func.func @_fused_matmul_kernel(%arg0: memref<128x72xbf16, #tpu.memory_space<vmem>>, %arg1: memref<72x8xbf16, #tpu.memory_space<vmem>>, %arg2: memref<1x8xf32, #tpu.memory_space<vmem>>, %arg3: memref<128x8xf32, #tpu.memory_space<vmem>>) attributes {dimension_semantics = [], scalar_prefetch = 0 : i64, scratch_operands = 0 : i64, tpu.core_type = #tpu.core_type<tc>} {
    %c0 = arith.constant 0 : index
    %c0_0 = arith.constant 0 : index
    %0 = vector.load %arg0[%c0, %c0_0] : memref<128x72xbf16, #tpu.memory_space<vmem>>, vector<128x72xbf16>
    %c0_1 = arith.constant 0 : index
    %c0_2 = arith.constant 0 : index
    %1 = vector.load %arg1[%c0_1, %c0_2] : memref<72x8xbf16, #tpu.memory_space<vmem>>, vector<72x8xbf16>
    %c0_3 = arith.constant 0 : index
    %c0_4 = arith.constant 0 : index
    %2 = vector.load %arg2[%c0_3, %c0_4] : memref<1x8xf32, #tpu.memory_space<vmem>>, vector<1x8xf32>
    %cst = arith.constant dense<0.000000e+00> : vector<128x8xf32>
    %3 = tpu.matmul %0, %1, %cst {dimension_numbers = #tpu.dot_dimension_numbers<[1], [0], [0], [1], [0, 0, 1, 1], [], []>} : vector<128x72xbf16>, vector<72x8xbf16>, vector<128x8xf32> -> vector<128x8xf32>
    %4 = vector.broadcast %2 : vector<1x8xf32> to vector<128x8xf32>
    %5 = arith.addf %3, %4 : vector<128x8xf32>
    %cst_5 = arith.constant 0.000000e+00 : f32
    %6 = vector.broadcast %cst_5 : f32 to vector<128x8xf32>
    %7 = arith.maximumf %5, %6 : vector<128x8xf32>
    %c0_6 = arith.constant 0 : index
    %c0_7 = arith.constant 0 : index
    %8 = vector.load %arg3[%c0_6, %c0_7] : memref<128x8xf32, #tpu.memory_space<vmem>>, vector<128x8xf32>
    tpu.vector_store %arg3[%c0_6, %c0_7], %7 {strides = array<i32>} : memref<128x8xf32, #tpu.memory_space<vmem>>, vector<128x8xf32>,
    return
  }
}

module attributes {stable_mosaic.version = 11 : i64} {
  func.func @_fused_matmul_kernel(%arg0: memref<512x72xbf16, #tpu.memory_space<vmem>>, %arg1: memref<72x8xbf16, #tpu.memory_space<vmem>>, %arg2: memref<1x8xf32, #tpu.memory_space<vmem>>, %arg3: memref<512x8xf32, #tpu.memory_space<vmem>>) attributes {dimension_semantics = [], scalar_prefetch = 0 : i64, scratch_operands = 0 : i64, tpu.core_type = #tpu.core_type<tc>} {
    %c0 = arith.constant 0 : index
    %c0_0 = arith.constant 0 : index
    %0 = vector.load %arg0[%c0, %c0_0] : memref<512x72xbf16, #tpu.memory_space<vmem>>, vector<512x72xbf16>
    %c0_1 = arith.constant 0 : index
    %c0_2 = arith.constant 0 : index
    %1 = vector.load %arg1[%c0_1, %c0_2] : memref<72x8xbf16, #tpu.memory_space<vmem>>, vector<72x8xbf16>
    %c0_3 = arith.constant 0 : index
    %c0_4 = arith.constant 0 : index
    %2 = vector.load %arg2[%c0_3, %c0_4] : memref<1x8xf32, #tpu.memory_space<vmem>>, vector<1x8xf32>
    %cst = arith.constant dense<0.000000e+00> : vector<512x8xf32>
    %3 = tpu.matmul %0, %1, %cst {dimension_numbers = #tpu.dot_dimension_numbers<[1], [0], [0], [1], [0, 0, 1, 1], [], []>} : vector<512x72xbf16>, vector<72x8xbf16>, vector<512x8xf32> -> vector<512x8xf32>
    %4 = vector.broadcast %2 : vector<1x8xf32> to vector<512x8xf32>
    %5 = arith.addf %3, %4 : vector<512x8xf32>
    %cst_5 = arith.constant 0.000000e+00 : f32
    %6 = vector.broadcast %cst_5 : f32 to vector<512x8xf32>
    %7 = arith.maximumf %5, %6 : vector<512x8xf32>
    %c0_6 = arith.constant 0 : index
    %c0_7 = arith.constant 0 : index
    %8 = vector.load %arg3[%c0_6, %c0_7] : memref<512x8xf32, #tpu.memory_space<vmem>>, vector<512x8xf32>
    tpu.vector_store %arg3[%c0_6, %c0_7], %7 {strides = array<i32>} : memref<512x8xf32, #tpu.memory_space<vmem>>, vector<512x8xf32>,
    return
  }
}

module attributes {stable_mosaic.version = 11 : i64} {
  func.func @_fused_matmul_kernel(%arg0: memref<128x72xbf16, #tpu.memory_space<vmem>>, %arg1: memref<72x8xbf16, #tpu.memory_space<vmem>>, %arg2: memref<1x8xf32, #tpu.memory_space<vmem>>, %arg3: memref<72x8xbf16, #tpu.memory_space<vmem>>, %arg4: memref<1x8xf32, #tpu.memory_space<vmem>>, %arg5: memref<128x8xf32, #tpu.memory_space<vmem>>, %arg6: memref<128x8xf32, #tpu.memory_space<vmem>>, %arg7: memref<128x8xf32, #tpu.memory_space<vmem>>) attributes {dimension_semantics = [], scalar_prefetch = 0 : i64, scratch_operands = 0 : i64, tpu.core_type = #tpu.core_type<tc>} {
    %c0 = arith.constant 0 : index
    %c0_0 = arith.constant 0 : index
    %0 = vector.load %arg0[%c0, %c0_0] : memref<128x72xbf16, #tpu.memory_space<vmem>>, vector<128x72xbf16>
    %c0_1 = arith.constant 0 : index
    %c0_2 = arith.constant 0 : index
    %1 = vector.load %arg5[%c0_1, %c0_2] : memref<128x8xf32, #tpu.memory_space<vmem>>, vector<128x8xf32>
    %c0_3 = arith.constant 0 : index
    %c0_4 = arith.constant 0 : index
    %2 = vector.load %arg1[%c0_3, %c0_4] : memref<72x8xbf16, #tpu.memory_space<vmem>>, vector<72x8xbf16>
    %c0_5 = arith.constant 0 : index
    %c0_6 = arith.constant 0 : index
    %3 = vector.load %arg2[%c0_5, %c0_6] : memref<1x8xf32, #tpu.memory_space<vmem>>, vector<1x8xf32>
    %cst = arith.constant dense<0.000000e+00> : vector<128x8xf32>
    %4 = tpu.matmul %0, %2, %cst {dimension_numbers = #tpu.dot_dimension_numbers<[1], [0], [0], [1], [0, 0, 1, 1], [], []>} : vector<128x72xbf16>, vector<72x8xbf16>, vector<128x8xf32> -> vector<128x8xf32>
    %5 = vector.broadcast %3 : vector<1x8xf32> to vector<128x8xf32>
    %6 = arith.addf %4, %5 : vector<128x8xf32>
    %cst_7 = arith.constant 0.000000e+00 : f32
    %7 = vector.broadcast %cst_7 : f32 to vector<128x8xf32>
    %8 = arith.maximumf %6, %7 : vector<128x8xf32>
    %c0_8 = arith.constant 0 : index
    %c0_9 = arith.constant 0 : index
    %9 = vector.load %arg6[%c0_8, %c0_9] : memref<128x8xf32, #tpu.memory_space<vmem>>, vector<128x8xf32>
    tpu.vector_store %arg6[%c0_8, %c0_9], %8 {strides = array<i32>} : memref<128x8xf32, #tpu.memory_space<vmem>>, vector<128x8xf32>,
    %c0_10 = arith.constant 0 : index
    %c0_11 = arith.constant 0 : index
    %10 = vector.load %arg3[%c0_10, %c0_11] : memref<72x8xbf16, #tpu.memory_space<vmem>>, vector<72x8xbf16>
    %c0_12 = arith.constant 0 : index
    %c0_13 = arith.constant 0 : index
    %11 = vector.load %arg4[%c0_12, %c0_13] : memref<1x8xf32, #tpu.memory_space<vmem>>, vector<1x8xf32>
    %cst_14 = arith.constant dense<0.000000e+00> : vector<128x8xf32>
    %12 = tpu.matmul %0, %10, %cst_14 {dimension_numbers = #tpu.dot_dimension_numbers<[1], [0], [0], [1], [0, 0, 1, 1], [], []>} : vector<128x72xbf16>, vector<72x8xbf16>, vector<128x8xf32> -> vector<128x8xf32>
    %13 = vector.broadcast %11 : vector<1x8xf32> to vector<128x8xf32>
    %14 = arith.addf %12, %13 : vector<128x8xf32>
    %cst_15 = arith.constant 0.000000e+00 : f32
    %15 = vector.broadcast %cst_15 : f32 to vector<128x8xf32>
    %16 = arith.maximumf %14, %15 : vector<128x8xf32>
    %17 = arith.addf %16, %1 : vector<128x8xf32>
    %c0_16 = arith.constant 0 : index
    %c0_17 = arith.constant 0 : index
    %18 = vector.load %arg7[%c0_16, %c0_17] : memref<128x8xf32, #tpu.memory_space<vmem>>, vector<128x8xf32>
    tpu.vector_store %arg7[%c0_16, %c0_17], %17 {strides = array<i32>} : memref<128x8xf32, #tpu.memory_space<vmem>>, vector<128x8xf32>,
    return
  }
}

module attributes {stable_mosaic.version = 11 : i64} {
  func.func @_fused_matmul_kernel(%arg0: memref<32x72xbf16, #tpu.memory_space<vmem>>, %arg1: memref<72x8xbf16, #tpu.memory_space<vmem>>, %arg2: memref<1x8xf32, #tpu.memory_space<vmem>>, %arg3: memref<32x8xf32, #tpu.memory_space<vmem>>) attributes {dimension_semantics = [], scalar_prefetch = 0 : i64, scratch_operands = 0 : i64, tpu.core_type = #tpu.core_type<tc>} {
    %c0 = arith.constant 0 : index
    %c0_0 = arith.constant 0 : index
    %0 = vector.load %arg0[%c0, %c0_0] : memref<32x72xbf16, #tpu.memory_space<vmem>>, vector<32x72xbf16>
    %c0_1 = arith.constant 0 : index
    %c0_2 = arith.constant 0 : index
    %1 = vector.load %arg1[%c0_1, %c0_2] : memref<72x8xbf16, #tpu.memory_space<vmem>>, vector<72x8xbf16>
    %c0_3 = arith.constant 0 : index
    %c0_4 = arith.constant 0 : index
    %2 = vector.load %arg2[%c0_3, %c0_4] : memref<1x8xf32, #tpu.memory_space<vmem>>, vector<1x8xf32>
    %cst = arith.constant dense<0.000000e+00> : vector<32x8xf32>
    %3 = tpu.matmul %0, %1, %cst {dimension_numbers = #tpu.dot_dimension_numbers<[1], [0], [0], [1], [0, 0, 1, 1], [], []>} : vector<32x72xbf16>, vector<72x8xbf16>, vector<32x8xf32> -> vector<32x8xf32>
    %4 = vector.broadcast %2 : vector<1x8xf32> to vector<32x8xf32>
    %5 = arith.addf %3, %4 : vector<32x8xf32>
    %cst_5 = arith.constant 0.000000e+00 : f32
    %6 = vector.broadcast %cst_5 : f32 to vector<32x8xf32>
    %7 = arith.maximumf %5, %6 : vector<32x8xf32>
    %c0_6 = arith.constant 0 : index
    %c0_7 = arith.constant 0 : index
    %8 = vector.load %arg3[%c0_6, %c0_7] : memref<32x8xf32, #tpu.memory_space<vmem>>, vector<32x8xf32>
    tpu.vector_store %arg3[%c0_6, %c0_7], %7 {strides = array<i32>} : memref<32x8xf32, #tpu.memory_space<vmem>>, vector<32x8xf32>,
    return
  }
}

module attributes {stable_mosaic.version = 11 : i64} {
  func.func @_upsample_add_kernel(%arg0: memref<2x16x8xf32, #tpu.memory_space<vmem>>, %arg1: memref<64x16xf32, #tpu.memory_space<vmem>>, %arg2: memref<2x64x8xf32, #tpu.memory_space<vmem>>, %arg3: memref<2x64x8xf32, #tpu.memory_space<vmem>>) attributes {dimension_semantics = [], scalar_prefetch = 0 : i64, scratch_operands = 0 : i64, tpu.core_type = #tpu.core_type<tc>} {
    %c0 = arith.constant 0 : index
    %c0_0 = arith.constant 0 : index
    %0 = vector.load %arg1[%c0, %c0_0] : memref<64x16xf32, #tpu.memory_space<vmem>>, vector<64x16xf32>
    %c0_1 = arith.constant 0 : index
    %c0_2 = arith.constant 0 : index
    %c0_3 = arith.constant 0 : index
    %1 = vector.load %arg0[%c0_1, %c0_2, %c0_3] : memref<2x16x8xf32, #tpu.memory_space<vmem>>, vector<1x16x8xf32>
    %2 = vector.shape_cast %1 : vector<1x16x8xf32> to vector<16x8xf32>
    %cst = arith.constant dense<0.000000e+00> : vector<64x8xf32>
    %3 = tpu.matmul %0, %2, %cst {dimension_numbers = #tpu.dot_dimension_numbers<[1], [0], [0], [1], [0, 0, 1, 1], [], []>} : vector<64x16xf32>, vector<16x8xf32>, vector<64x8xf32> -> vector<64x8xf32>
    %c0_4 = arith.constant 0 : index
    %c0_5 = arith.constant 0 : index
    %c0_6 = arith.constant 0 : index
    %4 = vector.load %arg2[%c0_4, %c0_5, %c0_6] : memref<2x64x8xf32, #tpu.memory_space<vmem>>, vector<1x64x8xf32>
    %5 = vector.shape_cast %4 : vector<1x64x8xf32> to vector<64x8xf32>
    %6 = arith.addf %3, %5 : vector<64x8xf32>
    %c0_7 = arith.constant 0 : index
    %c0_8 = arith.constant 0 : index
    %c0_9 = arith.constant 0 : index
    %7 = vector.load %arg3[%c0_7, %c0_8, %c0_9] : memref<2x64x8xf32, #tpu.memory_space<vmem>>, vector<1x64x8xf32>
    %8 = vector.shape_cast %7 : vector<1x64x8xf32> to vector<64x8xf32>
    %9 = vector.shape_cast %6 : vector<64x8xf32> to vector<1x64x8xf32>
    tpu.vector_store %arg3[%c0_7, %c0_8, %c0_9], %9 {strides = array<i32>} : memref<2x64x8xf32, #tpu.memory_space<vmem>>, vector<1x64x8xf32>,
    %c1 = arith.constant 1 : index
    %c0_10 = arith.constant 0 : index
    %c0_11 = arith.constant 0 : index
    %10 = vector.load %arg0[%c1, %c0_10, %c0_11] : memref<2x16x8xf32, #tpu.memory_space<vmem>>, vector<1x16x8xf32>
    %11 = vector.shape_cast %10 : vector<1x16x8xf32> to vector<16x8xf32>
    %cst_12 = arith.constant dense<0.000000e+00> : vector<64x8xf32>
    %12 = tpu.matmul %0, %11, %cst_12 {dimension_numbers = #tpu.dot_dimension_numbers<[1], [0], [0], [1], [0, 0, 1, 1], [], []>} : vector<64x16xf32>, vector<16x8xf32>, vector<64x8xf32> -> vector<64x8xf32>
    %c1_13 = arith.constant 1 : index
    %c0_14 = arith.constant 0 : index
    %c0_15 = arith.constant 0 : index
    %13 = vector.load %arg2[%c1_13, %c0_14, %c0_15] : memref<2x64x8xf32, #tpu.memory_space<vmem>>, vector<1x64x8xf32>
    %14 = vector.shape_cast %13 : vector<1x64x8xf32> to vector<64x8xf32>
    %15 = arith.addf %12, %14 : vector<64x8xf32>
    %c1_16 = arith.constant 1 : index
    %c0_17 = arith.constant 0 : index
    %c0_18 = arith.constant 0 : index
    %16 = vector.load %arg3[%c1_16, %c0_17, %c0_18] : memref<2x64x8xf32, #tpu.memory_space<vmem>>, vector<1x64x8xf32>
    %17 = vector.shape_cast %16 : vector<1x64x8xf32> to vector<64x8xf32>
    %18 = vector.shape_cast %15 : vector<64x8xf32> to vector<1x64x8xf32>
    tpu.vector_store %arg3[%c1_16, %c0_17, %c0_18], %18 {strides = array<i32>} : memref<2x64x8xf32, #tpu.memory_space<vmem>>, vector<1x64x8xf32>,
    return
  }
}

module attributes {stable_mosaic.version = 11 : i64} {
  func.func @_fused_matmul_kernel(%arg0: memref<32x72xbf16, #tpu.memory_space<vmem>>, %arg1: memref<72x8xbf16, #tpu.memory_space<vmem>>, %arg2: memref<1x8xf32, #tpu.memory_space<vmem>>, %arg3: memref<72x8xbf16, #tpu.memory_space<vmem>>, %arg4: memref<1x8xf32, #tpu.memory_space<vmem>>, %arg5: memref<32x8xf32, #tpu.memory_space<vmem>>, %arg6: memref<32x8xf32, #tpu.memory_space<vmem>>, %arg7: memref<32x8xf32, #tpu.memory_space<vmem>>) attributes {dimension_semantics = [], scalar_prefetch = 0 : i64, scratch_operands = 0 : i64, tpu.core_type = #tpu.core_type<tc>} {
    %c0 = arith.constant 0 : index
    %c0_0 = arith.constant 0 : index
    %0 = vector.load %arg0[%c0, %c0_0] : memref<32x72xbf16, #tpu.memory_space<vmem>>, vector<32x72xbf16>
    %c0_1 = arith.constant 0 : index
    %c0_2 = arith.constant 0 : index
    %1 = vector.load %arg5[%c0_1, %c0_2] : memref<32x8xf32, #tpu.memory_space<vmem>>, vector<32x8xf32>
    %c0_3 = arith.constant 0 : index
    %c0_4 = arith.constant 0 : index
    %2 = vector.load %arg1[%c0_3, %c0_4] : memref<72x8xbf16, #tpu.memory_space<vmem>>, vector<72x8xbf16>
    %c0_5 = arith.constant 0 : index
    %c0_6 = arith.constant 0 : index
    %3 = vector.load %arg2[%c0_5, %c0_6] : memref<1x8xf32, #tpu.memory_space<vmem>>, vector<1x8xf32>
    %cst = arith.constant dense<0.000000e+00> : vector<32x8xf32>
    %4 = tpu.matmul %0, %2, %cst {dimension_numbers = #tpu.dot_dimension_numbers<[1], [0], [0], [1], [0, 0, 1, 1], [], []>} : vector<32x72xbf16>, vector<72x8xbf16>, vector<32x8xf32> -> vector<32x8xf32>
    %5 = vector.broadcast %3 : vector<1x8xf32> to vector<32x8xf32>
    %6 = arith.addf %4, %5 : vector<32x8xf32>
    %cst_7 = arith.constant 0.000000e+00 : f32
    %7 = vector.broadcast %cst_7 : f32 to vector<32x8xf32>
    %8 = arith.maximumf %6, %7 : vector<32x8xf32>
    %c0_8 = arith.constant 0 : index
    %c0_9 = arith.constant 0 : index
    %9 = vector.load %arg6[%c0_8, %c0_9] : memref<32x8xf32, #tpu.memory_space<vmem>>, vector<32x8xf32>
    tpu.vector_store %arg6[%c0_8, %c0_9], %8 {strides = array<i32>} : memref<32x8xf32, #tpu.memory_space<vmem>>, vector<32x8xf32>,
    %c0_10 = arith.constant 0 : index
    %c0_11 = arith.constant 0 : index
    %10 = vector.load %arg3[%c0_10, %c0_11] : memref<72x8xbf16, #tpu.memory_space<vmem>>, vector<72x8xbf16>
    %c0_12 = arith.constant 0 : index
    %c0_13 = arith.constant 0 : index
    %11 = vector.load %arg4[%c0_12, %c0_13] : memref<1x8xf32, #tpu.memory_space<vmem>>, vector<1x8xf32>
    %cst_14 = arith.constant dense<0.000000e+00> : vector<32x8xf32>
    %12 = tpu.matmul %0, %10, %cst_14 {dimension_numbers = #tpu.dot_dimension_numbers<[1], [0], [0], [1], [0, 0, 1, 1], [], []>} : vector<32x72xbf16>, vector<72x8xbf16>, vector<32x8xf32> -> vector<32x8xf32>
    %13 = vector.broadcast %11 : vector<1x8xf32> to vector<32x8xf32>
    %14 = arith.addf %12, %13 : vector<32x8xf32>
    %cst_15 = arith.constant 0.000000e+00 : f32
    %15 = vector.broadcast %cst_15 : f32 to vector<32x8xf32>
    %16 = arith.maximumf %14, %15 : vector<32x8xf32>
    %17 = arith.addf %16, %1 : vector<32x8xf32>
    %c0_16 = arith.constant 0 : index
    %c0_17 = arith.constant 0 : index
    %18 = vector.load %arg7[%c0_16, %c0_17] : memref<32x8xf32, #tpu.memory_space<vmem>>, vector<32x8xf32>
    tpu.vector_store %arg7[%c0_16, %c0_17], %17 {strides = array<i32>} : memref<32x8xf32, #tpu.memory_space<vmem>>, vector<32x8xf32>,
    return
  }
}

module attributes {stable_mosaic.version = 11 : i64} {
  func.func @_upsample_add_kernel(%arg0: memref<2x4x8xf32, #tpu.memory_space<vmem>>, %arg1: memref<16x4xf32, #tpu.memory_space<vmem>>, %arg2: memref<2x16x8xf32, #tpu.memory_space<vmem>>, %arg3: memref<2x16x8xf32, #tpu.memory_space<vmem>>) attributes {dimension_semantics = [], scalar_prefetch = 0 : i64, scratch_operands = 0 : i64, tpu.core_type = #tpu.core_type<tc>} {
    %c0 = arith.constant 0 : index
    %c0_0 = arith.constant 0 : index
    %0 = vector.load %arg1[%c0, %c0_0] : memref<16x4xf32, #tpu.memory_space<vmem>>, vector<16x4xf32>
    %c0_1 = arith.constant 0 : index
    %c0_2 = arith.constant 0 : index
    %c0_3 = arith.constant 0 : index
    %1 = vector.load %arg0[%c0_1, %c0_2, %c0_3] : memref<2x4x8xf32, #tpu.memory_space<vmem>>, vector<1x4x8xf32>
    %2 = vector.shape_cast %1 : vector<1x4x8xf32> to vector<4x8xf32>
    %cst = arith.constant dense<0.000000e+00> : vector<16x8xf32>
    %3 = tpu.matmul %0, %2, %cst {dimension_numbers = #tpu.dot_dimension_numbers<[1], [0], [0], [1], [0, 0, 1, 1], [], []>} : vector<16x4xf32>, vector<4x8xf32>, vector<16x8xf32> -> vector<16x8xf32>
    %c0_4 = arith.constant 0 : index
    %c0_5 = arith.constant 0 : index
    %c0_6 = arith.constant 0 : index
    %4 = vector.load %arg2[%c0_4, %c0_5, %c0_6] : memref<2x16x8xf32, #tpu.memory_space<vmem>>, vector<1x16x8xf32>
    %5 = vector.shape_cast %4 : vector<1x16x8xf32> to vector<16x8xf32>
    %6 = arith.addf %3, %5 : vector<16x8xf32>
    %c0_7 = arith.constant 0 : index
    %c0_8 = arith.constant 0 : index
    %c0_9 = arith.constant 0 : index
    %7 = vector.load %arg3[%c0_7, %c0_8, %c0_9] : memref<2x16x8xf32, #tpu.memory_space<vmem>>, vector<1x16x8xf32>
    %8 = vector.shape_cast %7 : vector<1x16x8xf32> to vector<16x8xf32>
    %9 = vector.shape_cast %6 : vector<16x8xf32> to vector<1x16x8xf32>
    tpu.vector_store %arg3[%c0_7, %c0_8, %c0_9], %9 {strides = array<i32>} : memref<2x16x8xf32, #tpu.memory_space<vmem>>, vector<1x16x8xf32>,
    %c1 = arith.constant 1 : index
    %c0_10 = arith.constant 0 : index
    %c0_11 = arith.constant 0 : index
    %10 = vector.load %arg0[%c1, %c0_10, %c0_11] : memref<2x4x8xf32, #tpu.memory_space<vmem>>, vector<1x4x8xf32>
    %11 = vector.shape_cast %10 : vector<1x4x8xf32> to vector<4x8xf32>
    %cst_12 = arith.constant dense<0.000000e+00> : vector<16x8xf32>
    %12 = tpu.matmul %0, %11, %cst_12 {dimension_numbers = #tpu.dot_dimension_numbers<[1], [0], [0], [1], [0, 0, 1, 1], [], []>} : vector<16x4xf32>, vector<4x8xf32>, vector<16x8xf32> -> vector<16x8xf32>
    %c1_13 = arith.constant 1 : index
    %c0_14 = arith.constant 0 : index
    %c0_15 = arith.constant 0 : index
    %13 = vector.load %arg2[%c1_13, %c0_14, %c0_15] : memref<2x16x8xf32, #tpu.memory_space<vmem>>, vector<1x16x8xf32>
    %14 = vector.shape_cast %13 : vector<1x16x8xf32> to vector<16x8xf32>
    %15 = arith.addf %12, %14 : vector<16x8xf32>
    %c1_16 = arith.constant 1 : index
    %c0_17 = arith.constant 0 : index
    %c0_18 = arith.constant 0 : index
    %16 = vector.load %arg3[%c1_16, %c0_17, %c0_18] : memref<2x16x8xf32, #tpu.memory_space<vmem>>, vector<1x16x8xf32>
    %17 = vector.shape_cast %16 : vector<1x16x8xf32> to vector<16x8xf32>
    %18 = vector.shape_cast %15 : vector<16x8xf32> to vector<1x16x8xf32>
    tpu.vector_store %arg3[%c1_16, %c0_17, %c0_18], %18 {strides = array<i32>} : memref<2x16x8xf32, #tpu.memory_space<vmem>>, vector<1x16x8xf32>,
    return
  }
}

module attributes {stable_mosaic.version = 11 : i64} {
  func.func @_fused_matmul_kernel(%arg0: memref<8x72xbf16, #tpu.memory_space<vmem>>, %arg1: memref<72x8xbf16, #tpu.memory_space<vmem>>, %arg2: memref<1x8xf32, #tpu.memory_space<vmem>>, %arg3: memref<8x8xf32, #tpu.memory_space<vmem>>) attributes {dimension_semantics = [], scalar_prefetch = 0 : i64, scratch_operands = 0 : i64, tpu.core_type = #tpu.core_type<tc>} {
    %c0 = arith.constant 0 : index
    %c0_0 = arith.constant 0 : index
    %0 = vector.load %arg0[%c0, %c0_0] : memref<8x72xbf16, #tpu.memory_space<vmem>>, vector<8x72xbf16>
    %c0_1 = arith.constant 0 : index
    %c0_2 = arith.constant 0 : index
    %1 = vector.load %arg1[%c0_1, %c0_2] : memref<72x8xbf16, #tpu.memory_space<vmem>>, vector<72x8xbf16>
    %c0_3 = arith.constant 0 : index
    %c0_4 = arith.constant 0 : index
    %2 = vector.load %arg2[%c0_3, %c0_4] : memref<1x8xf32, #tpu.memory_space<vmem>>, vector<1x8xf32>
    %cst = arith.constant dense<0.000000e+00> : vector<8x8xf32>
    %3 = tpu.matmul %0, %1, %cst {dimension_numbers = #tpu.dot_dimension_numbers<[1], [0], [0], [1], [0, 0, 1, 1], [], []>} : vector<8x72xbf16>, vector<72x8xbf16>, vector<8x8xf32> -> vector<8x8xf32>
    %4 = vector.broadcast %2 : vector<1x8xf32> to vector<8x8xf32>
    %5 = arith.addf %3, %4 : vector<8x8xf32>
    %cst_5 = arith.constant 0.000000e+00 : f32
    %6 = vector.broadcast %cst_5 : f32 to vector<8x8xf32>
    %7 = arith.maximumf %5, %6 : vector<8x8xf32>
    %c0_6 = arith.constant 0 : index
    %c0_7 = arith.constant 0 : index
    %8 = vector.load %arg3[%c0_6, %c0_7] : memref<8x8xf32, #tpu.memory_space<vmem>>, vector<8x8xf32>
    tpu.vector_store %arg3[%c0_6, %c0_7], %7 {strides = array<i32>} : memref<8x8xf32, #tpu.memory_space<vmem>>, vector<8x8xf32>,
    return
  }
}

module attributes {stable_mosaic.version = 11 : i64} {
  func.func @_fused_matmul_kernel(%arg0: memref<8x72xbf16, #tpu.memory_space<vmem>>, %arg1: memref<72x8xbf16, #tpu.memory_space<vmem>>, %arg2: memref<1x8xf32, #tpu.memory_space<vmem>>, %arg3: memref<72x8xbf16, #tpu.memory_space<vmem>>, %arg4: memref<1x8xf32, #tpu.memory_space<vmem>>, %arg5: memref<8x8xf32, #tpu.memory_space<vmem>>, %arg6: memref<8x8xf32, #tpu.memory_space<vmem>>, %arg7: memref<8x8xf32, #tpu.memory_space<vmem>>) attributes {dimension_semantics = [], scalar_prefetch = 0 : i64, scratch_operands = 0 : i64, tpu.core_type = #tpu.core_type<tc>} {
    %c0 = arith.constant 0 : index
    %c0_0 = arith.constant 0 : index
    %0 = vector.load %arg0[%c0, %c0_0] : memref<8x72xbf16, #tpu.memory_space<vmem>>, vector<8x72xbf16>
    %c0_1 = arith.constant 0 : index
    %c0_2 = arith.constant 0 : index
    %1 = vector.load %arg5[%c0_1, %c0_2] : memref<8x8xf32, #tpu.memory_space<vmem>>, vector<8x8xf32>
    %c0_3 = arith.constant 0 : index
    %c0_4 = arith.constant 0 : index
    %2 = vector.load %arg1[%c0_3, %c0_4] : memref<72x8xbf16, #tpu.memory_space<vmem>>, vector<72x8xbf16>
    %c0_5 = arith.constant 0 : index
    %c0_6 = arith.constant 0 : index
    %3 = vector.load %arg2[%c0_5, %c0_6] : memref<1x8xf32, #tpu.memory_space<vmem>>, vector<1x8xf32>
    %cst = arith.constant dense<0.000000e+00> : vector<8x8xf32>
    %4 = tpu.matmul %0, %2, %cst {dimension_numbers = #tpu.dot_dimension_numbers<[1], [0], [0], [1], [0, 0, 1, 1], [], []>} : vector<8x72xbf16>, vector<72x8xbf16>, vector<8x8xf32> -> vector<8x8xf32>
    %5 = vector.broadcast %3 : vector<1x8xf32> to vector<8x8xf32>
    %6 = arith.addf %4, %5 : vector<8x8xf32>
    %cst_7 = arith.constant 0.000000e+00 : f32
    %7 = vector.broadcast %cst_7 : f32 to vector<8x8xf32>
    %8 = arith.maximumf %6, %7 : vector<8x8xf32>
    %c0_8 = arith.constant 0 : index
    %c0_9 = arith.constant 0 : index
    %9 = vector.load %arg6[%c0_8, %c0_9] : memref<8x8xf32, #tpu.memory_space<vmem>>, vector<8x8xf32>
    tpu.vector_store %arg6[%c0_8, %c0_9], %8 {strides = array<i32>} : memref<8x8xf32, #tpu.memory_space<vmem>>, vector<8x8xf32>,
    %c0_10 = arith.constant 0 : index
    %c0_11 = arith.constant 0 : index
    %10 = vector.load %arg3[%c0_10, %c0_11] : memref<72x8xbf16, #tpu.memory_space<vmem>>, vector<72x8xbf16>
    %c0_12 = arith.constant 0 : index
    %c0_13 = arith.constant 0 : index
    %11 = vector.load %arg4[%c0_12, %c0_13] : memref<1x8xf32, #tpu.memory_space<vmem>>, vector<1x8xf32>
    %cst_14 = arith.constant dense<0.000000e+00> : vector<8x8xf32>
    %12 = tpu.matmul %0, %10, %cst_14 {dimension_numbers = #tpu.dot_dimension_numbers<[1], [0], [0], [1], [0, 0, 1, 1], [], []>} : vector<8x72xbf16>, vector<72x8xbf16>, vector<8x8xf32> -> vector<8x8xf32>
    %13 = vector.broadcast %11 : vector<1x8xf32> to vector<8x8xf32>
    %14 = arith.addf %12, %13 : vector<8x8xf32>
    %cst_15 = arith.constant 0.000000e+00 : f32
    %15 = vector.broadcast %cst_15 : f32 to vector<8x8xf32>
    %16 = arith.maximumf %14, %15 : vector<8x8xf32>
    %17 = arith.addf %16, %1 : vector<8x8xf32>
    %c0_16 = arith.constant 0 : index
    %c0_17 = arith.constant 0 : index
    %18 = vector.load %arg7[%c0_16, %c0_17] : memref<8x8xf32, #tpu.memory_space<vmem>>, vector<8x8xf32>
    tpu.vector_store %arg7[%c0_16, %c0_17], %17 {strides = array<i32>} : memref<8x8xf32, #tpu.memory_space<vmem>>, vector<8x8xf32>,
    return
  }
}

module attributes {stable_mosaic.version = 11 : i64} {
  func.func @_upsample_add_kernel(%arg0: memref<2x1x8xf32, #tpu.memory_space<vmem>>, %arg1: memref<4x1xf32, #tpu.memory_space<vmem>>, %arg2: memref<2x4x8xf32, #tpu.memory_space<vmem>>, %arg3: memref<2x4x8xf32, #tpu.memory_space<vmem>>) attributes {dimension_semantics = [], scalar_prefetch = 0 : i64, scratch_operands = 0 : i64, tpu.core_type = #tpu.core_type<tc>} {
    %c0 = arith.constant 0 : index
    %c0_0 = arith.constant 0 : index
    %0 = vector.load %arg1[%c0, %c0_0] : memref<4x1xf32, #tpu.memory_space<vmem>>, vector<4x1xf32>
    %c0_1 = arith.constant 0 : index
    %c0_2 = arith.constant 0 : index
    %c0_3 = arith.constant 0 : index
    %1 = vector.load %arg0[%c0_1, %c0_2, %c0_3] : memref<2x1x8xf32, #tpu.memory_space<vmem>>, vector<1x1x8xf32>
    %2 = vector.shape_cast %1 : vector<1x1x8xf32> to vector<1x8xf32>
    %3 = vector.broadcast %0 : vector<4x1xf32> to vector<4x8xf32>
    %4 = vector.broadcast %2 : vector<1x8xf32> to vector<4x8xf32>
    %5 = arith.mulf %3, %4 : vector<4x8xf32>
    %c0_4 = arith.constant 0 : index
    %c0_5 = arith.constant 0 : index
    %c0_6 = arith.constant 0 : index
    %6 = vector.load %arg2[%c0_4, %c0_5, %c0_6] : memref<2x4x8xf32, #tpu.memory_space<vmem>>, vector<1x4x8xf32>
    %7 = vector.shape_cast %6 : vector<1x4x8xf32> to vector<4x8xf32>
    %8 = arith.addf %5, %7 : vector<4x8xf32>
    %c0_7 = arith.constant 0 : index
    %c0_8 = arith.constant 0 : index
    %c0_9 = arith.constant 0 : index
    %9 = vector.load %arg3[%c0_7, %c0_8, %c0_9] : memref<2x4x8xf32, #tpu.memory_space<vmem>>, vector<1x4x8xf32>
    %10 = vector.shape_cast %9 : vector<1x4x8xf32> to vector<4x8xf32>
    %11 = vector.shape_cast %8 : vector<4x8xf32> to vector<1x4x8xf32>
    tpu.vector_store %arg3[%c0_7, %c0_8, %c0_9], %11 {strides = array<i32>} : memref<2x4x8xf32, #tpu.memory_space<vmem>>, vector<1x4x8xf32>,
    %c1 = arith.constant 1 : index
    %c0_10 = arith.constant 0 : index
    %c0_11 = arith.constant 0 : index
    %12 = vector.load %arg0[%c1, %c0_10, %c0_11] : memref<2x1x8xf32, #tpu.memory_space<vmem>>, vector<1x1x8xf32>
    %13 = vector.shape_cast %12 : vector<1x1x8xf32> to vector<1x8xf32>
    %14 = vector.broadcast %0 : vector<4x1xf32> to vector<4x8xf32>
    %15 = vector.broadcast %13 : vector<1x8xf32> to vector<4x8xf32>
    %16 = arith.mulf %14, %15 : vector<4x8xf32>
    %c1_12 = arith.constant 1 : index
    %c0_13 = arith.constant 0 : index
    %c0_14 = arith.constant 0 : index
    %17 = vector.load %arg2[%c1_12, %c0_13, %c0_14] : memref<2x4x8xf32, #tpu.memory_space<vmem>>, vector<1x4x8xf32>
    %18 = vector.shape_cast %17 : vector<1x4x8xf32> to vector<4x8xf32>
    %19 = arith.addf %16, %18 : vector<4x8xf32>
    %c1_15 = arith.constant 1 : index
    %c0_16 = arith.constant 0 : index
    %c0_17 = arith.constant 0 : index
    %20 = vector.load %arg3[%c1_15, %c0_16, %c0_17] : memref<2x4x8xf32, #tpu.memory_space<vmem>>, vector<1x4x8xf32>
    %21 = vector.shape_cast %20 : vector<1x4x8xf32> to vector<4x8xf32>
    %22 = vector.shape_cast %19 : vector<4x8xf32> to vector<1x4x8xf32>
    tpu.vector_store %arg3[%c1_15, %c0_16, %c0_17], %22 {strides = array<i32>} : memref<2x4x8xf32, #tpu.memory_space<vmem>>, vector<1x4x8xf32>,
    return
  }
}

module attributes {stable_mosaic.version = 11 : i64} {
  func.func @_fused_matmul_kernel(%arg0: memref<2x72xbf16, #tpu.memory_space<vmem>>, %arg1: memref<72x8xbf16, #tpu.memory_space<vmem>>, %arg2: memref<1x8xf32, #tpu.memory_space<vmem>>, %arg3: memref<2x8xf32, #tpu.memory_space<vmem>>) attributes {dimension_semantics = [], scalar_prefetch = 0 : i64, scratch_operands = 0 : i64, tpu.core_type = #tpu.core_type<tc>} {
    %c0 = arith.constant 0 : index
    %c0_0 = arith.constant 0 : index
    %0 = vector.load %arg0[%c0, %c0_0] : memref<2x72xbf16, #tpu.memory_space<vmem>>, vector<2x72xbf16>
    %c0_1 = arith.constant 0 : index
    %c0_2 = arith.constant 0 : index
    %1 = vector.load %arg1[%c0_1, %c0_2] : memref<72x8xbf16, #tpu.memory_space<vmem>>, vector<72x8xbf16>
    %c0_3 = arith.constant 0 : index
    %c0_4 = arith.constant 0 : index
    %2 = vector.load %arg2[%c0_3, %c0_4] : memref<1x8xf32, #tpu.memory_space<vmem>>, vector<1x8xf32>
    %cst = arith.constant dense<0.000000e+00> : vector<2x8xf32>
    %3 = tpu.matmul %0, %1, %cst {dimension_numbers = #tpu.dot_dimension_numbers<[1], [0], [0], [1], [0, 0, 1, 1], [], []>} : vector<2x72xbf16>, vector<72x8xbf16>, vector<2x8xf32> -> vector<2x8xf32>
    %4 = vector.broadcast %2 : vector<1x8xf32> to vector<2x8xf32>
    %5 = arith.addf %3, %4 : vector<2x8xf32>
    %cst_5 = arith.constant 0.000000e+00 : f32
    %6 = vector.broadcast %cst_5 : f32 to vector<2x8xf32>
    %7 = arith.maximumf %5, %6 : vector<2x8xf32>
    %c0_6 = arith.constant 0 : index
    %c0_7 = arith.constant 0 : index
    %8 = vector.load %arg3[%c0_6, %c0_7] : memref<2x8xf32, #tpu.memory_space<vmem>>, vector<2x8xf32>
    tpu.vector_store %arg3[%c0_6, %c0_7], %7 {strides = array<i32>} : memref<2x8xf32, #tpu.memory_space<vmem>>, vector<2x8xf32>,
    return
  }
}

module attributes {stable_mosaic.version = 11 : i64} {
  func.func @_fused_matmul_kernel(%arg0: memref<8x72xbf16, #tpu.memory_space<vmem>>, %arg1: memref<72x8xbf16, #tpu.memory_space<vmem>>, %arg2: memref<1x8xf32, #tpu.memory_space<vmem>>, %arg3: memref<72x6xbf16, #tpu.memory_space<vmem>>, %arg4: memref<1x6xf32, #tpu.memory_space<vmem>>, %arg5: memref<8x8xf32, #tpu.memory_space<vmem>>, %arg6: memref<8x6xf32, #tpu.memory_space<vmem>>) attributes {dimension_semantics = [], scalar_prefetch = 0 : i64, scratch_operands = 0 : i64, tpu.core_type = #tpu.core_type<tc>} {
    %c0 = arith.constant 0 : index
    %c0_0 = arith.constant 0 : index
    %0 = vector.load %arg0[%c0, %c0_0] : memref<8x72xbf16, #tpu.memory_space<vmem>>, vector<8x72xbf16>
    %c0_1 = arith.constant 0 : index
    %c0_2 = arith.constant 0 : index
    %1 = vector.load %arg1[%c0_1, %c0_2] : memref<72x8xbf16, #tpu.memory_space<vmem>>, vector<72x8xbf16>
    %c0_3 = arith.constant 0 : index
    %c0_4 = arith.constant 0 : index
    %2 = vector.load %arg2[%c0_3, %c0_4] : memref<1x8xf32, #tpu.memory_space<vmem>>, vector<1x8xf32>
    %cst = arith.constant dense<0.000000e+00> : vector<8x8xf32>
    %3 = tpu.matmul %0, %1, %cst {dimension_numbers = #tpu.dot_dimension_numbers<[1], [0], [0], [1], [0, 0, 1, 1], [], []>} : vector<8x72xbf16>, vector<72x8xbf16>, vector<8x8xf32> -> vector<8x8xf32>
    %4 = vector.broadcast %2 : vector<1x8xf32> to vector<8x8xf32>
    %5 = arith.addf %3, %4 : vector<8x8xf32>
    %c0_5 = arith.constant 0 : index
    %c0_6 = arith.constant 0 : index
    %6 = vector.load %arg5[%c0_5, %c0_6] : memref<8x8xf32, #tpu.memory_space<vmem>>, vector<8x8xf32>
    tpu.vector_store %arg5[%c0_5, %c0_6], %5 {strides = array<i32>} : memref<8x8xf32, #tpu.memory_space<vmem>>, vector<8x8xf32>,
    %c0_7 = arith.constant 0 : index
    %c0_8 = arith.constant 0 : index
    %7 = vector.load %arg3[%c0_7, %c0_8] : memref<72x6xbf16, #tpu.memory_space<vmem>>, vector<72x6xbf16>
    %c0_9 = arith.constant 0 : index
    %c0_10 = arith.constant 0 : index
    %8 = vector.load %arg4[%c0_9, %c0_10] : memref<1x6xf32, #tpu.memory_space<vmem>>, vector<1x6xf32>
    %cst_11 = arith.constant dense<0.000000e+00> : vector<8x6xf32>
    %9 = tpu.matmul %0, %7, %cst_11 {dimension_numbers = #tpu.dot_dimension_numbers<[1], [0], [0], [1], [0, 0, 1, 1], [], []>} : vector<8x72xbf16>, vector<72x6xbf16>, vector<8x6xf32> -> vector<8x6xf32>
    %10 = vector.broadcast %8 : vector<1x6xf32> to vector<8x6xf32>
    %11 = arith.addf %9, %10 : vector<8x6xf32>
    %c0_12 = arith.constant 0 : index
    %c0_13 = arith.constant 0 : index
    %12 = vector.load %arg6[%c0_12, %c0_13] : memref<8x6xf32, #tpu.memory_space<vmem>>, vector<8x6xf32>
    tpu.vector_store %arg6[%c0_12, %c0_13], %11 {strides = array<i32>} : memref<8x6xf32, #tpu.memory_space<vmem>>, vector<8x6xf32>,
    return
  }
}

module attributes {stable_mosaic.version = 11 : i64} {
  func.func @_fused_matmul_kernel(%arg0: memref<2x72xbf16, #tpu.memory_space<vmem>>, %arg1: memref<72x8xbf16, #tpu.memory_space<vmem>>, %arg2: memref<1x8xf32, #tpu.memory_space<vmem>>, %arg3: memref<72x6xbf16, #tpu.memory_space<vmem>>, %arg4: memref<1x6xf32, #tpu.memory_space<vmem>>, %arg5: memref<2x8xf32, #tpu.memory_space<vmem>>, %arg6: memref<2x6xf32, #tpu.memory_space<vmem>>) attributes {dimension_semantics = [], scalar_prefetch = 0 : i64, scratch_operands = 0 : i64, tpu.core_type = #tpu.core_type<tc>} {
    %c0 = arith.constant 0 : index
    %c0_0 = arith.constant 0 : index
    %0 = vector.load %arg0[%c0, %c0_0] : memref<2x72xbf16, #tpu.memory_space<vmem>>, vector<2x72xbf16>
    %c0_1 = arith.constant 0 : index
    %c0_2 = arith.constant 0 : index
    %1 = vector.load %arg1[%c0_1, %c0_2] : memref<72x8xbf16, #tpu.memory_space<vmem>>, vector<72x8xbf16>
    %c0_3 = arith.constant 0 : index
    %c0_4 = arith.constant 0 : index
    %2 = vector.load %arg2[%c0_3, %c0_4] : memref<1x8xf32, #tpu.memory_space<vmem>>, vector<1x8xf32>
    %cst = arith.constant dense<0.000000e+00> : vector<2x8xf32>
    %3 = tpu.matmul %0, %1, %cst {dimension_numbers = #tpu.dot_dimension_numbers<[1], [0], [0], [1], [0, 0, 1, 1], [], []>} : vector<2x72xbf16>, vector<72x8xbf16>, vector<2x8xf32> -> vector<2x8xf32>
    %4 = vector.broadcast %2 : vector<1x8xf32> to vector<2x8xf32>
    %5 = arith.addf %3, %4 : vector<2x8xf32>
    %c0_5 = arith.constant 0 : index
    %c0_6 = arith.constant 0 : index
    %6 = vector.load %arg5[%c0_5, %c0_6] : memref<2x8xf32, #tpu.memory_space<vmem>>, vector<2x8xf32>
    tpu.vector_store %arg5[%c0_5, %c0_6], %5 {strides = array<i32>} : memref<2x8xf32, #tpu.memory_space<vmem>>, vector<2x8xf32>,
    %c0_7 = arith.constant 0 : index
    %c0_8 = arith.constant 0 : index
    %7 = vector.load %arg3[%c0_7, %c0_8] : memref<72x6xbf16, #tpu.memory_space<vmem>>, vector<72x6xbf16>
    %c0_9 = arith.constant 0 : index
    %c0_10 = arith.constant 0 : index
    %8 = vector.load %arg4[%c0_9, %c0_10] : memref<1x6xf32, #tpu.memory_space<vmem>>, vector<1x6xf32>
    %cst_11 = arith.constant dense<0.000000e+00> : vector<2x6xf32>
    %9 = tpu.matmul %0, %7, %cst_11 {dimension_numbers = #tpu.dot_dimension_numbers<[1], [0], [0], [1], [0, 0, 1, 1], [], []>} : vector<2x72xbf16>, vector<72x6xbf16>, vector<2x6xf32> -> vector<2x6xf32>
    %10 = vector.broadcast %8 : vector<1x6xf32> to vector<2x6xf32>
    %11 = arith.addf %9, %10 : vector<2x6xf32>
    %c0_12 = arith.constant 0 : index
    %c0_13 = arith.constant 0 : index
    %12 = vector.load %arg6[%c0_12, %c0_13] : memref<2x6xf32, #tpu.memory_space<vmem>>, vector<2x6xf32>
    tpu.vector_store %arg6[%c0_12, %c0_13], %11 {strides = array<i32>} : memref<2x6xf32, #tpu.memory_space<vmem>>, vector<2x6xf32>,
    return
  }
}

module attributes {stable_mosaic.version = 11 : i64} {
  func.func @_fused_matmul_kernel(%arg0: memref<32x72xbf16, #tpu.memory_space<vmem>>, %arg1: memref<72x8xbf16, #tpu.memory_space<vmem>>, %arg2: memref<1x8xf32, #tpu.memory_space<vmem>>, %arg3: memref<72x6xbf16, #tpu.memory_space<vmem>>, %arg4: memref<1x6xf32, #tpu.memory_space<vmem>>, %arg5: memref<32x8xf32, #tpu.memory_space<vmem>>, %arg6: memref<32x6xf32, #tpu.memory_space<vmem>>) attributes {dimension_semantics = [], scalar_prefetch = 0 : i64, scratch_operands = 0 : i64, tpu.core_type = #tpu.core_type<tc>} {
    %c0 = arith.constant 0 : index
    %c0_0 = arith.constant 0 : index
    %0 = vector.load %arg0[%c0, %c0_0] : memref<32x72xbf16, #tpu.memory_space<vmem>>, vector<32x72xbf16>
    %c0_1 = arith.constant 0 : index
    %c0_2 = arith.constant 0 : index
    %1 = vector.load %arg1[%c0_1, %c0_2] : memref<72x8xbf16, #tpu.memory_space<vmem>>, vector<72x8xbf16>
    %c0_3 = arith.constant 0 : index
    %c0_4 = arith.constant 0 : index
    %2 = vector.load %arg2[%c0_3, %c0_4] : memref<1x8xf32, #tpu.memory_space<vmem>>, vector<1x8xf32>
    %cst = arith.constant dense<0.000000e+00> : vector<32x8xf32>
    %3 = tpu.matmul %0, %1, %cst {dimension_numbers = #tpu.dot_dimension_numbers<[1], [0], [0], [1], [0, 0, 1, 1], [], []>} : vector<32x72xbf16>, vector<72x8xbf16>, vector<32x8xf32> -> vector<32x8xf32>
    %4 = vector.broadcast %2 : vector<1x8xf32> to vector<32x8xf32>
    %5 = arith.addf %3, %4 : vector<32x8xf32>
    %c0_5 = arith.constant 0 : index
    %c0_6 = arith.constant 0 : index
    %6 = vector.load %arg5[%c0_5, %c0_6] : memref<32x8xf32, #tpu.memory_space<vmem>>, vector<32x8xf32>
    tpu.vector_store %arg5[%c0_5, %c0_6], %5 {strides = array<i32>} : memref<32x8xf32, #tpu.memory_space<vmem>>, vector<32x8xf32>,
    %c0_7 = arith.constant 0 : index
    %c0_8 = arith.constant 0 : index
    %7 = vector.load %arg3[%c0_7, %c0_8] : memref<72x6xbf16, #tpu.memory_space<vmem>>, vector<72x6xbf16>
    %c0_9 = arith.constant 0 : index
    %c0_10 = arith.constant 0 : index
    %8 = vector.load %arg4[%c0_9, %c0_10] : memref<1x6xf32, #tpu.memory_space<vmem>>, vector<1x6xf32>
    %cst_11 = arith.constant dense<0.000000e+00> : vector<32x6xf32>
    %9 = tpu.matmul %0, %7, %cst_11 {dimension_numbers = #tpu.dot_dimension_numbers<[1], [0], [0], [1], [0, 0, 1, 1], [], []>} : vector<32x72xbf16>, vector<72x6xbf16>, vector<32x6xf32> -> vector<32x6xf32>
    %10 = vector.broadcast %8 : vector<1x6xf32> to vector<32x6xf32>
    %11 = arith.addf %9, %10 : vector<32x6xf32>
    %c0_12 = arith.constant 0 : index
    %c0_13 = arith.constant 0 : index
    %12 = vector.load %arg6[%c0_12, %c0_13] : memref<32x6xf32, #tpu.memory_space<vmem>>, vector<32x6xf32>
    tpu.vector_store %arg6[%c0_12, %c0_13], %11 {strides = array<i32>} : memref<32x6xf32, #tpu.memory_space<vmem>>, vector<32x6xf32>,
    return
  }
}

</mosaic_0001>

<bundles_post_ra>
// kernel: _lambda_.31
= control target key start
LH: loop header
LB: loop body
LE: loop exit
PB: predicated region body
PF: predicated region fallthrough
CT: control target
= control target key end

     0   :  { %vm451_vm0 = vcmask 1043456   ;;  %vm354_vm1 = vcmask 588800   ;;  %vm688_vm2 = vcmask 64512   ;;  %s2525_s1 = inlined_call_operand.vmem [shape: bf16[72,8], index: 1, kind: input, shape index: {}]   ;;  %s2526_s3 = inlined_call_operand.vmem [shape: bf16[72,8], index: 3, kind: input, shape index: {}]   ;;  %s2527_s2 = inlined_call_operand.vmem [shape: f32[1,8], index: 2, kind: input, shape index: {}, may-alias: {2,4}]   ;;  %s2528_s0 = inlined_call_operand.vmem [shape: bf16[512,72], index: 0, kind: input, shape index: {}]   ;;  %s2529_s4 = inlined_call_operand.vmem [shape: f32[1,8], index: 4, kind: input, shape index: {}, may-alias: {2,4}]   ;;  %s2530_s5 = inlined_call_operand.vmem [shape: f32[512,8], index: 5, kind: input, shape index: {}]   ;;  %s2531_s6 = inlined_call_operand.vmem [shape: f32[512,8], index: 6, kind: output, shape index: {0}]   ;;  %s2532_s7 = inlined_call_operand.vmem [shape: f32[512,8], index: 7, kind: output, shape index: {1}]  }
   0x1   :  { %v162_v0 = vld [vmem:[%s2525_s1 + $0x20] sm:$0xf]  ;;  %v1424_v8 = vld [vmem:[%s2525_s1 + $0x18] sm:$0xff]  ;;  %v1423_v10 = vld [vmem:[%s2525_s1 + $0x10] sm:$0xff] }
   0x2   :  { %v761_v1 = vld [vmem:[%s2526_s3 + $0x20] sm:$0xf]  ;;  %v344_v2 = vunpack.c.l.b16 %v162_v0  ;;  %v1428_v9 = vld [vmem:[%s2526_s3 + $0x18] sm:$0xff]  ;;  %v1427_v11 = vld [vmem:[%s2526_s3 + $0x10] sm:$0xff] }
   0x3   :  { %v783_v3 = vunpack.c.l.b16 %v761_v1  ;;  %v1422_v12 = vld [vmem:[%s2525_s1 + $0x8] sm:$0xff]  ;;  %v1421_v14 = vld [vmem:[%s2525_s1] sm:$0xff]  ;;  %v1391_v20 = vld [vmem:[%s2528_s0 + $0x10] sm:$0xff] }
   0x4   :  { %v349_v4 = vpack.c.b16 %v344_v2, %v344_v2  ;;  %v1426_v13 = vld [vmem:[%s2526_s3 + $0x8] sm:$0xff]  ;;  %v1425_v15 = vld [vmem:[%s2526_s3] sm:$0xff]  ;;  %v1407_v21 = vld [vmem:[%s2528_s0 + $0x90] sm:$0xff] }
   0x5   :  { %v788_v5 = vpack.c.b16 %v783_v3, %v783_v3  ;;  %v1389_v16 = vld [vmem:[%s2528_s0] sm:$0xff]  ;;  %v1390_v18 = vld [vmem:[%s2528_s0 + $0x8] sm:$0xff]  ;;  %v1392_v22 = vld [vmem:[%s2528_s0 + $0x18] sm:$0xff] }
   0x6   :  { %v453_v6 = vsel %vm451_vm0, %v349_v4, 0  ;;  %v1405_v17 = vld [vmem:[%s2528_s0 + $0x80] sm:$0xff]  ;;  %v1406_v19 = vld [vmem:[%s2528_s0 + $0x88] sm:$0xff]  ;;  %v1408_v23 = vld [vmem:[%s2528_s0 + $0x98] sm:$0xff] }
   0x7   :  { %v794_v7 = vsel %vm451_vm0, %v788_v5, 0  ;;  %458 = vmatpush.bf16.msra.mxu0 %v453_v6  ;;  %1429 = vmatpush.bf16.msra.mxu2 %v453_v6  ;;  %v1393_v24 = vld [vmem:[%s2528_s0 + $0x20] sm:$0xff]  ;;  %v1394_v26 = vld [vmem:[%s2528_s0 + $0x28] sm:$0xff]  ;;  %v1395_v28 = vld [vmem:[%s2528_s0 + $0x30] sm:$0xff] }
   0x8   :  { %799 = vmatpush.bf16.msra.mxu1 %v794_v7  ;;  %1434 = vmatpush.bf16.msra.mxu3 %v794_v7  ;;  %v1409_v25 = vld [vmem:[%s2528_s0 + $0xa0] sm:$0xff]  ;;  %v1410_v27 = vld [vmem:[%s2528_s0 + $0xa8] sm:$0xff]  ;;  %v1411_v29 = vld [vmem:[%s2528_s0 + $0xb0] sm:$0xff] }
   0x9   :  { %v1396_v30 = vld [vmem:[%s2528_s0 + $0x38] sm:$0xff]  ;;  %v1596_v32 = vld [vmem:[%s2527_s2] ss:$0 sm:$0xff]  ;;  %v91_v56 = vld [vmem:[%s2530_s5 + $0x8] sm:$0xff] }
   0xa   :  { %v1412_v31 = vld [vmem:[%s2528_s0 + $0xb8] sm:$0xff]  ;;  %v1601_v33 = vld [vmem:[%s2529_s4] ss:$0 sm:$0xff]  ;;  %v1398_v63 = vld [vmem:[%s2528_s0 + $0x48] sm:$0xff] }
   0xb   :  { %459 = vmatpush.bf16.msra.mxu0 %v1424_v8  ;;  %1430 = vmatpush.bf16.msra.mxu2 %v1424_v8  ;;  %v1397_v34 = vld [vmem:[%s2528_s0 + $0x40] sm:$0xff]  ;;  %v1414_v0 = vld [vmem:[%s2528_s0 + $0xc8] sm:$0xff] }
   0xc   :  { %800 = vmatpush.bf16.msra.mxu1 %v1428_v9  ;;  %1435 = vmatpush.bf16.msra.mxu3 %v1428_v9  ;;  %v1413_v35 = vld [vmem:[%s2528_s0 + $0xc0] sm:$0xff]  ;;  %v123_v4 = vld [vmem:[%s2530_s5 + $0x108] sm:$0xff] }
   0xd   :  { %v90_v41 = vld [vmem:[%s2530_s5] sm:$0xff] }
   0xe   :  { %v122_v50 = vld [vmem:[%s2530_s5 + $0x100] sm:$0xff] }
   0xf   :  { %460 = vmatpush.bf16.msra.mxu0 %v1423_v10  ;;  %1431 = vmatpush.bf16.msra.mxu2 %v1423_v10  ;;  %v92_v10 = vld [vmem:[%s2530_s5 + $0x10] sm:$0xff] }
  0x10   :  { %801 = vmatpush.bf16.msra.mxu1 %v1427_v11  ;;  %1436 = vmatpush.bf16.msra.mxu3 %v1427_v11 }
  0x13   :  { %461 = vmatpush.bf16.msra.mxu0 %v1422_v12  ;;  %1432 = vmatpush.bf16.msra.mxu2 %v1422_v12 }
  0x14   :  { %802 = vmatpush.bf16.msra.mxu1 %v1426_v13  ;;  %1437 = vmatpush.bf16.msra.mxu3 %v1426_v13 }
  0x17   :  { %462 = vmatpush.bf16.msra.mxu0 %v1421_v14  ;;  %1433 = vmatpush.bf16.msra.mxu2 %v1421_v14 }
  0x18   :  { %803 = vmatpush.bf16.msra.mxu1 %v1425_v15  ;;  %1438 = vmatpush.bf16.msra.mxu3 %v1425_v15 }
  0x1a   :  { %1309 = vmatmul.msk.bf16.vlgmr.msra.gmra.mxu0 %vm354_vm1, %v1389_v16  ;;  %1325 = vmatmul.msk.bf16.vlgmr.msra.gmra.mxu2 %vm354_vm1, %v1405_v17 }
  0x1b   :  { %1357 = vmatmul.msk.bf16.vlgmr.msra.gmra.mxu1 %vm354_vm1, %v1389_v16  ;;  %1373 = vmatmul.msk.bf16.vlgmr.msra.gmra.mxu3 %vm354_vm1, %v1405_v17 }
  0x2a   :  { %1310 = vmatmul.msk.bf16.gmra.mxu0 %vm354_vm1, %v1390_v18  ;;  %1326 = vmatmul.msk.bf16.gmra.mxu2 %vm354_vm1, %v1406_v19 }
  0x2b   :  { %1358 = vmatmul.msk.bf16.gmra.mxu1 %vm354_vm1, %v1390_v18  ;;  %1374 = vmatmul.msk.bf16.gmra.mxu3 %vm354_vm1, %v1406_v19 }
  0x3a   :  { %1311 = vmatmul.msk.bf16.gmra.mxu0 %vm354_vm1, %v1391_v20  ;;  %1327 = vmatmul.msk.bf16.gmra.mxu2 %vm354_vm1, %v1407_v21 }
  0x3b   :  { %1359 = vmatmul.msk.bf16.gmra.mxu1 %vm354_vm1, %v1391_v20  ;;  %1375 = vmatmul.msk.bf16.gmra.mxu3 %vm354_vm1, %v1407_v21  ;;  %v124_v20 = vld [vmem:[%s2530_s5 + $0x110] sm:$0xff] }
  0x4a   :  { %1312 = vmatmul.msk.bf16.gmra.mxu0 %vm354_vm1, %v1392_v22  ;;  %1328 = vmatmul.msk.bf16.gmra.mxu2 %vm354_vm1, %v1408_v23 }
  0x4b   :  { %1360 = vmatmul.msk.bf16.gmra.mxu1 %vm354_vm1, %v1392_v22  ;;  %1376 = vmatmul.msk.bf16.gmra.mxu3 %vm354_vm1, %v1408_v23 }
  0x5a   :  { %1313 = vmatmul.msk.bf16.gmra.mxu0 %vm354_vm1, %v1393_v24  ;;  %1329 = vmatmul.msk.bf16.gmra.mxu2 %vm354_vm1, %v1409_v25 }
  0x5b   :  { %1361 = vmatmul.msk.bf16.gmra.mxu1 %vm354_vm1, %v1393_v24  ;;  %1377 = vmatmul.msk.bf16.gmra.mxu3 %vm354_vm1, %v1409_v25 }
  0x6a   :  { %1314 = vmatmul.msk.bf16.gmra.mxu0 %vm354_vm1, %v1394_v26  ;;  %1330 = vmatmul.msk.bf16.gmra.mxu2 %vm354_vm1, %v1410_v27 }
  0x6b   :  { %1362 = vmatmul.msk.bf16.gmra.mxu1 %vm354_vm1, %v1394_v26  ;;  %1378 = vmatmul.msk.bf16.gmra.mxu3 %vm354_vm1, %v1410_v27  ;;  %v93_v26 = vld [vmem:[%s2530_s5 + $0x18] sm:$0xff] }
  0x7a   :  { %1315 = vmatmul.msk.bf16.gmra.mxu0 %vm354_vm1, %v1395_v28  ;;  %1331 = vmatmul.msk.bf16.gmra.mxu2 %vm354_vm1, %v1411_v29 }
  0x7b   :  { %1363 = vmatmul.msk.bf16.gmra.mxu1 %vm354_vm1, %v1395_v28  ;;  %1379 = vmatmul.msk.bf16.gmra.mxu3 %vm354_vm1, %v1411_v29 }
  0x8a   :  { %1316 = vmatmul.msk.bf16.gmra.mxu0 %vm354_vm1, %v1396_v30  ;;  %1332 = vmatmul.msk.bf16.gmra.mxu2 %vm354_vm1, %v1412_v31 }
  0x8b   :  { %1364 = vmatmul.msk.bf16.gmra.mxu1 %vm354_vm1, %v1396_v30  ;;  %1380 = vmatmul.msk.bf16.gmra.mxu3 %vm354_vm1, %v1412_v31 }
  0x97   :  { %v464_v36 = vpop.f32.mrf.mxu0 }
  0x98   :  { %v465_v37 = vadd.f32 %v1596_v32, %v464_v36  ;;  %v805_v38 = vpop.f32.mrf.mxu1  ;;  %v1415_v36 = vld [vmem:[%s2528_s0 + $0xd0] sm:$0xff] }
  0x99   :  { %v806_v39 = vadd.f32 %v1601_v33, %v805_v38 }
  0x9a   :  { %v624_v40 = vmax.f32 %v465_v37, 0.0  ;;  %1317 = vmatmul.msk.bf16.gmra.mxu0 %vm354_vm1, %v1397_v34  ;;  %1333 = vmatmul.msk.bf16.gmra.mxu2 %vm354_vm1, %v1413_v35 }
  0x9b   :  { %v965_v42 = vmax.f32 %v806_v39, 0.0  ;;  %1365 = vmatmul.msk.bf16.gmra.mxu1 %vm354_vm1, %v1397_v34  ;;  %1381 = vmatmul.msk.bf16.gmra.mxu3 %vm354_vm1, %v1413_v35  ;;  %v1399_v35 = vld [vmem:[%s2528_s0 + $0x50] sm:$0xff] }
  0x9c   :  { %689 = vst.msk [vmem:[%s2531_s6] sm:$0xff] %vm688_vm2, %v624_v40  ;;  %v125_v40 = vld [vmem:[%s2530_s5 + $0x118] sm:$0xff] }
  0x9d   :  { %v1029_v43 = vadd.f32 %v965_v42, %v90_v41  ;;  %v544_v44 = vpop.f32.mrf.mxu2 }
  0x9e   :  { %v545_v45 = vadd.f32 %v1596_v32, %v544_v44  ;;  %v885_v46 = vpop.f32.mrf.mxu3 }
  0x9f   :  { %1093 = vst.msk [vmem:[%s2532_s7] sm:$0xff] %vm688_vm2, %v1029_v43  ;;  %v886_v47 = vadd.f32 %v1601_v33, %v885_v46  ;;  %v466_v48 = vpop.f32.mrf.mxu0  ;;  %v94_v46 = vld [vmem:[%s2530_s5 + $0x20] sm:$0xff] }
  0xa0   :  { %v656_v49 = vmax.f32 %v545_v45, 0.0  ;;  %v467_v51 = vadd.f32 %v1596_v32, %v466_v48  ;;  %v807_v52 = vpop.f32.mrf.mxu1 }
  0xa1   :  { %v997_v53 = vmax.f32 %v886_v47, 0.0  ;;  %v808_v54 = vadd.f32 %v1601_v33, %v807_v52 }
  0xa2   :  { %721 = vst.msk [vmem:[%s2531_s6 + $0x100] sm:$0xff] %vm688_vm2, %v656_v49  ;;  %v625_v55 = vmax.f32 %v467_v51, 0.0 }
  0xa3   :  { %v1061_v57 = vadd.f32 %v997_v53, %v122_v50  ;;  %v966_v58 = vmax.f32 %v808_v54, 0.0 }
  0xa4   :  { %690 = vst.msk [vmem:[%s2531_s6 + $0x8] sm:$0xff] %vm688_vm2, %v625_v55 }
  0xa5   :  { %1125 = vst.msk [vmem:[%s2532_s7 + $0x100] sm:$0xff] %vm688_vm2, %v1061_v57  ;;  %v1030_v59 = vadd.f32 %v966_v58, %v91_v56  ;;  %v546_v60 = vpop.f32.mrf.mxu2  ;;  %v126_v56 = vld [vmem:[%s2530_s5 + $0x120] sm:$0xff] }
  0xa6   :  { %v547_v61 = vadd.f32 %v1596_v32, %v546_v60  ;;  %v887_v62 = vpop.f32.mrf.mxu3 }
  0xa7   :  { %1094 = vst.msk [vmem:[%s2532_s7 + $0x8] sm:$0xff] %vm688_vm2, %v1030_v59  ;;  %v888_v1 = vadd.f32 %v1601_v33, %v887_v62  ;;  %v469_v2 = vpop.f32.mrf.mxu0  ;;  %v95_v62 = vld [vmem:[%s2530_s5 + $0x28] sm:$0xff] }
  0xa8   :  { %v657_v3 = vmax.f32 %v547_v61, 0.0  ;;  %v470_v5 = vadd.f32 %v1596_v32, %v469_v2  ;;  %v810_v6 = vpop.f32.mrf.mxu1 }
  0xa9   :  { %v998_v7 = vmax.f32 %v888_v1, 0.0  ;;  %v811_v8 = vadd.f32 %v1601_v33, %v810_v6  ;;  %v1416_v6 = vld [vmem:[%s2528_s0 + $0xd8] sm:$0xff] }
  0xaa   :  { %722 = vst.msk [vmem:[%s2531_s6 + $0x108] sm:$0xff] %vm688_vm2, %v657_v3  ;;  %v626_v9 = vmax.f32 %v470_v5, 0.0  ;;  %1318 = vmatmul.msk.bf16.gmra.mxu0 %vm354_vm1, %v1398_v63  ;;  %1334 = vmatmul.msk.bf16.gmra.mxu2 %vm354_vm1, %v1414_v0  ;;  %v1400_v5 = vld [vmem:[%s2528_s0 + $0x58] sm:$0xff] }
  0xab   :  { %v1062_v11 = vadd.f32 %v998_v7, %v123_v4  ;;  %v967_v12 = vmax.f32 %v811_v8, 0.0  ;;  %1366 = vmatmul.msk.bf16.gmra.mxu1 %vm354_vm1, %v1398_v63  ;;  %1382 = vmatmul.msk.bf16.gmra.mxu3 %vm354_vm1, %v1414_v0 }
  0xac   :  { %691 = vst.msk [vmem:[%s2531_s6 + $0x10] sm:$0xff] %vm688_vm2, %v626_v9 }
  0xad   :  { %1126 = vst.msk [vmem:[%s2532_s7 + $0x108] sm:$0xff] %vm688_vm2, %v1062_v11  ;;  %v1031_v13 = vadd.f32 %v967_v12, %v92_v10  ;;  %v549_v14 = vpop.f32.mrf.mxu2  ;;  %v127_v10 = vld [vmem:[%s2530_s5 + $0x128] sm:$0xff] }
  0xae   :  { %v550_v15 = vadd.f32 %v1596_v32, %v549_v14  ;;  %v890_v16 = vpop.f32.mrf.mxu3 }
  0xaf   :  { %1095 = vst.msk [vmem:[%s2532_s7 + $0x10] sm:$0xff] %vm688_vm2, %v1031_v13  ;;  %v891_v17 = vadd.f32 %v1601_v33, %v890_v16  ;;  %v471_v18 = vpop.f32.mrf.mxu0  ;;  %v96_v16 = vld [vmem:[%s2530_s5 + $0x30] sm:$0xff] }
  0xb0   :  { %v658_v19 = vmax.f32 %v550_v15, 0.0  ;;  %v472_v21 = vadd.f32 %v1596_v32, %v471_v18  ;;  %v812_v22 = vpop.f32.mrf.mxu1 }
  0xb1   :  { %v999_v23 = vmax.f32 %v891_v17, 0.0  ;;  %v813_v24 = vadd.f32 %v1601_v33, %v812_v22 }
  0xb2   :  { %723 = vst.msk [vmem:[%s2531_s6 + $0x110] sm:$0xff] %vm688_vm2, %v658_v19  ;;  %v627_v25 = vmax.f32 %v472_v21, 0.0 }
  0xb3   :  { %v1063_v27 = vadd.f32 %v999_v23, %v124_v20  ;;  %v968_v28 = vmax.f32 %v813_v24, 0.0 }
  0xb4   :  { %692 = vst.msk [vmem:[%s2531_s6 + $0x18] sm:$0xff] %vm688_vm2, %v627_v25 }
  0xb5   :  { %1127 = vst.msk [vmem:[%s2532_s7 + $0x110] sm:$0xff] %vm688_vm2, %v1063_v27  ;;  %v1032_v29 = vadd.f32 %v968_v28, %v93_v26  ;;  %v551_v30 = vpop.f32.mrf.mxu2  ;;  %v128_v26 = vld [vmem:[%s2530_s5 + $0x130] sm:$0xff] }
  0xb6   :  { %v552_v31 = vadd.f32 %v1596_v32, %v551_v30  ;;  %v892_v34 = vpop.f32.mrf.mxu3 }
  0xb7   :  { %1096 = vst.msk [vmem:[%s2532_s7 + $0x18] sm:$0xff] %vm688_vm2, %v1032_v29  ;;  %v893_v37 = vadd.f32 %v1601_v33, %v892_v34  ;;  %v474_v38 = vpop.f32.mrf.mxu0  ;;  %v97_v34 = vld [vmem:[%s2530_s5 + $0x38] sm:$0xff] }
  0xb8   :  { %v659_v39 = vmax.f32 %v552_v31, 0.0  ;;  %v475_v41 = vadd.f32 %v1596_v32, %v474_v38  ;;  %v815_v42 = vpop.f32.mrf.mxu1 }
  0xb9   :  { %v1000_v43 = vmax.f32 %v893_v37, 0.0  ;;  %v816_v44 = vadd.f32 %v1601_v33, %v815_v42  ;;  %v1417_v42 = vld [vmem:[%s2528_s0 + $0xe0] sm:$0xff] }
  0xba   :  { %724 = vst.msk [vmem:[%s2531_s6 + $0x118] sm:$0xff] %vm688_vm2, %v659_v39  ;;  %v628_v45 = vmax.f32 %v475_v41, 0.0  ;;  %1319 = vmatmul.msk.bf16.gmra.mxu0 %vm354_vm1, %v1399_v35  ;;  %1335 = vmatmul.msk.bf16.gmra.mxu2 %vm354_vm1, %v1415_v36  ;;  %v1401_v41 = vld [vmem:[%s2528_s0 + $0x60] sm:$0xff] }
  0xbb   :  { %v1064_v47 = vadd.f32 %v1000_v43, %v125_v40  ;;  %v969_v48 = vmax.f32 %v816_v44, 0.0  ;;  %1367 = vmatmul.msk.bf16.gmra.mxu1 %vm354_vm1, %v1399_v35  ;;  %1383 = vmatmul.msk.bf16.gmra.mxu3 %vm354_vm1, %v1415_v36 }
  0xbc   :  { %693 = vst.msk [vmem:[%s2531_s6 + $0x20] sm:$0xff] %vm688_vm2, %v628_v45 }
  0xbd   :  { %1128 = vst.msk [vmem:[%s2532_s7 + $0x118] sm:$0xff] %vm688_vm2, %v1064_v47  ;;  %v1033_v49 = vadd.f32 %v969_v48, %v94_v46  ;;  %v554_v50 = vpop.f32.mrf.mxu2  ;;  %v129_v46 = vld [vmem:[%s2530_s5 + $0x138] sm:$0xff] }
  0xbe   :  { %v555_v51 = vadd.f32 %v1596_v32, %v554_v50  ;;  %v895_v52 = vpop.f32.mrf.mxu3 }
  0xbf   :  { %1097 = vst.msk [vmem:[%s2532_s7 + $0x20] sm:$0xff] %vm688_vm2, %v1033_v49  ;;  %v896_v53 = vadd.f32 %v1601_v33, %v895_v52  ;;  %v476_v54 = vpop.f32.mrf.mxu0  ;;  %v98_v52 = vld [vmem:[%s2530_s5 + $0x40] sm:$0xff] }
  0xc0   :  { %v660_v55 = vmax.f32 %v555_v51, 0.0  ;;  %v477_v57 = vadd.f32 %v1596_v32, %v476_v54  ;;  %v817_v58 = vpop.f32.mrf.mxu1 }
  0xc1   :  { %v1001_v59 = vmax.f32 %v896_v53, 0.0  ;;  %v818_v60 = vadd.f32 %v1601_v33, %v817_v58 }
  0xc2   :  { %725 = vst.msk [vmem:[%s2531_s6 + $0x120] sm:$0xff] %vm688_vm2, %v660_v55  ;;  %v629_v61 = vmax.f32 %v477_v57, 0.0 }
  0xc3   :  { %v1065_v63 = vadd.f32 %v1001_v59, %v126_v56  ;;  %v970_v0 = vmax.f32 %v818_v60, 0.0 }
  0xc4   :  { %694 = vst.msk [vmem:[%s2531_s6 + $0x28] sm:$0xff] %vm688_vm2, %v629_v61 }
  0xc5   :  { %1129 = vst.msk [vmem:[%s2532_s7 + $0x120] sm:$0xff] %vm688_vm2, %v1065_v63  ;;  %v1034_v1 = vadd.f32 %v970_v0, %v95_v62  ;;  %v556_v2 = vpop.f32.mrf.mxu2  ;;  %v130_v62 = vld [vmem:[%s2530_s5 + $0x140] sm:$0xff] }
  0xc6   :  { %v557_v3 = vadd.f32 %v1596_v32, %v556_v2  ;;  %v897_v4 = vpop.f32.mrf.mxu3 }
  0xc7   :  { %1098 = vst.msk [vmem:[%s2532_s7 + $0x28] sm:$0xff] %vm688_vm2, %v1034_v1  ;;  %v898_v7 = vadd.f32 %v1601_v33, %v897_v4  ;;  %v479_v8 = vpop.f32.mrf.mxu0  ;;  %v99_v4 = vld [vmem:[%s2530_s5 + $0x48] sm:$0xff] }
  0xc8   :  { %v661_v9 = vmax.f32 %v557_v3, 0.0  ;;  %v480_v11 = vadd.f32 %v1596_v32, %v479_v8  ;;  %v820_v12 = vpop.f32.mrf.mxu1 }
  0xc9   :  { %v1002_v13 = vmax.f32 %v898_v7, 0.0  ;;  %v821_v14 = vadd.f32 %v1601_v33, %v820_v12  ;;  %v1418_v12 = vld [vmem:[%s2528_s0 + $0xe8] sm:$0xff] }
  0xca   :  { %726 = vst.msk [vmem:[%s2531_s6 + $0x128] sm:$0xff] %vm688_vm2, %v661_v9  ;;  %v630_v15 = vmax.f32 %v480_v11, 0.0  ;;  %1320 = vmatmul.msk.bf16.gmra.mxu0 %vm354_vm1, %v1400_v5  ;;  %1336 = vmatmul.msk.bf16.gmra.mxu2 %vm354_vm1, %v1416_v6  ;;  %v1402_v11 = vld [vmem:[%s2528_s0 + $0x68] sm:$0xff] }
  0xcb   :  { %v1066_v17 = vadd.f32 %v1002_v13, %v127_v10  ;;  %v971_v18 = vmax.f32 %v821_v14, 0.0  ;;  %1368 = vmatmul.msk.bf16.gmra.mxu1 %vm354_vm1, %v1400_v5  ;;  %1384 = vmatmul.msk.bf16.gmra.mxu3 %vm354_vm1, %v1416_v6 }
  0xcc   :  { %695 = vst.msk [vmem:[%s2531_s6 + $0x30] sm:$0xff] %vm688_vm2, %v630_v15 }
  0xcd   :  { %1130 = vst.msk [vmem:[%s2532_s7 + $0x128] sm:$0xff] %vm688_vm2, %v1066_v17  ;;  %v1035_v19 = vadd.f32 %v971_v18, %v96_v16  ;;  %v559_v20 = vpop.f32.mrf.mxu2  ;;  %v131_v16 = vld [vmem:[%s2530_s5 + $0x148] sm:$0xff] }
  0xce   :  { %v560_v21 = vadd.f32 %v1596_v32, %v559_v20  ;;  %v900_v22 = vpop.f32.mrf.mxu3 }
  0xcf   :  { %1099 = vst.msk [vmem:[%s2532_s7 + $0x30] sm:$0xff] %vm688_vm2, %v1035_v19  ;;  %v901_v23 = vadd.f32 %v1601_v33, %v900_v22  ;;  %v481_v24 = vpop.f32.mrf.mxu0  ;;  %v100_v22 = vld [vmem:[%s2530_s5 + $0x50] sm:$0xff] }
  0xd0   :  { %v662_v25 = vmax.f32 %v560_v21, 0.0  ;;  %v482_v27 = vadd.f32 %v1596_v32, %v481_v24  ;;  %v822_v28 = vpop.f32.mrf.mxu1 }
  0xd1   :  { %v1003_v29 = vmax.f32 %v901_v23, 0.0  ;;  %v823_v30 = vadd.f32 %v1601_v33, %v822_v28 }
  0xd2   :  { %727 = vst.msk [vmem:[%s2531_s6 + $0x130] sm:$0xff] %vm688_vm2, %v662_v25  ;;  %v631_v31 = vmax.f32 %v482_v27, 0.0 }
  0xd3   :  { %v1067_v35 = vadd.f32 %v1003_v29, %v128_v26  ;;  %v972_v36 = vmax.f32 %v823_v30, 0.0 }
  0xd4   :  { %696 = vst.msk [vmem:[%s2531_s6 + $0x38] sm:$0xff] %vm688_vm2, %v631_v31 }
  0xd5   :  { %1131 = vst.msk [vmem:[%s2532_s7 + $0x130] sm:$0xff] %vm688_vm2, %v1067_v35  ;;  %v1036_v37 = vadd.f32 %v972_v36, %v97_v34  ;;  %v561_v38 = vpop.f32.mrf.mxu2  ;;  %v132_v34 = vld [vmem:[%s2530_s5 + $0x150] sm:$0xff] }
  0xd6   :  { %v562_v39 = vadd.f32 %v1596_v32, %v561_v38  ;;  %v902_v40 = vpop.f32.mrf.mxu3 }
  0xd7   :  { %1100 = vst.msk [vmem:[%s2532_s7 + $0x38] sm:$0xff] %vm688_vm2, %v1036_v37  ;;  %v903_v43 = vadd.f32 %v1601_v33, %v902_v40  ;;  %v484_v44 = vpop.f32.mrf.mxu0  ;;  %v101_v40 = vld [vmem:[%s2530_s5 + $0x58] sm:$0xff] }
  0xd8   :  { %v663_v45 = vmax.f32 %v562_v39, 0.0  ;;  %v485_v47 = vadd.f32 %v1596_v32, %v484_v44  ;;  %v825_v48 = vpop.f32.mrf.mxu1 }
  0xd9   :  { %v1004_v49 = vmax.f32 %v903_v43, 0.0  ;;  %v826_v50 = vadd.f32 %v1601_v33, %v825_v48  ;;  %v1419_v48 = vld [vmem:[%s2528_s0 + $0xf0] sm:$0xff] }
  0xda   :  { %728 = vst.msk [vmem:[%s2531_s6 + $0x138] sm:$0xff] %vm688_vm2, %v663_v45  ;;  %v632_v51 = vmax.f32 %v485_v47, 0.0  ;;  %1321 = vmatmul.msk.bf16.gmra.mxu0 %vm354_vm1, %v1401_v41  ;;  %1337 = vmatmul.msk.bf16.gmra.mxu2 %vm354_vm1, %v1417_v42  ;;  %v1403_v47 = vld [vmem:[%s2528_s0 + $0x70] sm:$0xff] }
  0xdb   :  { %v1068_v53 = vadd.f32 %v1004_v49, %v129_v46  ;;  %v973_v54 = vmax.f32 %v826_v50, 0.0  ;;  %1369 = vmatmul.msk.bf16.gmra.mxu1 %vm354_vm1, %v1401_v41  ;;  %1385 = vmatmul.msk.bf16.gmra.mxu3 %vm354_vm1, %v1417_v42 }
  0xdc   :  { %697 = vst.msk [vmem:[%s2531_s6 + $0x40] sm:$0xff] %vm688_vm2, %v632_v51 }
  0xdd   :  { %1132 = vst.msk [vmem:[%s2532_s7 + $0x138] sm:$0xff] %vm688_vm2, %v1068_v53  ;;  %v1037_v55 = vadd.f32 %v973_v54, %v98_v52  ;;  %v564_v56 = vpop.f32.mrf.mxu2  ;;  %v133_v52 = vld [vmem:[%s2530_s5 + $0x158] sm:$0xff] }
  0xde   :  { %v565_v57 = vadd.f32 %v1596_v32, %v564_v56  ;;  %v905_v58 = vpop.f32.mrf.mxu3 }
  0xdf   :  { %1101 = vst.msk [vmem:[%s2532_s7 + $0x40] sm:$0xff] %vm688_vm2, %v1037_v55  ;;  %v906_v59 = vadd.f32 %v1601_v33, %v905_v58  ;;  %v486_v60 = vpop.f32.mrf.mxu0  ;;  %v102_v58 = vld [vmem:[%s2530_s5 + $0x60] sm:$0xff] }
  0xe0   :  { %v664_v61 = vmax.f32 %v565_v57, 0.0  ;;  %v487_v63 = vadd.f32 %v1596_v32, %v486_v60  ;;  %v827_v0 = vpop.f32.mrf.mxu1 }
  0xe1   :  { %v1005_v1 = vmax.f32 %v906_v59, 0.0  ;;  %v828_v2 = vadd.f32 %v1601_v33, %v827_v0 }
  0xe2   :  { %729 = vst.msk [vmem:[%s2531_s6 + $0x140] sm:$0xff] %vm688_vm2, %v664_v61  ;;  %v633_v3 = vmax.f32 %v487_v63, 0.0 }
  0xe3   :  { %v1069_v5 = vadd.f32 %v1005_v1, %v130_v62  ;;  %v974_v6 = vmax.f32 %v828_v2, 0.0 }
  0xe4   :  { %698 = vst.msk [vmem:[%s2531_s6 + $0x48] sm:$0xff] %vm688_vm2, %v633_v3 }
  0xe5   :  { %1133 = vst.msk [vmem:[%s2532_s7 + $0x140] sm:$0xff] %vm688_vm2, %v1069_v5  ;;  %v1038_v7 = vadd.f32 %v974_v6, %v99_v4  ;;  %v566_v8 = vpop.f32.mrf.mxu2  ;;  %v134_v4 = vld [vmem:[%s2530_s5 + $0x160] sm:$0xff] }
  0xe6   :  { %v567_v9 = vadd.f32 %v1596_v32, %v566_v8  ;;  %v907_v10 = vpop.f32.mrf.mxu3 }
  0xe7   :  { %1102 = vst.msk [vmem:[%s2532_s7 + $0x48] sm:$0xff] %vm688_vm2, %v1038_v7  ;;  %v908_v13 = vadd.f32 %v1601_v33, %v907_v10  ;;  %v489_v14 = vpop.f32.mrf.mxu0  ;;  %v103_v10 = vld [vmem:[%s2530_s5 + $0x68] sm:$0xff] }
  0xe8   :  { %v665_v15 = vmax.f32 %v567_v9, 0.0  ;;  %v490_v17 = vadd.f32 %v1596_v32, %v489_v14  ;;  %v830_v18 = vpop.f32.mrf.mxu1 }
  0xe9   :  { %v1006_v19 = vmax.f32 %v908_v13, 0.0  ;;  %v831_v20 = vadd.f32 %v1601_v33, %v830_v18  ;;  %v1420_v18 = vld [vmem:[%s2528_s0 + $0xf8] sm:$0xff] }
  0xea   :  { %730 = vst.msk [vmem:[%s2531_s6 + $0x148] sm:$0xff] %vm688_vm2, %v665_v15  ;;  %v634_v21 = vmax.f32 %v490_v17, 0.0  ;;  %1322 = vmatmul.msk.bf16.gmra.mxu0 %vm354_vm1, %v1402_v11  ;;  %1338 = vmatmul.msk.bf16.gmra.mxu2 %vm354_vm1, %v1418_v12  ;;  %v1404_v17 = vld [vmem:[%s2528_s0 + $0x78] sm:$0xff] }
  0xeb   :  { %v1070_v23 = vadd.f32 %v1006_v19, %v131_v16  ;;  %v975_v24 = vmax.f32 %v831_v20, 0.0  ;;  %1370 = vmatmul.msk.bf16.gmra.mxu1 %vm354_vm1, %v1402_v11  ;;  %1386 = vmatmul.msk.bf16.gmra.mxu3 %vm354_vm1, %v1418_v12 }
  0xec   :  { %699 = vst.msk [vmem:[%s2531_s6 + $0x50] sm:$0xff] %vm688_vm2, %v634_v21 }
  0xed   :  { %1134 = vst.msk [vmem:[%s2532_s7 + $0x148] sm:$0xff] %vm688_vm2, %v1070_v23  ;;  %v1039_v25 = vadd.f32 %v975_v24, %v100_v22  ;;  %v569_v26 = vpop.f32.mrf.mxu2  ;;  %v135_v22 = vld [vmem:[%s2530_s5 + $0x168] sm:$0xff] }
  0xee   :  { %v570_v27 = vadd.f32 %v1596_v32, %v569_v26  ;;  %v910_v28 = vpop.f32.mrf.mxu3 }
  0xef   :  { %1103 = vst.msk [vmem:[%s2532_s7 + $0x50] sm:$0xff] %vm688_vm2, %v1039_v25  ;;  %v911_v29 = vadd.f32 %v1601_v33, %v910_v28  ;;  %v491_v30 = vpop.f32.mrf.mxu0  ;;  %v104_v28 = vld [vmem:[%s2530_s5 + $0x70] sm:$0xff] }
  0xf0   :  { %v666_v31 = vmax.f32 %v570_v27, 0.0  ;;  %v492_v35 = vadd.f32 %v1596_v32, %v491_v30  ;;  %v832_v36 = vpop.f32.mrf.mxu1 }
  0xf1   :  { %v1007_v37 = vmax.f32 %v911_v29, 0.0  ;;  %v833_v38 = vadd.f32 %v1601_v33, %v832_v36 }
  0xf2   :  { %731 = vst.msk [vmem:[%s2531_s6 + $0x150] sm:$0xff] %vm688_vm2, %v666_v31  ;;  %v635_v39 = vmax.f32 %v492_v35, 0.0 }
  0xf3   :  { %v1071_v41 = vadd.f32 %v1007_v37, %v132_v34  ;;  %v976_v42 = vmax.f32 %v833_v38, 0.0 }
  0xf4   :  { %700 = vst.msk [vmem:[%s2531_s6 + $0x58] sm:$0xff] %vm688_vm2, %v635_v39 }
  0xf5   :  { %1135 = vst.msk [vmem:[%s2532_s7 + $0x150] sm:$0xff] %vm688_vm2, %v1071_v41  ;;  %v1040_v43 = vadd.f32 %v976_v42, %v101_v40  ;;  %v571_v44 = vpop.f32.mrf.mxu2  ;;  %v136_v40 = vld [vmem:[%s2530_s5 + $0x170] sm:$0xff] }
  0xf6   :  { %v572_v45 = vadd.f32 %v1596_v32, %v571_v44  ;;  %v912_v46 = vpop.f32.mrf.mxu3 }
  0xf7   :  { %1104 = vst.msk [vmem:[%s2532_s7 + $0x58] sm:$0xff] %vm688_vm2, %v1040_v43  ;;  %v913_v49 = vadd.f32 %v1601_v33, %v912_v46  ;;  %v494_v50 = vpop.f32.mrf.mxu0  ;;  %v105_v46 = vld [vmem:[%s2530_s5 + $0x78] sm:$0xff] }
  0xf8   :  { %v667_v51 = vmax.f32 %v572_v45, 0.0  ;;  %v495_v53 = vadd.f32 %v1596_v32, %v494_v50  ;;  %v835_v54 = vpop.f32.mrf.mxu1 }
  0xf9   :  { %v1008_v55 = vmax.f32 %v913_v49, 0.0  ;;  %v836_v56 = vadd.f32 %v1601_v33, %v835_v54 }
  0xfa   :  { %732 = vst.msk [vmem:[%s2531_s6 + $0x158] sm:$0xff] %vm688_vm2, %v667_v51  ;;  %v636_v57 = vmax.f32 %v495_v53, 0.0  ;;  %1323 = vmatmul.msk.bf16.gmra.mxu0 %vm354_vm1, %v1403_v47  ;;  %1339 = vmatmul.msk.bf16.gmra.mxu2 %vm354_vm1, %v1419_v48 }
  0xfb   :  { %v1072_v59 = vadd.f32 %v1008_v55, %v133_v52  ;;  %v977_v60 = vmax.f32 %v836_v56, 0.0  ;;  %1371 = vmatmul.msk.bf16.gmra.mxu1 %vm354_vm1, %v1403_v47  ;;  %1387 = vmatmul.msk.bf16.gmra.mxu3 %vm354_vm1, %v1419_v48  ;;  %v137_v56 = vld [vmem:[%s2530_s5 + $0x178] sm:$0xff] }
  0xfc   :  { %701 = vst.msk [vmem:[%s2531_s6 + $0x60] sm:$0xff] %vm688_vm2, %v636_v57 }
  0xfd   :  { %1136 = vst.msk [vmem:[%s2532_s7 + $0x158] sm:$0xff] %vm688_vm2, %v1072_v59  ;;  %v1041_v61 = vadd.f32 %v977_v60, %v102_v58  ;;  %v574_v62 = vpop.f32.mrf.mxu2 }
  0xfe   :  { %v575_v63 = vadd.f32 %v1596_v32, %v574_v62  ;;  %v915_v0 = vpop.f32.mrf.mxu3  ;;  %v106_v62 = vld [vmem:[%s2530_s5 + $0x80] sm:$0xff] }
  0xff   :  { %1105 = vst.msk [vmem:[%s2532_s7 + $0x60] sm:$0xff] %vm688_vm2, %v1041_v61  ;;  %v916_v1 = vadd.f32 %v1601_v33, %v915_v0  ;;  %v496_v2 = vpop.f32.mrf.mxu0 }
 0x100   :  { %v668_v3 = vmax.f32 %v575_v63, 0.0  ;;  %v497_v5 = vadd.f32 %v1596_v32, %v496_v2  ;;  %v837_v6 = vpop.f32.mrf.mxu1 }
 0x101   :  { %v1009_v7 = vmax.f32 %v916_v1, 0.0  ;;  %v838_v8 = vadd.f32 %v1601_v33, %v837_v6 }
 0x102   :  { %733 = vst.msk [vmem:[%s2531_s6 + $0x160] sm:$0xff] %vm688_vm2, %v668_v3  ;;  %v637_v9 = vmax.f32 %v497_v5, 0.0 }
 0x103   :  { %v1073_v11 = vadd.f32 %v1009_v7, %v134_v4  ;;  %v978_v12 = vmax.f32 %v838_v8, 0.0  ;;  %v138_v8 = vld [vmem:[%s2530_s5 + $0x180] sm:$0xff] }
 0x104   :  { %702 = vst.msk [vmem:[%s2531_s6 + $0x68] sm:$0xff] %vm688_vm2, %v637_v9 }
 0x105   :  { %1137 = vst.msk [vmem:[%s2532_s7 + $0x160] sm:$0xff] %vm688_vm2, %v1073_v11  ;;  %v1042_v13 = vadd.f32 %v978_v12, %v103_v10  ;;  %v576_v14 = vpop.f32.mrf.mxu2 }
 0x106   :  { %v577_v15 = vadd.f32 %v1596_v32, %v576_v14  ;;  %v917_v16 = vpop.f32.mrf.mxu3  ;;  %v107_v14 = vld [vmem:[%s2530_s5 + $0x88] sm:$0xff] }
 0x107   :  { %1106 = vst.msk [vmem:[%s2532_s7 + $0x68] sm:$0xff] %vm688_vm2, %v1042_v13  ;;  %v918_v19 = vadd.f32 %v1601_v33, %v917_v16  ;;  %v499_v20 = vpop.f32.mrf.mxu0 }
 0x108   :  { %v669_v21 = vmax.f32 %v577_v15, 0.0  ;;  %v500_v23 = vadd.f32 %v1596_v32, %v499_v20  ;;  %v840_v24 = vpop.f32.mrf.mxu1 }
 0x109   :  { %v1010_v25 = vmax.f32 %v918_v19, 0.0  ;;  %v841_v26 = vadd.f32 %v1601_v33, %v840_v24  ;;  %v139_v24 = vld [vmem:[%s2530_s5 + $0x188] sm:$0xff] }
 0x10a   :  { %734 = vst.msk [vmem:[%s2531_s6 + $0x168] sm:$0xff] %vm688_vm2, %v669_v21  ;;  %v638_v27 = vmax.f32 %v500_v23, 0.0  ;;  %1324 = vmatmul.msk.bf16.gmra.mxu0 %vm354_vm1, %v1404_v17  ;;  %1340 = vmatmul.msk.bf16.gmra.mxu2 %vm354_vm1, %v1420_v18 }
 0x10b   :  { %v1074_v29 = vadd.f32 %v1010_v25, %v135_v22  ;;  %v979_v30 = vmax.f32 %v841_v26, 0.0  ;;  %1372 = vmatmul.msk.bf16.gmra.mxu1 %vm354_vm1, %v1404_v17  ;;  %1388 = vmatmul.msk.bf16.gmra.mxu3 %vm354_vm1, %v1420_v18 }
 0x10c   :  { %703 = vst.msk [vmem:[%s2531_s6 + $0x70] sm:$0xff] %vm688_vm2, %v638_v27 }
 0x10d   :  { %1138 = vst.msk [vmem:[%s2532_s7 + $0x168] sm:$0xff] %vm688_vm2, %v1074_v29  ;;  %v1043_v31 = vadd.f32 %v979_v30, %v104_v28  ;;  %v579_v34 = vpop.f32.mrf.mxu2  ;;  %v108_v30 = vld [vmem:[%s2530_s5 + $0x90] sm:$0xff] }
 0x10e   :  { %v580_v35 = vadd.f32 %v1596_v32, %v579_v34  ;;  %v920_v36 = vpop.f32.mrf.mxu3 }
 0x10f   :  { %1107 = vst.msk [vmem:[%s2532_s7 + $0x70] sm:$0xff] %vm688_vm2, %v1043_v31  ;;  %v921_v37 = vadd.f32 %v1601_v33, %v920_v36  ;;  %v501_v38 = vpop.f32.mrf.mxu0 }
 0x110   :  { %v670_v39 = vmax.f32 %v580_v35, 0.0  ;;  %v502_v41 = vadd.f32 %v1596_v32, %v501_v38  ;;  %v842_v42 = vpop.f32.mrf.mxu1 }
 0x111   :  { %v1011_v43 = vmax.f32 %v921_v37, 0.0  ;;  %v843_v44 = vadd.f32 %v1601_v33, %v842_v42  ;;  %v140_v42 = vld [vmem:[%s2530_s5 + $0x190] sm:$0xff] }
 0x112   :  { %735 = vst.msk [vmem:[%s2531_s6 + $0x170] sm:$0xff] %vm688_vm2, %v670_v39  ;;  %v639_v45 = vmax.f32 %v502_v41, 0.0 }
 0x113   :  { %v1075_v47 = vadd.f32 %v1011_v43, %v136_v40  ;;  %v980_v48 = vmax.f32 %v843_v44, 0.0 }
 0x114   :  { %704 = vst.msk [vmem:[%s2531_s6 + $0x78] sm:$0xff] %vm688_vm2, %v639_v45 }
 0x115   :  { %1139 = vst.msk [vmem:[%s2532_s7 + $0x170] sm:$0xff] %vm688_vm2, %v1075_v47  ;;  %v1044_v49 = vadd.f32 %v980_v48, %v105_v46  ;;  %v581_v50 = vpop.f32.mrf.mxu2  ;;  %v109_v48 = vld [vmem:[%s2530_s5 + $0x98] sm:$0xff] }
 0x116   :  { %v582_v51 = vadd.f32 %v1596_v32, %v581_v50  ;;  %v922_v52 = vpop.f32.mrf.mxu3 }
 0x117   :  { %1108 = vst.msk [vmem:[%s2532_s7 + $0x78] sm:$0xff] %vm688_vm2, %v1044_v49  ;;  %v923_v53 = vadd.f32 %v1601_v33, %v922_v52  ;;  %v504_v54 = vpop.f32.mrf.mxu0 }
 0x118   :  { %v671_v55 = vmax.f32 %v582_v51, 0.0  ;;  %v505_v57 = vadd.f32 %v1596_v32, %v504_v54  ;;  %v845_v58 = vpop.f32.mrf.mxu1 }
 0x119   :  { %v1012_v59 = vmax.f32 %v923_v53, 0.0  ;;  %v846_v60 = vadd.f32 %v1601_v33, %v845_v58  ;;  %v141_v58 = vld [vmem:[%s2530_s5 + $0x198] sm:$0xff] }
 0x11a   :  { %736 = vst.msk [vmem:[%s2531_s6 + $0x178] sm:$0xff] %vm688_vm2, %v671_v55  ;;  %v640_v61 = vmax.f32 %v505_v57, 0.0 }
 0x11b   :  { %v1076_v63 = vadd.f32 %v1012_v59, %v137_v56  ;;  %v981_v0 = vmax.f32 %v846_v60, 0.0 }
 0x11c   :  { %705 = vst.msk [vmem:[%s2531_s6 + $0x80] sm:$0xff] %vm688_vm2, %v640_v61 }
 0x11d   :  { %1140 = vst.msk [vmem:[%s2532_s7 + $0x178] sm:$0xff] %vm688_vm2, %v1076_v63  ;;  %v1045_v1 = vadd.f32 %v981_v0, %v106_v62  ;;  %v584_v2 = vpop.f32.mrf.mxu2  ;;  %v110_v0 = vld [vmem:[%s2530_s5 + $0xa0] sm:$0xff] }
 0x11e   :  { %v585_v3 = vadd.f32 %v1596_v32, %v584_v2  ;;  %v925_v4 = vpop.f32.mrf.mxu3 }
 0x11f   :  { %1109 = vst.msk [vmem:[%s2532_s7 + $0x80] sm:$0xff] %vm688_vm2, %v1045_v1  ;;  %v926_v5 = vadd.f32 %v1601_v33, %v925_v4  ;;  %v506_v6 = vpop.f32.mrf.mxu0 }
 0x120   :  { %v672_v7 = vmax.f32 %v585_v3, 0.0  ;;  %v507_v9 = vadd.f32 %v1596_v32, %v506_v6  ;;  %v847_v10 = vpop.f32.mrf.mxu1 }
 0x121   :  { %v1013_v11 = vmax.f32 %v926_v5, 0.0  ;;  %v848_v12 = vadd.f32 %v1601_v33, %v847_v10  ;;  %v142_v10 = vld [vmem:[%s2530_s5 + $0x1a0] sm:$0xff] }
 0x122   :  { %737 = vst.msk [vmem:[%s2531_s6 + $0x180] sm:$0xff] %vm688_vm2, %v672_v7  ;;  %v641_v13 = vmax.f32 %v507_v9, 0.0 }
 0x123   :  { %v1077_v15 = vadd.f32 %v1013_v11, %v138_v8  ;;  %v982_v16 = vmax.f32 %v848_v12, 0.0 }
 0x124   :  { %706 = vst.msk [vmem:[%s2531_s6 + $0x88] sm:$0xff] %vm688_vm2, %v641_v13 }
 0x125   :  { %1141 = vst.msk [vmem:[%s2532_s7 + $0x180] sm:$0xff] %vm688_vm2, %v1077_v15  ;;  %v1046_v17 = vadd.f32 %v982_v16, %v107_v14  ;;  %v586_v18 = vpop.f32.mrf.mxu2  ;;  %v111_v16 = vld [vmem:[%s2530_s5 + $0xa8] sm:$0xff] }
 0x126   :  { %v587_v19 = vadd.f32 %v1596_v32, %v586_v18  ;;  %v927_v20 = vpop.f32.mrf.mxu3 }
 0x127   :  { %1110 = vst.msk [vmem:[%s2532_s7 + $0x88] sm:$0xff] %vm688_vm2, %v1046_v17  ;;  %v928_v21 = vadd.f32 %v1601_v33, %v927_v20  ;;  %v509_v22 = vpop.f32.mrf.mxu0 }
 0x128   :  { %v673_v23 = vmax.f32 %v587_v19, 0.0  ;;  %v510_v25 = vadd.f32 %v1596_v32, %v509_v22  ;;  %v850_v26 = vpop.f32.mrf.mxu1 }
 0x129   :  { %v1014_v27 = vmax.f32 %v928_v21, 0.0  ;;  %v851_v28 = vadd.f32 %v1601_v33, %v850_v26  ;;  %v143_v26 = vld [vmem:[%s2530_s5 + $0x1a8] sm:$0xff] }
 0x12a   :  { %738 = vst.msk [vmem:[%s2531_s6 + $0x188] sm:$0xff] %vm688_vm2, %v673_v23  ;;  %v642_v29 = vmax.f32 %v510_v25, 0.0 }
 0x12b   :  { %v1078_v31 = vadd.f32 %v1014_v27, %v139_v24  ;;  %v983_v34 = vmax.f32 %v851_v28, 0.0 }
 0x12c   :  { %707 = vst.msk [vmem:[%s2531_s6 + $0x90] sm:$0xff] %vm688_vm2, %v642_v29 }
 0x12d   :  { %1142 = vst.msk [vmem:[%s2532_s7 + $0x188] sm:$0xff] %vm688_vm2, %v1078_v31  ;;  %v1047_v35 = vadd.f32 %v983_v34, %v108_v30  ;;  %v589_v36 = vpop.f32.mrf.mxu2  ;;  %v112_v34 = vld [vmem:[%s2530_s5 + $0xb0] sm:$0xff] }
 0x12e   :  { %v590_v37 = vadd.f32 %v1596_v32, %v589_v36  ;;  %v930_v38 = vpop.f32.mrf.mxu3 }
 0x12f   :  { %1111 = vst.msk [vmem:[%s2532_s7 + $0x90] sm:$0xff] %vm688_vm2, %v1047_v35  ;;  %v931_v39 = vadd.f32 %v1601_v33, %v930_v38  ;;  %v511_v40 = vpop.f32.mrf.mxu0 }
 0x130   :  { %v674_v41 = vmax.f32 %v590_v37, 0.0  ;;  %v512_v43 = vadd.f32 %v1596_v32, %v511_v40  ;;  %v852_v44 = vpop.f32.mrf.mxu1 }
 0x131   :  { %v1015_v45 = vmax.f32 %v931_v39, 0.0  ;;  %v853_v46 = vadd.f32 %v1601_v33, %v852_v44  ;;  %v144_v44 = vld [vmem:[%s2530_s5 + $0x1b0] sm:$0xff] }
 0x132   :  { %739 = vst.msk [vmem:[%s2531_s6 + $0x190] sm:$0xff] %vm688_vm2, %v674_v41  ;;  %v643_v47 = vmax.f32 %v512_v43, 0.0 }
 0x133   :  { %v1079_v49 = vadd.f32 %v1015_v45, %v140_v42  ;;  %v984_v50 = vmax.f32 %v853_v46, 0.0 }
 0x134   :  { %708 = vst.msk [vmem:[%s2531_s6 + $0x98] sm:$0xff] %vm688_vm2, %v643_v47 }
 0x135   :  { %1143 = vst.msk [vmem:[%s2532_s7 + $0x190] sm:$0xff] %vm688_vm2, %v1079_v49  ;;  %v1048_v51 = vadd.f32 %v984_v50, %v109_v48  ;;  %v591_v52 = vpop.f32.mrf.mxu2  ;;  %v2277_v48 = vld [vmem:[%s2529_s4] ss:$0 sm:$0xff]  ;;  %v113_v50 = vld [vmem:[%s2530_s5 + $0xb8] sm:$0xff] }
 0x136   :  { %v592_v53 = vadd.f32 %v1596_v32, %v591_v52  ;;  %v932_v54 = vpop.f32.mrf.mxu3 }
 0x137   :  { %1112 = vst.msk [vmem:[%s2532_s7 + $0x98] sm:$0xff] %vm688_vm2, %v1048_v51  ;;  %v933_v55 = vadd.f32 %v1601_v33, %v932_v54  ;;  %v514_v56 = vpop.f32.mrf.mxu0  ;;  %v2298_v54 = vld [vmem:[%s2527_s2] ss:$0 sm:$0xff] }
 0x138   :  { %v675_v57 = vmax.f32 %v592_v53, 0.0  ;;  %v515_v59 = vadd.f32 %v1596_v32, %v514_v56  ;;  %v855_v60 = vpop.f32.mrf.mxu1 }
 0x139   :  { %v1016_v61 = vmax.f32 %v933_v55, 0.0  ;;  %v856_v62 = vadd.f32 %v1601_v33, %v855_v60  ;;  %v145_v60 = vld [vmem:[%s2530_s5 + $0x1b8] sm:$0xff] }
 0x13a   :  { %740 = vst.msk [vmem:[%s2531_s6 + $0x198] sm:$0xff] %vm688_vm2, %v675_v57  ;;  %v644_v63 = vmax.f32 %v515_v59, 0.0 }
 0x13b   :  { %v1080_v1 = vadd.f32 %v1016_v61, %v141_v58  ;;  %v985_v2 = vmax.f32 %v856_v62, 0.0 }
 0x13c   :  { %709 = vst.msk [vmem:[%s2531_s6 + $0xa0] sm:$0xff] %vm688_vm2, %v644_v63 }
 0x13d   :  { %1144 = vst.msk [vmem:[%s2532_s7 + $0x198] sm:$0xff] %vm688_vm2, %v1080_v1  ;;  %v1049_v3 = vadd.f32 %v985_v2, %v110_v0  ;;  %v594_v4 = vpop.f32.mrf.mxu2  ;;  %v114_v2 = vld [vmem:[%s2530_s5 + $0xc0] sm:$0xff] }
 0x13e   :  { %v595_v5 = vadd.f32 %v1596_v32, %v594_v4  ;;  %v935_v6 = vpop.f32.mrf.mxu3 }
 0x13f   :  { %1113 = vst.msk [vmem:[%s2532_s7 + $0xa0] sm:$0xff] %vm688_vm2, %v1049_v3  ;;  %v936_v7 = vadd.f32 %v1601_v33, %v935_v6  ;;  %v516_v8 = vpop.f32.mrf.mxu0 }
 0x140   :  { %v676_v9 = vmax.f32 %v595_v5, 0.0  ;;  %v517_v11 = vadd.f32 %v1596_v32, %v516_v8  ;;  %v857_v12 = vpop.f32.mrf.mxu1 }
 0x141   :  { %v1017_v13 = vmax.f32 %v936_v7, 0.0  ;;  %v858_v14 = vadd.f32 %v1601_v33, %v857_v12  ;;  %v146_v12 = vld [vmem:[%s2530_s5 + $0x1c0] sm:$0xff] }
 0x142   :  { %741 = vst.msk [vmem:[%s2531_s6 + $0x1a0] sm:$0xff] %vm688_vm2, %v676_v9  ;;  %v645_v15 = vmax.f32 %v517_v11, 0.0 }
 0x143   :  { %v1081_v17 = vadd.f32 %v1017_v13, %v142_v10  ;;  %v986_v18 = vmax.f32 %v858_v14, 0.0 }
 0x144   :  { %710 = vst.msk [vmem:[%s2531_s6 + $0xa8] sm:$0xff] %vm688_vm2, %v645_v15 }
 0x145   :  { %1145 = vst.msk [vmem:[%s2532_s7 + $0x1a0] sm:$0xff] %vm688_vm2, %v1081_v17  ;;  %v1050_v19 = vadd.f32 %v986_v18, %v111_v16  ;;  %v596_v20 = vpop.f32.mrf.mxu2  ;;  %v115_v18 = vld [vmem:[%s2530_s5 + $0xc8] sm:$0xff] }
 0x146   :  { %v597_v21 = vadd.f32 %v1596_v32, %v596_v20  ;;  %v937_v22 = vpop.f32.mrf.mxu3 }
 0x147   :  { %1114 = vst.msk [vmem:[%s2532_s7 + $0xa8] sm:$0xff] %vm688_vm2, %v1050_v19  ;;  %v938_v23 = vadd.f32 %v1601_v33, %v937_v22  ;;  %v519_v24 = vpop.f32.mrf.mxu0 }
 0x148   :  { %v677_v25 = vmax.f32 %v597_v21, 0.0  ;;  %v520_v27 = vadd.f32 %v1596_v32, %v519_v24  ;;  %v860_v28 = vpop.f32.mrf.mxu1 }
 0x149   :  { %v1018_v29 = vmax.f32 %v938_v23, 0.0  ;;  %v861_v30 = vadd.f32 %v1601_v33, %v860_v28  ;;  %v147_v28 = vld [vmem:[%s2530_s5 + $0x1c8] sm:$0xff] }
 0x14a   :  { %742 = vst.msk [vmem:[%s2531_s6 + $0x1a8] sm:$0xff] %vm688_vm2, %v677_v25  ;;  %v646_v31 = vmax.f32 %v520_v27, 0.0 }
 0x14b   :  { %v1082_v35 = vadd.f32 %v1018_v29, %v143_v26  ;;  %v987_v36 = vmax.f32 %v861_v30, 0.0 }
 0x14c   :  { %711 = vst.msk [vmem:[%s2531_s6 + $0xb0] sm:$0xff] %vm688_vm2, %v646_v31 }
 0x14d   :  { %1146 = vst.msk [vmem:[%s2532_s7 + $0x1a8] sm:$0xff] %vm688_vm2, %v1082_v35  ;;  %v1051_v37 = vadd.f32 %v987_v36, %v112_v34  ;;  %v599_v38 = vpop.f32.mrf.mxu2  ;;  %v116_v36 = vld [vmem:[%s2530_s5 + $0xd0] sm:$0xff] }
 0x14e   :  { %v600_v39 = vadd.f32 %v1596_v32, %v599_v38  ;;  %v940_v40 = vpop.f32.mrf.mxu3 }
 0x14f   :  { %1115 = vst.msk [vmem:[%s2532_s7 + $0xb0] sm:$0xff] %vm688_vm2, %v1051_v37  ;;  %v941_v41 = vadd.f32 %v1601_v33, %v940_v40  ;;  %v521_v42 = vpop.f32.mrf.mxu0 }
 0x150   :  { %v678_v43 = vmax.f32 %v600_v39, 0.0  ;;  %v522_v45 = vadd.f32 %v1596_v32, %v521_v42  ;;  %v862_v46 = vpop.f32.mrf.mxu1 }
 0x151   :  { %v1019_v47 = vmax.f32 %v941_v41, 0.0  ;;  %v863_v49 = vadd.f32 %v2277_v48, %v862_v46  ;;  %v148_v46 = vld [vmem:[%s2530_s5 + $0x1d0] sm:$0xff] }
 0x152   :  { %743 = vst.msk [vmem:[%s2531_s6 + $0x1b0] sm:$0xff] %vm688_vm2, %v678_v43  ;;  %v647_v33 = vmax.f32 %v522_v45, 0.0 }
 0x153   :  { %v1083_v32 = vadd.f32 %v1019_v47, %v144_v44  ;;  %v988_v51 = vmax.f32 %v863_v49, 0.0 }
 0x154   :  { %712 = vst.msk [vmem:[%s2531_s6 + $0xb8] sm:$0xff] %vm688_vm2, %v647_v33 }
 0x155   :  { %1147 = vst.msk [vmem:[%s2532_s7 + $0x1b0] sm:$0xff] %vm688_vm2, %v1083_v32  ;;  %v1052_v52 = vadd.f32 %v988_v51, %v113_v50  ;;  %v601_v53 = vpop.f32.mrf.mxu2  ;;  %v117_v51 = vld [vmem:[%s2530_s5 + $0xd8] sm:$0xff] }
 0x156   :  { %v602_v55 = vadd.f32 %v2298_v54, %v601_v53  ;;  %v942_v56 = vpop.f32.mrf.mxu3 }
 0x157   :  { %1116 = vst.msk [vmem:[%s2532_s7 + $0xb8] sm:$0xff] %vm688_vm2, %v1052_v52  ;;  %v943_v57 = vadd.f32 %v2277_v48, %v942_v56  ;;  %v524_v58 = vpop.f32.mrf.mxu0 }
 0x158   :  { %v679_v59 = vmax.f32 %v602_v55, 0.0  ;;  %v525_v61 = vadd.f32 %v2298_v54, %v524_v58  ;;  %v865_v62 = vpop.f32.mrf.mxu1 }
 0x159   :  { %v1020_v63 = vmax.f32 %v943_v57, 0.0  ;;  %v866_v0 = vadd.f32 %v2277_v48, %v865_v62  ;;  %v149_v62 = vld [vmem:[%s2530_s5 + $0x1d8] sm:$0xff] }
 0x15a   :  { %744 = vst.msk [vmem:[%s2531_s6 + $0x1b8] sm:$0xff] %vm688_vm2, %v679_v59  ;;  %v648_v1 = vmax.f32 %v525_v61, 0.0 }
 0x15b   :  { %v1084_v3 = vadd.f32 %v1020_v63, %v145_v60  ;;  %v989_v4 = vmax.f32 %v866_v0, 0.0 }
 0x15c   :  { %713 = vst.msk [vmem:[%s2531_s6 + $0xc0] sm:$0xff] %vm688_vm2, %v648_v1 }
 0x15d   :  { %1148 = vst.msk [vmem:[%s2532_s7 + $0x1b8] sm:$0xff] %vm688_vm2, %v1084_v3  ;;  %v1053_v5 = vadd.f32 %v989_v4, %v114_v2  ;;  %v604_v6 = vpop.f32.mrf.mxu2  ;;  %v118_v4 = vld [vmem:[%s2530_s5 + $0xe0] sm:$0xff] }
 0x15e   :  { %v605_v7 = vadd.f32 %v2298_v54, %v604_v6  ;;  %v945_v8 = vpop.f32.mrf.mxu3 }
 0x15f   :  { %1117 = vst.msk [vmem:[%s2532_s7 + $0xc0] sm:$0xff] %vm688_vm2, %v1053_v5  ;;  %v946_v9 = vadd.f32 %v2277_v48, %v945_v8  ;;  %v526_v10 = vpop.f32.mrf.mxu0 }
 0x160   :  { %v680_v11 = vmax.f32 %v605_v7, 0.0  ;;  %v527_v13 = vadd.f32 %v2298_v54, %v526_v10  ;;  %v867_v14 = vpop.f32.mrf.mxu1 }
 0x161   :  { %v1021_v15 = vmax.f32 %v946_v9, 0.0  ;;  %v868_v16 = vadd.f32 %v2277_v48, %v867_v14  ;;  %v150_v14 = vld [vmem:[%s2530_s5 + $0x1e0] sm:$0xff] }
 0x162   :  { %745 = vst.msk [vmem:[%s2531_s6 + $0x1c0] sm:$0xff] %vm688_vm2, %v680_v11  ;;  %v649_v17 = vmax.f32 %v527_v13, 0.0 }
 0x163   :  { %v1085_v19 = vadd.f32 %v1021_v15, %v146_v12  ;;  %v990_v20 = vmax.f32 %v868_v16, 0.0 }
 0x164   :  { %714 = vst.msk [vmem:[%s2531_s6 + $0xc8] sm:$0xff] %vm688_vm2, %v649_v17 }
 0x165   :  { %1149 = vst.msk [vmem:[%s2532_s7 + $0x1c0] sm:$0xff] %vm688_vm2, %v1085_v19  ;;  %v1054_v21 = vadd.f32 %v990_v20, %v115_v18  ;;  %v606_v22 = vpop.f32.mrf.mxu2  ;;  %v119_v20 = vld [vmem:[%s2530_s5 + $0xe8] sm:$0xff] }
 0x166   :  { %v607_v23 = vadd.f32 %v2298_v54, %v606_v22  ;;  %v947_v24 = vpop.f32.mrf.mxu3 }
 0x167   :  { %1118 = vst.msk [vmem:[%s2532_s7 + $0xc8] sm:$0xff] %vm688_vm2, %v1054_v21  ;;  %v948_v25 = vadd.f32 %v2277_v48, %v947_v24  ;;  %v529_v26 = vpop.f32.mrf.mxu0 }
 0x168   :  { %v681_v27 = vmax.f32 %v607_v23, 0.0  ;;  %v530_v29 = vadd.f32 %v2298_v54, %v529_v26  ;;  %v870_v30 = vpop.f32.mrf.mxu1 }
 0x169   :  { %v1022_v31 = vmax.f32 %v948_v25, 0.0  ;;  %v871_v34 = vadd.f32 %v2277_v48, %v870_v30  ;;  %v151_v30 = vld [vmem:[%s2530_s5 + $0x1e8] sm:$0xff] }
 0x16a   :  { %746 = vst.msk [vmem:[%s2531_s6 + $0x1c8] sm:$0xff] %vm688_vm2, %v681_v27  ;;  %v650_v35 = vmax.f32 %v530_v29, 0.0 }
 0x16b   :  { %v1086_v37 = vadd.f32 %v1022_v31, %v147_v28  ;;  %v991_v38 = vmax.f32 %v871_v34, 0.0 }
 0x16c   :  { %715 = vst.msk [vmem:[%s2531_s6 + $0xd0] sm:$0xff] %vm688_vm2, %v650_v35 }
 0x16d   :  { %1150 = vst.msk [vmem:[%s2532_s7 + $0x1c8] sm:$0xff] %vm688_vm2, %v1086_v37  ;;  %v1055_v39 = vadd.f32 %v991_v38, %v116_v36  ;;  %v609_v40 = vpop.f32.mrf.mxu2  ;;  %v120_v38 = vld [vmem:[%s2530_s5 + $0xf0] sm:$0xff] }
 0x16e   :  { %v610_v41 = vadd.f32 %v2298_v54, %v609_v40  ;;  %v950_v42 = vpop.f32.mrf.mxu3 }
 0x16f   :  { %1119 = vst.msk [vmem:[%s2532_s7 + $0xd0] sm:$0xff] %vm688_vm2, %v1055_v39  ;;  %v951_v43 = vadd.f32 %v2277_v48, %v950_v42  ;;  %v531_v44 = vpop.f32.mrf.mxu0 }
 0x170   :  { %v682_v45 = vmax.f32 %v610_v41, 0.0  ;;  %v532_v47 = vadd.f32 %v2298_v54, %v531_v44  ;;  %v872_v49 = vpop.f32.mrf.mxu1 }
 0x171   :  { %v1023_v33 = vmax.f32 %v951_v43, 0.0  ;;  %v873_v50 = vadd.f32 %v2277_v48, %v872_v49  ;;  %v152_v49 = vld [vmem:[%s2530_s5 + $0x1f0] sm:$0xff] }
 0x172   :  { %747 = vst.msk [vmem:[%s2531_s6 + $0x1d0] sm:$0xff] %vm688_vm2, %v682_v45  ;;  %v651_v32 = vmax.f32 %v532_v47, 0.0 }
 0x173   :  { %v1087_v52 = vadd.f32 %v1023_v33, %v148_v46  ;;  %v992_v53 = vmax.f32 %v873_v50, 0.0 }
 0x174   :  { %716 = vst.msk [vmem:[%s2531_s6 + $0xd8] sm:$0xff] %vm688_vm2, %v651_v32 }
 0x175   :  { %1151 = vst.msk [vmem:[%s2532_s7 + $0x1d0] sm:$0xff] %vm688_vm2, %v1087_v52  ;;  %v1056_v55 = vadd.f32 %v992_v53, %v117_v51  ;;  %v611_v56 = vpop.f32.mrf.mxu2  ;;  %v121_v53 = vld [vmem:[%s2530_s5 + $0xf8] sm:$0xff] }
 0x176   :  { %v612_v57 = vadd.f32 %v2298_v54, %v611_v56  ;;  %v952_v58 = vpop.f32.mrf.mxu3 }
 0x177   :  { %1120 = vst.msk [vmem:[%s2532_s7 + $0xd8] sm:$0xff] %vm688_vm2, %v1056_v55  ;;  %v953_v59 = vadd.f32 %v2277_v48, %v952_v58  ;;  %v534_v60 = vpop.f32.mrf.mxu0 }
 0x178   :  { %v683_v61 = vmax.f32 %v612_v57, 0.0  ;;  %v535_v63 = vadd.f32 %v2298_v54, %v534_v60  ;;  %v875_v0 = vpop.f32.mrf.mxu1 }
 0x179   :  { %v1024_v1 = vmax.f32 %v953_v59, 0.0  ;;  %v876_v2 = vadd.f32 %v2277_v48, %v875_v0 }
 0x17a   :  { %748 = vst.msk [vmem:[%s2531_s6 + $0x1d8] sm:$0xff] %vm688_vm2, %v683_v61  ;;  %v652_v3 = vmax.f32 %v535_v63, 0.0  ;;  %v153_v63 = vld [vmem:[%s2530_s5 + $0x1f8] sm:$0xff] }
 0x17b   :  { %v1088_v5 = vadd.f32 %v1024_v1, %v149_v62  ;;  %v993_v6 = vmax.f32 %v876_v2, 0.0 }
 0x17c   :  { %717 = vst.msk [vmem:[%s2531_s6 + $0xe0] sm:$0xff] %vm688_vm2, %v652_v3 }
 0x17d   :  { %1152 = vst.msk [vmem:[%s2532_s7 + $0x1d8] sm:$0xff] %vm688_vm2, %v1088_v5  ;;  %v1057_v7 = vadd.f32 %v993_v6, %v118_v4  ;;  %v614_v8 = vpop.f32.mrf.mxu2 }
 0x17e   :  { %v615_v9 = vadd.f32 %v2298_v54, %v614_v8  ;;  %v955_v10 = vpop.f32.mrf.mxu3 }
 0x17f   :  { %1121 = vst.msk [vmem:[%s2532_s7 + $0xe0] sm:$0xff] %vm688_vm2, %v1057_v7  ;;  %v956_v11 = vadd.f32 %v2277_v48, %v955_v10  ;;  %v536_v12 = vpop.f32.mrf.mxu0 }
 0x180   :  { %v684_v13 = vmax.f32 %v615_v9, 0.0  ;;  %v537_v15 = vadd.f32 %v2298_v54, %v536_v12  ;;  %v877_v16 = vpop.f32.mrf.mxu1 }
 0x181   :  { %v1025_v17 = vmax.f32 %v956_v11, 0.0  ;;  %v878_v18 = vadd.f32 %v2277_v48, %v877_v16 }
 0x182   :  { %749 = vst.msk [vmem:[%s2531_s6 + $0x1e0] sm:$0xff] %vm688_vm2, %v684_v13  ;;  %v653_v19 = vmax.f32 %v537_v15, 0.0 }
 0x183   :  { %v1089_v21 = vadd.f32 %v1025_v17, %v150_v14  ;;  %v994_v22 = vmax.f32 %v878_v18, 0.0 }
 0x184   :  { %718 = vst.msk [vmem:[%s2531_s6 + $0xe8] sm:$0xff] %vm688_vm2, %v653_v19 }
 0x185   :  { %1153 = vst.msk [vmem:[%s2532_s7 + $0x1e0] sm:$0xff] %vm688_vm2, %v1089_v21  ;;  %v1058_v23 = vadd.f32 %v994_v22, %v119_v20  ;;  %v616_v24 = vpop.f32.mrf.mxu2 }
 0x186   :  { %v617_v25 = vadd.f32 %v2298_v54, %v616_v24  ;;  %v957_v26 = vpop.f32.mrf.mxu3 }
 0x187   :  { %1122 = vst.msk [vmem:[%s2532_s7 + $0xe8] sm:$0xff] %vm688_vm2, %v1058_v23  ;;  %v958_v27 = vadd.f32 %v2277_v48, %v957_v26  ;;  %v539_v28 = vpop.f32.mrf.mxu0 }
 0x188   :  { %v685_v29 = vmax.f32 %v617_v25, 0.0  ;;  %v540_v31 = vadd.f32 %v2298_v54, %v539_v28  ;;  %v880_v34 = vpop.f32.mrf.mxu1 }
 0x189   :  { %v1026_v35 = vmax.f32 %v958_v27, 0.0  ;;  %v881_v36 = vadd.f32 %v2277_v48, %v880_v34 }
 0x18a   :  { %750 = vst.msk [vmem:[%s2531_s6 + $0x1e8] sm:$0xff] %vm688_vm2, %v685_v29  ;;  %v654_v37 = vmax.f32 %v540_v31, 0.0 }
 0x18b   :  { %v1090_v39 = vadd.f32 %v1026_v35, %v151_v30  ;;  %v995_v40 = vmax.f32 %v881_v36, 0.0 }
 0x18c   :  { %719 = vst.msk [vmem:[%s2531_s6 + $0xf0] sm:$0xff] %vm688_vm2, %v654_v37 }
 0x18d   :  { %1154 = vst.msk [vmem:[%s2532_s7 + $0x1e8] sm:$0xff] %vm688_vm2, %v1090_v39  ;;  %v1059_v41 = vadd.f32 %v995_v40, %v120_v38  ;;  %v619_v42 = vpop.f32.mrf.mxu2 }
 0x18e   :  { %v620_v43 = vadd.f32 %v2298_v54, %v619_v42  ;;  %v960_v44 = vpop.f32.mrf.mxu3 }
 0x18f   :  { %1123 = vst.msk [vmem:[%s2532_s7 + $0xf0] sm:$0xff] %vm688_vm2, %v1059_v41  ;;  %v961_v45 = vadd.f32 %v2277_v48, %v960_v44  ;;  %v541_v46 = vpop.f32.mrf.mxu0 }
 0x190   :  { %v686_v47 = vmax.f32 %v620_v43, 0.0  ;;  %v542_v33 = vadd.f32 %v2298_v54, %v541_v46  ;;  %v882_v50 = vpop.f32.mrf.mxu1 }
 0x191   :  { %v1027_v32 = vmax.f32 %v961_v45, 0.0  ;;  %v883_v51 = vadd.f32 %v2277_v48, %v882_v50 }
 0x192   :  { %751 = vst.msk [vmem:[%s2531_s6 + $0x1f0] sm:$0xff] %vm688_vm2, %v686_v47  ;;  %v655_v52 = vmax.f32 %v542_v33, 0.0 }
 0x193   :  { %v1091_v55 = vadd.f32 %v1027_v32, %v152_v49  ;;  %v996_v56 = vmax.f32 %v883_v51, 0.0 }
 0x194   :  { %720 = vst.msk [vmem:[%s2531_s6 + $0xf8] sm:$0xff] %vm688_vm2, %v655_v52 }
 0x195   :  { %1155 = vst.msk [vmem:[%s2532_s7 + $0x1f0] sm:$0xff] %vm688_vm2, %v1091_v55  ;;  %v1060_v57 = vadd.f32 %v996_v56, %v121_v53  ;;  %v621_v58 = vpop.f32.mrf.mxu2 }
 0x196   :  { %v622_v59 = vadd.f32 %v2298_v54, %v621_v58  ;;  %v962_v60 = vpop.f32.mrf.mxu3 }
 0x197   :  { %1124 = vst.msk [vmem:[%s2532_s7 + $0xf8] sm:$0xff] %vm688_vm2, %v1060_v57  ;;  %v963_v61 = vadd.f32 %v2277_v48, %v962_v60 }
 0x198   :  { %v687_v62 = vmax.f32 %v622_v59, 0.0 }
 0x199   :  { %v1028_v0 = vmax.f32 %v963_v61, 0.0 }
 0x19a   :  { %752 = vst.msk [vmem:[%s2531_s6 + $0x1f8] sm:$0xff] %vm688_vm2, %v687_v62 }
 0x19b   :  { %v1092_v54 = vadd.f32 %v1028_v0, %v153_v63 }
 0x19d   :  { %1156 = vst.msk [vmem:[%s2532_s7 + $0x1f8] sm:$0xff] %vm688_vm2, %v1092_v54 }

// kernel: _lambda_.33
= control target key start
LH: loop header
LB: loop body
LE: loop exit
PB: predicated region body
PF: predicated region fallthrough
CT: control target
= control target key end

     0   :  { %vm86_vm0 = vcmask 523264   ;;  %vm296_vm1 = vcmask 64512   ;;  %s1349_s0 = inlined_call_operand.vmem [shape: f32[2,64,8], index: 0, kind: input, shape index: {}]   ;;  %s1350_s1 = inlined_call_operand.vmem [shape: f32[256,64], index: 1, kind: input, shape index: {}]   ;;  %s1351_s2 = inlined_call_operand.vmem [shape: f32[2,256,8], index: 2, kind: input, shape index: {}]   ;;  %s1352_s3 = inlined_call_operand.vmem [shape: f32[2,256,8], index: 3, kind: output, shape index: {}]  }
   0x1   :  { %v53_v0 = vld [vmem:[%s1349_s0 + $0x38] sm:$0xff]  ;;  %v52_v2 = vld [vmem:[%s1349_s0 + $0x30] sm:$0xff]  ;;  %v51_v4 = vld [vmem:[%s1349_s0 + $0x28] sm:$0xff] }
   0x2   :  { %v560_v1 = vld [vmem:[%s1349_s0 + $0x78] sm:$0xff]  ;;  %657 = vmatpush.msra.mxu2 %v53_v0  ;;  %v559_v3 = vld [vmem:[%s1349_s0 + $0x70] sm:$0xff]  ;;  %v558_v5 = vld [vmem:[%s1349_s0 + $0x68] sm:$0xff]  ;;  %191 = vmatpush.msra.mxu0 %v53_v0 }
   0x3   :  { %665 = vmatpush.msra.mxu3 %v560_v1  ;;  %379 = vmatpush.msra.mxu1 %v560_v1  ;;  %v50_v6 = vld [vmem:[%s1349_s0 + $0x20] sm:$0xff]  ;;  %v49_v8 = vld [vmem:[%s1349_s0 + $0x18] sm:$0xff]  ;;  %v48_v10 = vld [vmem:[%s1349_s0 + $0x10] sm:$0xff] }
   0x4   :  { %658 = vmatpush.msra.mxu2 %v52_v2  ;;  %v557_v7 = vld [vmem:[%s1349_s0 + $0x60] sm:$0xff]  ;;  %192 = vmatpush.msra.mxu0 %v52_v2  ;;  %v556_v9 = vld [vmem:[%s1349_s0 + $0x58] sm:$0xff]  ;;  %v555_v11 = vld [vmem:[%s1349_s0 + $0x50] sm:$0xff] }
   0x5   :  { %666 = vmatpush.msra.mxu3 %v559_v3  ;;  %380 = vmatpush.msra.mxu1 %v559_v3  ;;  %v47_v12 = vld [vmem:[%s1349_s0 + $0x8] sm:$0xff]  ;;  %v46_v14 = vld [vmem:[%s1349_s0] sm:$0xff]  ;;  %v32_v20 = vld [vmem:[%s1350_s1 + $0x90] sm:$0xff] }
   0x6   :  { %659 = vmatpush.msra.mxu2 %v51_v4  ;;  %193 = vmatpush.msra.mxu0 %v51_v4  ;;  %v554_v13 = vld [vmem:[%s1349_s0 + $0x48] sm:$0xff]  ;;  %v553_v15 = vld [vmem:[%s1349_s0 + $0x40] sm:$0xff]  ;;  %v16_v21 = vld [vmem:[%s1350_s1 + $0x10] sm:$0xff] }
   0x7   :  { %667 = vmatpush.msra.mxu3 %v558_v5  ;;  %381 = vmatpush.msra.mxu1 %v558_v5  ;;  %v30_v16 = vld [vmem:[%s1350_s1 + $0x80] sm:$0xff]  ;;  %v31_v18 = vld [vmem:[%s1350_s1 + $0x88] sm:$0xff]  ;;  %v33_v22 = vld [vmem:[%s1350_s1 + $0x98] sm:$0xff] }
   0x8   :  { %660 = vmatpush.msra.mxu2 %v50_v6  ;;  %194 = vmatpush.msra.mxu0 %v50_v6  ;;  %v14_v17 = vld [vmem:[%s1350_s1] sm:$0xff]  ;;  %v15_v19 = vld [vmem:[%s1350_s1 + $0x8] sm:$0xff]  ;;  %v17_v23 = vld [vmem:[%s1350_s1 + $0x18] sm:$0xff] }
   0x9   :  { %668 = vmatpush.msra.mxu3 %v557_v7  ;;  %382 = vmatpush.msra.mxu1 %v557_v7  ;;  %v34_v24 = vld [vmem:[%s1350_s1 + $0xa0] sm:$0xff]  ;;  %v35_v26 = vld [vmem:[%s1350_s1 + $0xa8] sm:$0xff]  ;;  %v36_v28 = vld [vmem:[%s1350_s1 + $0xb0] sm:$0xff] }
   0xa   :  { %661 = vmatpush.msra.mxu2 %v49_v8  ;;  %195 = vmatpush.msra.mxu0 %v49_v8  ;;  %v18_v25 = vld [vmem:[%s1350_s1 + $0x20] sm:$0xff]  ;;  %v19_v27 = vld [vmem:[%s1350_s1 + $0x28] sm:$0xff]  ;;  %v20_v29 = vld [vmem:[%s1350_s1 + $0x30] sm:$0xff] }
   0xb   :  { %669 = vmatpush.msra.mxu3 %v556_v9  ;;  %383 = vmatpush.msra.mxu1 %v556_v9  ;;  %v37_v30 = vld [vmem:[%s1350_s1 + $0xb8] sm:$0xff]  ;;  %v38_v32 = vld [vmem:[%s1350_s1 + $0xc0] sm:$0xff]  ;;  %v39_v34 = vld [vmem:[%s1350_s1 + $0xc8] sm:$0xff] }
   0xc   :  { %662 = vmatpush.msra.mxu2 %v48_v10  ;;  %196 = vmatpush.msra.mxu0 %v48_v10  ;;  %v21_v31 = vld [vmem:[%s1350_s1 + $0x38] sm:$0xff]  ;;  %v22_v33 = vld [vmem:[%s1350_s1 + $0x40] sm:$0xff]  ;;  %v23_v35 = vld [vmem:[%s1350_s1 + $0x48] sm:$0xff] }
   0xd   :  { %670 = vmatpush.msra.mxu3 %v555_v11  ;;  %384 = vmatpush.msra.mxu1 %v555_v11  ;;  %v40_v36 = vld [vmem:[%s1350_s1 + $0xd0] sm:$0xff]  ;;  %v41_v38 = vld [vmem:[%s1350_s1 + $0xd8] sm:$0xff]  ;;  %v42_v40 = vld [vmem:[%s1350_s1 + $0xe0] sm:$0xff] }
   0xe   :  { %663 = vmatpush.msra.mxu2 %v47_v12  ;;  %197 = vmatpush.msra.mxu0 %v47_v12  ;;  %v24_v37 = vld [vmem:[%s1350_s1 + $0x50] sm:$0xff]  ;;  %v25_v39 = vld [vmem:[%s1350_s1 + $0x58] sm:$0xff]  ;;  %v26_v41 = vld [vmem:[%s1350_s1 + $0x60] sm:$0xff] }
   0xf   :  { %671 = vmatpush.msra.mxu3 %v554_v13  ;;  %385 = vmatpush.msra.mxu1 %v554_v13  ;;  %v43_v42 = vld [vmem:[%s1350_s1 + $0xe8] sm:$0xff]  ;;  %v44_v44 = vld [vmem:[%s1350_s1 + $0xf0] sm:$0xff]  ;;  %v45_v46 = vld [vmem:[%s1350_s1 + $0xf8] sm:$0xff] }
  0x10   :  { %664 = vmatpush.msra.mxu2 %v46_v14  ;;  %198 = vmatpush.msra.mxu0 %v46_v14  ;;  %v27_v43 = vld [vmem:[%s1350_s1 + $0x68] sm:$0xff]  ;;  %v28_v45 = vld [vmem:[%s1350_s1 + $0x70] sm:$0xff]  ;;  %v29_v47 = vld [vmem:[%s1350_s1 + $0x78] sm:$0xff] }
  0x11   :  { %672 = vmatpush.msra.mxu3 %v553_v15  ;;  %537 = vmatmul.msk.f32.vlgmr.msra.gmra.mxu2 %vm86_vm0, %v30_v16  ;;  %v54_v48 = vld [vmem:[%s1351_s2] sm:$0xff]  ;;  %v55_v60 = vld [vmem:[%s1351_s2 + $0x8] sm:$0xff]  ;;  %v56_v8 = vld [vmem:[%s1351_s2 + $0x10] sm:$0xff] }
  0x12   :  { %609 = vmatmul.msk.f32.vlgmr.msra.gmra.mxu3 %vm86_vm0, %v30_v16  ;;  %386 = vmatpush.msra.mxu1 %v553_v15  ;;  %v561_v49 = vld [vmem:[%s1351_s2 + $0x100] sm:$0xff]  ;;  %v562_v61 = vld [vmem:[%s1351_s2 + $0x108] sm:$0xff]  ;;  %v563_v9 = vld [vmem:[%s1351_s2 + $0x110] sm:$0xff] }
  0x13   :  { %521 = vmatmul.msk.f32.vlgmr.msra.gmra.mxu0 %vm86_vm0, %v14_v17  ;;  %593 = vmatmul.msk.f32.vlgmr.msra.gmra.mxu1 %vm86_vm0, %v14_v17  ;;  %v70_v54 = vld [vmem:[%s1351_s2 + $0x80] sm:$0xff]  ;;  %v71_v2 = vld [vmem:[%s1351_s2 + $0x88] sm:$0xff]  ;;  %v72_v14 = vld [vmem:[%s1351_s2 + $0x90] sm:$0xff] }
  0x14   :  { %v577_v55 = vld [vmem:[%s1351_s2 + $0x180] sm:$0xff]  ;;  %v578_v3 = vld [vmem:[%s1351_s2 + $0x188] sm:$0xff]  ;;  %v579_v15 = vld [vmem:[%s1351_s2 + $0x190] sm:$0xff] }
  0x19   :  { %538 = vmatmul.msk.f32.gmra.mxu2 %vm86_vm0, %v31_v18 }
  0x1a   :  { %610 = vmatmul.msk.f32.gmra.mxu3 %vm86_vm0, %v31_v18 }
  0x1b   :  { %522 = vmatmul.msk.f32.gmra.mxu0 %vm86_vm0, %v15_v19  ;;  %594 = vmatmul.msk.f32.gmra.mxu1 %vm86_vm0, %v15_v19 }
  0x21   :  { %539 = vmatmul.msk.f32.gmra.mxu2 %vm86_vm0, %v32_v20 }
  0x22   :  { %611 = vmatmul.msk.f32.gmra.mxu3 %vm86_vm0, %v32_v20  ;;  %v57_v20 = vld [vmem:[%s1351_s2 + $0x18] sm:$0xff] }
  0x23   :  { %523 = vmatmul.msk.f32.gmra.mxu0 %vm86_vm0, %v16_v21  ;;  %595 = vmatmul.msk.f32.gmra.mxu1 %vm86_vm0, %v16_v21  ;;  %v564_v21 = vld [vmem:[%s1351_s2 + $0x118] sm:$0xff] }
  0x29   :  { %540 = vmatmul.msk.f32.gmra.mxu2 %vm86_vm0, %v33_v22 }
  0x2a   :  { %612 = vmatmul.msk.f32.gmra.mxu3 %vm86_vm0, %v33_v22 }
  0x2b   :  { %524 = vmatmul.msk.f32.gmra.mxu0 %vm86_vm0, %v17_v23  ;;  %596 = vmatmul.msk.f32.gmra.mxu1 %vm86_vm0, %v17_v23 }
  0x31   :  { %541 = vmatmul.msk.f32.gmra.mxu2 %vm86_vm0, %v34_v24 }
  0x32   :  { %613 = vmatmul.msk.f32.gmra.mxu3 %vm86_vm0, %v34_v24 }
  0x33   :  { %525 = vmatmul.msk.f32.gmra.mxu0 %vm86_vm0, %v18_v25  ;;  %597 = vmatmul.msk.f32.gmra.mxu1 %vm86_vm0, %v18_v25 }
  0x39   :  { %542 = vmatmul.msk.f32.gmra.mxu2 %vm86_vm0, %v35_v26 }
  0x3a   :  { %614 = vmatmul.msk.f32.gmra.mxu3 %vm86_vm0, %v35_v26  ;;  %v73_v26 = vld [vmem:[%s1351_s2 + $0x98] sm:$0xff] }
  0x3b   :  { %526 = vmatmul.msk.f32.gmra.mxu0 %vm86_vm0, %v19_v27  ;;  %598 = vmatmul.msk.f32.gmra.mxu1 %vm86_vm0, %v19_v27  ;;  %v580_v27 = vld [vmem:[%s1351_s2 + $0x198] sm:$0xff] }
  0x41   :  { %543 = vmatmul.msk.f32.gmra.mxu2 %vm86_vm0, %v36_v28 }
  0x42   :  { %615 = vmatmul.msk.f32.gmra.mxu3 %vm86_vm0, %v36_v28 }
  0x43   :  { %527 = vmatmul.msk.f32.gmra.mxu0 %vm86_vm0, %v20_v29  ;;  %599 = vmatmul.msk.f32.gmra.mxu1 %vm86_vm0, %v20_v29 }
  0x49   :  { %544 = vmatmul.msk.f32.gmra.mxu2 %vm86_vm0, %v37_v30 }
  0x4a   :  { %616 = vmatmul.msk.f32.gmra.mxu3 %vm86_vm0, %v37_v30 }
  0x4b   :  { %528 = vmatmul.msk.f32.gmra.mxu0 %vm86_vm0, %v21_v31  ;;  %600 = vmatmul.msk.f32.gmra.mxu1 %vm86_vm0, %v21_v31 }
  0x51   :  { %545 = vmatmul.msk.f32.gmra.mxu2 %vm86_vm0, %v38_v32 }
  0x52   :  { %617 = vmatmul.msk.f32.gmra.mxu3 %vm86_vm0, %v38_v32  ;;  %v58_v32 = vld [vmem:[%s1351_s2 + $0x20] sm:$0xff] }
  0x53   :  { %529 = vmatmul.msk.f32.gmra.mxu0 %vm86_vm0, %v22_v33  ;;  %601 = vmatmul.msk.f32.gmra.mxu1 %vm86_vm0, %v22_v33  ;;  %v565_v33 = vld [vmem:[%s1351_s2 + $0x120] sm:$0xff] }
  0x59   :  { %546 = vmatmul.msk.f32.gmra.mxu2 %vm86_vm0, %v39_v34 }
  0x5a   :  { %618 = vmatmul.msk.f32.gmra.mxu3 %vm86_vm0, %v39_v34 }
  0x5b   :  { %530 = vmatmul.msk.f32.gmra.mxu0 %vm86_vm0, %v23_v35  ;;  %602 = vmatmul.msk.f32.gmra.mxu1 %vm86_vm0, %v23_v35 }
  0x61   :  { %547 = vmatmul.msk.f32.gmra.mxu2 %vm86_vm0, %v40_v36 }
  0x62   :  { %619 = vmatmul.msk.f32.gmra.mxu3 %vm86_vm0, %v40_v36 }
  0x63   :  { %531 = vmatmul.msk.f32.gmra.mxu0 %vm86_vm0, %v24_v37  ;;  %603 = vmatmul.msk.f32.gmra.mxu1 %vm86_vm0, %v24_v37 }
  0x69   :  { %548 = vmatmul.msk.f32.gmra.mxu2 %vm86_vm0, %v41_v38 }
  0x6a   :  { %620 = vmatmul.msk.f32.gmra.mxu3 %vm86_vm0, %v41_v38  ;;  %v74_v38 = vld [vmem:[%s1351_s2 + $0xa0] sm:$0xff] }
  0x6b   :  { %532 = vmatmul.msk.f32.gmra.mxu0 %vm86_vm0, %v25_v39  ;;  %604 = vmatmul.msk.f32.gmra.mxu1 %vm86_vm0, %v25_v39  ;;  %v581_v39 = vld [vmem:[%s1351_s2 + $0x1a0] sm:$0xff] }
  0x71   :  { %549 = vmatmul.msk.f32.gmra.mxu2 %vm86_vm0, %v42_v40 }
  0x72   :  { %621 = vmatmul.msk.f32.gmra.mxu3 %vm86_vm0, %v42_v40 }
  0x73   :  { %533 = vmatmul.msk.f32.gmra.mxu0 %vm86_vm0, %v26_v41  ;;  %605 = vmatmul.msk.f32.gmra.mxu1 %vm86_vm0, %v26_v41 }
  0x79   :  { %550 = vmatmul.msk.f32.gmra.mxu2 %vm86_vm0, %v43_v42 }
  0x7a   :  { %622 = vmatmul.msk.f32.gmra.mxu3 %vm86_vm0, %v43_v42 }
  0x7b   :  { %534 = vmatmul.msk.f32.gmra.mxu0 %vm86_vm0, %v27_v43  ;;  %606 = vmatmul.msk.f32.gmra.mxu1 %vm86_vm0, %v27_v43 }
  0x81   :  { %551 = vmatmul.msk.f32.gmra.mxu2 %vm86_vm0, %v44_v44 }
  0x82   :  { %623 = vmatmul.msk.f32.gmra.mxu3 %vm86_vm0, %v44_v44  ;;  %v59_v44 = vld [vmem:[%s1351_s2 + $0x28] sm:$0xff] }
  0x83   :  { %535 = vmatmul.msk.f32.gmra.mxu0 %vm86_vm0, %v28_v45  ;;  %607 = vmatmul.msk.f32.gmra.mxu1 %vm86_vm0, %v28_v45  ;;  %v566_v45 = vld [vmem:[%s1351_s2 + $0x128] sm:$0xff] }
  0x89   :  { %552 = vmatmul.msk.f32.gmra.mxu2 %vm86_vm0, %v45_v46 }
  0x8a   :  { %624 = vmatmul.msk.f32.gmra.mxu3 %vm86_vm0, %v45_v46 }
  0x8b   :  { %536 = vmatmul.msk.f32.gmra.mxu0 %vm86_vm0, %v29_v47  ;;  %608 = vmatmul.msk.f32.gmra.mxu1 %vm86_vm0, %v29_v47 }
  0x90   :  { %v200_v50 = vpop.f32.mrf.mxu0  ;;  %v388_v51 = vpop.f32.mrf.mxu1 }
  0x91   :  { %v201_v52 = vadd.f32 %v200_v50, %v54_v48  ;;  %v389_v53 = vadd.f32 %v561_v49, %v388_v51  ;;  %v75_v50 = vld [vmem:[%s1351_s2 + $0xa8] sm:$0xff] }
  0x92   :  { %v582_v51 = vld [vmem:[%s1351_s2 + $0x1a8] sm:$0xff] }
  0x93   :  { %297 = vst.msk [vmem:[%s1352_s3] sm:$0xff] %vm296_vm1, %v201_v52 }
  0x94   :  { %v248_v56 = vpop.f32.mrf.mxu2  ;;  %625 = vst.msk [vmem:[%s1352_s3 + $0x100] sm:$0xff] %vm296_vm1, %v389_v53 }
  0x95   :  { %v436_v57 = vpop.f32.mrf.mxu3  ;;  %v249_v58 = vadd.f32 %v248_v56, %v70_v54  ;;  %v60_v56 = vld [vmem:[%s1351_s2 + $0x30] sm:$0xff] }
  0x96   :  { %v437_v59 = vadd.f32 %v577_v55, %v436_v57  ;;  %v567_v57 = vld [vmem:[%s1351_s2 + $0x130] sm:$0xff] }
  0x97   :  { %313 = vst.msk [vmem:[%s1352_s3 + $0x80] sm:$0xff] %vm296_vm1, %v249_v58 }
  0x98   :  { %641 = vst.msk [vmem:[%s1352_s3 + $0x180] sm:$0xff] %vm296_vm1, %v437_v59  ;;  %v203_v62 = vpop.f32.mrf.mxu0  ;;  %v391_v63 = vpop.f32.mrf.mxu1 }
  0x99   :  { %v204_v0 = vadd.f32 %v203_v62, %v55_v60  ;;  %v392_v1 = vadd.f32 %v562_v61, %v391_v63  ;;  %v76_v62 = vld [vmem:[%s1351_s2 + $0xb0] sm:$0xff] }
  0x9a   :  { %v583_v63 = vld [vmem:[%s1351_s2 + $0x1b0] sm:$0xff] }
  0x9b   :  { %298 = vst.msk [vmem:[%s1352_s3 + $0x8] sm:$0xff] %vm296_vm1, %v204_v0 }
  0x9c   :  { %v251_v4 = vpop.f32.mrf.mxu2  ;;  %626 = vst.msk [vmem:[%s1352_s3 + $0x108] sm:$0xff] %vm296_vm1, %v392_v1 }
  0x9d   :  { %v439_v5 = vpop.f32.mrf.mxu3  ;;  %v252_v6 = vadd.f32 %v251_v4, %v71_v2  ;;  %v61_v4 = vld [vmem:[%s1351_s2 + $0x38] sm:$0xff] }
  0x9e   :  { %v440_v7 = vadd.f32 %v578_v3, %v439_v5  ;;  %v568_v5 = vld [vmem:[%s1351_s2 + $0x138] sm:$0xff] }
  0x9f   :  { %314 = vst.msk [vmem:[%s1352_s3 + $0x88] sm:$0xff] %vm296_vm1, %v252_v6 }
  0xa0   :  { %642 = vst.msk [vmem:[%s1352_s3 + $0x188] sm:$0xff] %vm296_vm1, %v440_v7  ;;  %v206_v10 = vpop.f32.mrf.mxu0  ;;  %v394_v11 = vpop.f32.mrf.mxu1 }
  0xa1   :  { %v207_v12 = vadd.f32 %v206_v10, %v56_v8  ;;  %v395_v13 = vadd.f32 %v563_v9, %v394_v11  ;;  %v77_v10 = vld [vmem:[%s1351_s2 + $0xb8] sm:$0xff] }
  0xa2   :  { %v584_v11 = vld [vmem:[%s1351_s2 + $0x1b8] sm:$0xff] }
  0xa3   :  { %299 = vst.msk [vmem:[%s1352_s3 + $0x10] sm:$0xff] %vm296_vm1, %v207_v12 }
  0xa4   :  { %v254_v16 = vpop.f32.mrf.mxu2  ;;  %627 = vst.msk [vmem:[%s1352_s3 + $0x110] sm:$0xff] %vm296_vm1, %v395_v13 }
  0xa5   :  { %v442_v17 = vpop.f32.mrf.mxu3  ;;  %v255_v18 = vadd.f32 %v254_v16, %v72_v14  ;;  %v62_v16 = vld [vmem:[%s1351_s2 + $0x40] sm:$0xff] }
  0xa6   :  { %v443_v19 = vadd.f32 %v579_v15, %v442_v17  ;;  %v569_v17 = vld [vmem:[%s1351_s2 + $0x140] sm:$0xff] }
  0xa7   :  { %315 = vst.msk [vmem:[%s1352_s3 + $0x90] sm:$0xff] %vm296_vm1, %v255_v18 }
  0xa8   :  { %643 = vst.msk [vmem:[%s1352_s3 + $0x190] sm:$0xff] %vm296_vm1, %v443_v19  ;;  %v209_v22 = vpop.f32.mrf.mxu0  ;;  %v397_v23 = vpop.f32.mrf.mxu1 }
  0xa9   :  { %v210_v24 = vadd.f32 %v209_v22, %v57_v20  ;;  %v398_v25 = vadd.f32 %v564_v21, %v397_v23  ;;  %v78_v22 = vld [vmem:[%s1351_s2 + $0xc0] sm:$0xff] }
  0xaa   :  { %v585_v23 = vld [vmem:[%s1351_s2 + $0x1c0] sm:$0xff] }
  0xab   :  { %300 = vst.msk [vmem:[%s1352_s3 + $0x18] sm:$0xff] %vm296_vm1, %v210_v24 }
  0xac   :  { %v257_v28 = vpop.f32.mrf.mxu2  ;;  %628 = vst.msk [vmem:[%s1352_s3 + $0x118] sm:$0xff] %vm296_vm1, %v398_v25 }
  0xad   :  { %v445_v29 = vpop.f32.mrf.mxu3  ;;  %v258_v30 = vadd.f32 %v257_v28, %v73_v26  ;;  %v63_v28 = vld [vmem:[%s1351_s2 + $0x48] sm:$0xff] }
  0xae   :  { %v446_v31 = vadd.f32 %v580_v27, %v445_v29  ;;  %v570_v29 = vld [vmem:[%s1351_s2 + $0x148] sm:$0xff] }
  0xaf   :  { %316 = vst.msk [vmem:[%s1352_s3 + $0x98] sm:$0xff] %vm296_vm1, %v258_v30 }
  0xb0   :  { %644 = vst.msk [vmem:[%s1352_s3 + $0x198] sm:$0xff] %vm296_vm1, %v446_v31  ;;  %v212_v34 = vpop.f32.mrf.mxu0  ;;  %v400_v35 = vpop.f32.mrf.mxu1 }
  0xb1   :  { %v213_v36 = vadd.f32 %v212_v34, %v58_v32  ;;  %v401_v37 = vadd.f32 %v565_v33, %v400_v35  ;;  %v79_v34 = vld [vmem:[%s1351_s2 + $0xc8] sm:$0xff] }
  0xb2   :  { %v586_v35 = vld [vmem:[%s1351_s2 + $0x1c8] sm:$0xff] }
  0xb3   :  { %301 = vst.msk [vmem:[%s1352_s3 + $0x20] sm:$0xff] %vm296_vm1, %v213_v36 }
  0xb4   :  { %v260_v40 = vpop.f32.mrf.mxu2  ;;  %629 = vst.msk [vmem:[%s1352_s3 + $0x120] sm:$0xff] %vm296_vm1, %v401_v37 }
  0xb5   :  { %v448_v41 = vpop.f32.mrf.mxu3  ;;  %v261_v42 = vadd.f32 %v260_v40, %v74_v38  ;;  %v64_v40 = vld [vmem:[%s1351_s2 + $0x50] sm:$0xff] }
  0xb6   :  { %v449_v43 = vadd.f32 %v581_v39, %v448_v41  ;;  %v571_v41 = vld [vmem:[%s1351_s2 + $0x150] sm:$0xff] }
  0xb7   :  { %317 = vst.msk [vmem:[%s1352_s3 + $0xa0] sm:$0xff] %vm296_vm1, %v261_v42 }
  0xb8   :  { %645 = vst.msk [vmem:[%s1352_s3 + $0x1a0] sm:$0xff] %vm296_vm1, %v449_v43  ;;  %v215_v46 = vpop.f32.mrf.mxu0  ;;  %v403_v47 = vpop.f32.mrf.mxu1 }
  0xb9   :  { %v216_v48 = vadd.f32 %v215_v46, %v59_v44  ;;  %v404_v49 = vadd.f32 %v566_v45, %v403_v47  ;;  %v80_v46 = vld [vmem:[%s1351_s2 + $0xd0] sm:$0xff] }
  0xba   :  { %v587_v47 = vld [vmem:[%s1351_s2 + $0x1d0] sm:$0xff] }
  0xbb   :  { %302 = vst.msk [vmem:[%s1352_s3 + $0x28] sm:$0xff] %vm296_vm1, %v216_v48 }
  0xbc   :  { %v263_v52 = vpop.f32.mrf.mxu2  ;;  %630 = vst.msk [vmem:[%s1352_s3 + $0x128] sm:$0xff] %vm296_vm1, %v404_v49 }
  0xbd   :  { %v451_v53 = vpop.f32.mrf.mxu3  ;;  %v264_v54 = vadd.f32 %v263_v52, %v75_v50  ;;  %v65_v52 = vld [vmem:[%s1351_s2 + $0x58] sm:$0xff] }
  0xbe   :  { %v452_v55 = vadd.f32 %v582_v51, %v451_v53  ;;  %v572_v53 = vld [vmem:[%s1351_s2 + $0x158] sm:$0xff] }
  0xbf   :  { %318 = vst.msk [vmem:[%s1352_s3 + $0xa8] sm:$0xff] %vm296_vm1, %v264_v54 }
  0xc0   :  { %646 = vst.msk [vmem:[%s1352_s3 + $0x1a8] sm:$0xff] %vm296_vm1, %v452_v55  ;;  %v218_v58 = vpop.f32.mrf.mxu0  ;;  %v406_v59 = vpop.f32.mrf.mxu1 }
  0xc1   :  { %v219_v60 = vadd.f32 %v218_v58, %v60_v56  ;;  %v407_v61 = vadd.f32 %v567_v57, %v406_v59  ;;  %v81_v58 = vld [vmem:[%s1351_s2 + $0xd8] sm:$0xff] }
  0xc2   :  { %v588_v59 = vld [vmem:[%s1351_s2 + $0x1d8] sm:$0xff] }
  0xc3   :  { %303 = vst.msk [vmem:[%s1352_s3 + $0x30] sm:$0xff] %vm296_vm1, %v219_v60 }
  0xc4   :  { %v266_v0 = vpop.f32.mrf.mxu2  ;;  %631 = vst.msk [vmem:[%s1352_s3 + $0x130] sm:$0xff] %vm296_vm1, %v407_v61 }
  0xc5   :  { %v454_v1 = vpop.f32.mrf.mxu3  ;;  %v267_v2 = vadd.f32 %v266_v0, %v76_v62  ;;  %v66_v0 = vld [vmem:[%s1351_s2 + $0x60] sm:$0xff] }
  0xc6   :  { %v455_v3 = vadd.f32 %v583_v63, %v454_v1  ;;  %v573_v1 = vld [vmem:[%s1351_s2 + $0x160] sm:$0xff] }
  0xc7   :  { %319 = vst.msk [vmem:[%s1352_s3 + $0xb0] sm:$0xff] %vm296_vm1, %v267_v2 }
  0xc8   :  { %647 = vst.msk [vmem:[%s1352_s3 + $0x1b0] sm:$0xff] %vm296_vm1, %v455_v3  ;;  %v221_v6 = vpop.f32.mrf.mxu0  ;;  %v409_v7 = vpop.f32.mrf.mxu1 }
  0xc9   :  { %v222_v8 = vadd.f32 %v221_v6, %v61_v4  ;;  %v410_v9 = vadd.f32 %v568_v5, %v409_v7  ;;  %v82_v6 = vld [vmem:[%s1351_s2 + $0xe0] sm:$0xff] }
  0xca   :  { %v589_v7 = vld [vmem:[%s1351_s2 + $0x1e0] sm:$0xff] }
  0xcb   :  { %304 = vst.msk [vmem:[%s1352_s3 + $0x38] sm:$0xff] %vm296_vm1, %v222_v8 }
  0xcc   :  { %v269_v12 = vpop.f32.mrf.mxu2  ;;  %632 = vst.msk [vmem:[%s1352_s3 + $0x138] sm:$0xff] %vm296_vm1, %v410_v9 }
  0xcd   :  { %v457_v13 = vpop.f32.mrf.mxu3  ;;  %v270_v14 = vadd.f32 %v269_v12, %v77_v10  ;;  %v67_v12 = vld [vmem:[%s1351_s2 + $0x68] sm:$0xff] }
  0xce   :  { %v458_v15 = vadd.f32 %v584_v11, %v457_v13  ;;  %v574_v13 = vld [vmem:[%s1351_s2 + $0x168] sm:$0xff] }
  0xcf   :  { %320 = vst.msk [vmem:[%s1352_s3 + $0xb8] sm:$0xff] %vm296_vm1, %v270_v14 }
  0xd0   :  { %648 = vst.msk [vmem:[%s1352_s3 + $0x1b8] sm:$0xff] %vm296_vm1, %v458_v15  ;;  %v224_v18 = vpop.f32.mrf.mxu0  ;;  %v412_v19 = vpop.f32.mrf.mxu1 }
  0xd1   :  { %v225_v20 = vadd.f32 %v224_v18, %v62_v16  ;;  %v413_v21 = vadd.f32 %v569_v17, %v412_v19  ;;  %v83_v18 = vld [vmem:[%s1351_s2 + $0xe8] sm:$0xff] }
  0xd2   :  { %v590_v19 = vld [vmem:[%s1351_s2 + $0x1e8] sm:$0xff] }
  0xd3   :  { %305 = vst.msk [vmem:[%s1352_s3 + $0x40] sm:$0xff] %vm296_vm1, %v225_v20 }
  0xd4   :  { %v272_v24 = vpop.f32.mrf.mxu2  ;;  %633 = vst.msk [vmem:[%s1352_s3 + $0x140] sm:$0xff] %vm296_vm1, %v413_v21 }
  0xd5   :  { %v460_v25 = vpop.f32.mrf.mxu3  ;;  %v273_v26 = vadd.f32 %v272_v24, %v78_v22  ;;  %v68_v24 = vld [vmem:[%s1351_s2 + $0x70] sm:$0xff] }
  0xd6   :  { %v461_v27 = vadd.f32 %v585_v23, %v460_v25  ;;  %v575_v25 = vld [vmem:[%s1351_s2 + $0x170] sm:$0xff] }
  0xd7   :  { %321 = vst.msk [vmem:[%s1352_s3 + $0xc0] sm:$0xff] %vm296_vm1, %v273_v26 }
  0xd8   :  { %649 = vst.msk [vmem:[%s1352_s3 + $0x1c0] sm:$0xff] %vm296_vm1, %v461_v27  ;;  %v227_v30 = vpop.f32.mrf.mxu0  ;;  %v415_v31 = vpop.f32.mrf.mxu1 }
  0xd9   :  { %v228_v32 = vadd.f32 %v227_v30, %v63_v28  ;;  %v416_v33 = vadd.f32 %v570_v29, %v415_v31  ;;  %v84_v30 = vld [vmem:[%s1351_s2 + $0xf0] sm:$0xff] }
  0xda   :  { %v591_v31 = vld [vmem:[%s1351_s2 + $0x1f0] sm:$0xff] }
  0xdb   :  { %306 = vst.msk [vmem:[%s1352_s3 + $0x48] sm:$0xff] %vm296_vm1, %v228_v32 }
  0xdc   :  { %v275_v36 = vpop.f32.mrf.mxu2  ;;  %634 = vst.msk [vmem:[%s1352_s3 + $0x148] sm:$0xff] %vm296_vm1, %v416_v33 }
  0xdd   :  { %v463_v37 = vpop.f32.mrf.mxu3  ;;  %v276_v38 = vadd.f32 %v275_v36, %v79_v34  ;;  %v69_v36 = vld [vmem:[%s1351_s2 + $0x78] sm:$0xff] }
  0xde   :  { %v464_v39 = vadd.f32 %v586_v35, %v463_v37  ;;  %v576_v37 = vld [vmem:[%s1351_s2 + $0x178] sm:$0xff] }
  0xdf   :  { %322 = vst.msk [vmem:[%s1352_s3 + $0xc8] sm:$0xff] %vm296_vm1, %v276_v38 }
  0xe0   :  { %650 = vst.msk [vmem:[%s1352_s3 + $0x1c8] sm:$0xff] %vm296_vm1, %v464_v39  ;;  %v230_v42 = vpop.f32.mrf.mxu0  ;;  %v418_v43 = vpop.f32.mrf.mxu1 }
  0xe1   :  { %v231_v44 = vadd.f32 %v230_v42, %v64_v40  ;;  %v419_v45 = vadd.f32 %v571_v41, %v418_v43  ;;  %v85_v42 = vld [vmem:[%s1351_s2 + $0xf8] sm:$0xff] }
  0xe2   :  { %v592_v43 = vld [vmem:[%s1351_s2 + $0x1f8] sm:$0xff] }
  0xe3   :  { %307 = vst.msk [vmem:[%s1352_s3 + $0x50] sm:$0xff] %vm296_vm1, %v231_v44 }
  0xe4   :  { %v278_v48 = vpop.f32.mrf.mxu2  ;;  %635 = vst.msk [vmem:[%s1352_s3 + $0x150] sm:$0xff] %vm296_vm1, %v419_v45 }
  0xe5   :  { %v466_v49 = vpop.f32.mrf.mxu3  ;;  %v279_v50 = vadd.f32 %v278_v48, %v80_v46 }
  0xe6   :  { %v467_v51 = vadd.f32 %v587_v47, %v466_v49 }
  0xe7   :  { %323 = vst.msk [vmem:[%s1352_s3 + $0xd0] sm:$0xff] %vm296_vm1, %v279_v50 }
  0xe8   :  { %651 = vst.msk [vmem:[%s1352_s3 + $0x1d0] sm:$0xff] %vm296_vm1, %v467_v51  ;;  %v233_v54 = vpop.f32.mrf.mxu0  ;;  %v421_v55 = vpop.f32.mrf.mxu1 }
  0xe9   :  { %v234_v56 = vadd.f32 %v233_v54, %v65_v52  ;;  %v422_v57 = vadd.f32 %v572_v53, %v421_v55 }
  0xeb   :  { %308 = vst.msk [vmem:[%s1352_s3 + $0x58] sm:$0xff] %vm296_vm1, %v234_v56 }
  0xec   :  { %v281_v60 = vpop.f32.mrf.mxu2  ;;  %636 = vst.msk [vmem:[%s1352_s3 + $0x158] sm:$0xff] %vm296_vm1, %v422_v57 }
  0xed   :  { %v469_v61 = vpop.f32.mrf.mxu3  ;;  %v282_v62 = vadd.f32 %v281_v60, %v81_v58 }
  0xee   :  { %v470_v63 = vadd.f32 %v588_v59, %v469_v61 }
  0xef   :  { %324 = vst.msk [vmem:[%s1352_s3 + $0xd8] sm:$0xff] %vm296_vm1, %v282_v62 }
  0xf0   :  { %652 = vst.msk [vmem:[%s1352_s3 + $0x1d8] sm:$0xff] %vm296_vm1, %v470_v63  ;;  %v236_v2 = vpop.f32.mrf.mxu0  ;;  %v424_v3 = vpop.f32.mrf.mxu1 }
  0xf1   :  { %v237_v4 = vadd.f32 %v236_v2, %v66_v0  ;;  %v425_v5 = vadd.f32 %v573_v1, %v424_v3 }
  0xf3   :  { %309 = vst.msk [vmem:[%s1352_s3 + $0x60] sm:$0xff] %vm296_vm1, %v237_v4 }
  0xf4   :  { %v284_v8 = vpop.f32.mrf.mxu2  ;;  %637 = vst.msk [vmem:[%s1352_s3 + $0x160] sm:$0xff] %vm296_vm1, %v425_v5 }
  0xf5   :  { %v472_v9 = vpop.f32.mrf.mxu3  ;;  %v285_v10 = vadd.f32 %v284_v8, %v82_v6 }
  0xf6   :  { %v473_v11 = vadd.f32 %v589_v7, %v472_v9 }
  0xf7   :  { %325 = vst.msk [vmem:[%s1352_s3 + $0xe0] sm:$0xff] %vm296_vm1, %v285_v10 }
  0xf8   :  { %653 = vst.msk [vmem:[%s1352_s3 + $0x1e0] sm:$0xff] %vm296_vm1, %v473_v11  ;;  %v239_v14 = vpop.f32.mrf.mxu0  ;;  %v427_v15 = vpop.f32.mrf.mxu1 }
  0xf9   :  { %v240_v16 = vadd.f32 %v239_v14, %v67_v12  ;;  %v428_v17 = vadd.f32 %v574_v13, %v427_v15 }
  0xfb   :  { %310 = vst.msk [vmem:[%s1352_s3 + $0x68] sm:$0xff] %vm296_vm1, %v240_v16 }
  0xfc   :  { %v287_v20 = vpop.f32.mrf.mxu2  ;;  %638 = vst.msk [vmem:[%s1352_s3 + $0x168] sm:$0xff] %vm296_vm1, %v428_v17 }
  0xfd   :  { %v475_v21 = vpop.f32.mrf.mxu3  ;;  %v288_v22 = vadd.f32 %v287_v20, %v83_v18 }
  0xfe   :  { %v476_v23 = vadd.f32 %v590_v19, %v475_v21 }
  0xff   :  { %326 = vst.msk [vmem:[%s1352_s3 + $0xe8] sm:$0xff] %vm296_vm1, %v288_v22 }
 0x100   :  { %654 = vst.msk [vmem:[%s1352_s3 + $0x1e8] sm:$0xff] %vm296_vm1, %v476_v23  ;;  %v242_v26 = vpop.f32.mrf.mxu0  ;;  %v430_v27 = vpop.f32.mrf.mxu1 }
 0x101   :  { %v243_v28 = vadd.f32 %v242_v26, %v68_v24  ;;  %v431_v29 = vadd.f32 %v575_v25, %v430_v27 }
 0x103   :  { %311 = vst.msk [vmem:[%s1352_s3 + $0x70] sm:$0xff] %vm296_vm1, %v243_v28 }
 0x104   :  { %v290_v32 = vpop.f32.mrf.mxu2  ;;  %639 = vst.msk [vmem:[%s1352_s3 + $0x170] sm:$0xff] %vm296_vm1, %v431_v29 }
 0x105   :  { %v478_v33 = vpop.f32.mrf.mxu3  ;;  %v291_v34 = vadd.f32 %v290_v32, %v84_v30 }
 0x106   :  { %v479_v35 = vadd.f32 %v591_v31, %v478_v33 }
 0x107   :  { %327 = vst.msk [vmem:[%s1352_s3 + $0xf0] sm:$0xff] %vm296_vm1, %v291_v34 }
 0x108   :  { %655 = vst.msk [vmem:[%s1352_s3 + $0x1f0] sm:$0xff] %vm296_vm1, %v479_v35  ;;  %v245_v38 = vpop.f32.mrf.mxu0  ;;  %v433_v39 = vpop.f32.mrf.mxu1 }
 0x109   :  { %v246_v40 = vadd.f32 %v245_v38, %v69_v36  ;;  %v434_v41 = vadd.f32 %v576_v37, %v433_v39 }
 0x10b   :  { %312 = vst.msk [vmem:[%s1352_s3 + $0x78] sm:$0xff] %vm296_vm1, %v246_v40 }
 0x10c   :  { %v293_v44 = vpop.f32.mrf.mxu2  ;;  %640 = vst.msk [vmem:[%s1352_s3 + $0x178] sm:$0xff] %vm296_vm1, %v434_v41 }
 0x10d   :  { %v481_v45 = vpop.f32.mrf.mxu3  ;;  %v294_v46 = vadd.f32 %v293_v44, %v85_v42 }
 0x10e   :  { %v482_v47 = vadd.f32 %v592_v43, %v481_v45 }
 0x10f   :  { %328 = vst.msk [vmem:[%s1352_s3 + $0xf8] sm:$0xff] %vm296_vm1, %v294_v46 }
 0x110   :  { %656 = vst.msk [vmem:[%s1352_s3 + $0x1f8] sm:$0xff] %vm296_vm1, %v482_v47 }

// kernel: _lambda_.32
= control target key start
LH: loop header
LB: loop body
LE: loop exit
PB: predicated region body
PF: predicated region fallthrough
CT: control target
= control target key end

     0   :  { %vm136_vm0 = vcmask 1043456   ;;  %vm111_vm1 = vcmask 588800   ;;  %vm205_vm2 = vcmask 64512   ;;  %s444_s1 = inlined_call_operand.vmem [shape: bf16[72,8], index: 1, kind: input, shape index: {}]   ;;  %s445_s2 = inlined_call_operand.vmem [shape: f32[1,8], index: 2, kind: input, shape index: {}]   ;;  %s446_s0 = inlined_call_operand.vmem [shape: bf16[128,72], index: 0, kind: input, shape index: {}]   ;;  %s447_s3 = inlined_call_operand.vmem [shape: f32[128,8], index: 3, kind: output, shape index: {}]  }
   0x1   :  { %v39_v0 = vld [vmem:[%s444_s1 + $0x20] sm:$0xf]  ;;  %v293_v4 = vld [vmem:[%s444_s1 + $0x18] sm:$0xff]  ;;  %v292_v5 = vld [vmem:[%s444_s1 + $0x10] sm:$0xff] }
   0x2   :  { %v101_v1 = vunpack.c.l.b16 %v39_v0  ;;  %v291_v6 = vld [vmem:[%s444_s1 + $0x8] sm:$0xff]  ;;  %v290_v7 = vld [vmem:[%s444_s1] sm:$0xff]  ;;  %v284_v9 = vld [vmem:[%s446_s0 + $0x10] sm:$0xff] }
   0x3   :  { %v282_v8 = vld [vmem:[%s446_s0] sm:$0xff]  ;;  %v288_v11 = vld [vmem:[%s446_s0 + $0x30] sm:$0xff]  ;;  %v283_v12 = vld [vmem:[%s446_s0 + $0x8] sm:$0xff] }
   0x4   :  { %v106_v2 = vpack.c.b16 %v101_v1, %v101_v1  ;;  %v286_v10 = vld [vmem:[%s446_s0 + $0x20] sm:$0xff]  ;;  %v285_v13 = vld [vmem:[%s446_s0 + $0x18] sm:$0xff]  ;;  %v287_v14 = vld [vmem:[%s446_s0 + $0x28] sm:$0xff] }
   0x5   :  { %v289_v15 = vld [vmem:[%s446_s0 + $0x38] sm:$0xff]  ;;  %v309_v16 = vld [vmem:[%s445_s2] ss:$0 sm:$0xff] }
   0x6   :  { %v138_v3 = vsel %vm136_vm0, %v106_v2, 0 }
   0x7   :  { %143 = vmatpush.bf16.msra.mxu0 %v138_v3  ;;  %294 = vmatpush.bf16.msra.mxu1 %v138_v3 }
   0x8   :  { %295 = vmatpush.bf16.msra.mxu2 %v138_v3  ;;  %296 = vmatpush.bf16.msra.mxu3 %v138_v3 }
   0xb   :  { %144 = vmatpush.bf16.msra.mxu0 %v293_v4  ;;  %297 = vmatpush.bf16.msra.mxu1 %v293_v4 }
   0xc   :  { %298 = vmatpush.bf16.msra.mxu2 %v293_v4  ;;  %299 = vmatpush.bf16.msra.mxu3 %v293_v4 }
   0xf   :  { %145 = vmatpush.bf16.msra.mxu0 %v292_v5  ;;  %300 = vmatpush.bf16.msra.mxu1 %v292_v5 }
  0x10   :  { %301 = vmatpush.bf16.msra.mxu2 %v292_v5  ;;  %302 = vmatpush.bf16.msra.mxu3 %v292_v5 }
  0x13   :  { %146 = vmatpush.bf16.msra.mxu0 %v291_v6  ;;  %303 = vmatpush.bf16.msra.mxu1 %v291_v6 }
  0x14   :  { %304 = vmatpush.bf16.msra.mxu2 %v291_v6  ;;  %305 = vmatpush.bf16.msra.mxu3 %v291_v6 }
  0x17   :  { %147 = vmatpush.bf16.msra.mxu0 %v290_v7  ;;  %306 = vmatpush.bf16.msra.mxu1 %v290_v7 }
  0x18   :  { %307 = vmatpush.bf16.msra.mxu2 %v290_v7  ;;  %308 = vmatpush.bf16.msra.mxu3 %v290_v7 }
  0x1a   :  { %274 = vmatmul.msk.bf16.vlgmr.msra.gmra.mxu0 %vm111_vm1, %v282_v8  ;;  %276 = vmatmul.msk.bf16.vlgmr.msra.gmra.mxu1 %vm111_vm1, %v284_v9 }
  0x1b   :  { %278 = vmatmul.msk.bf16.vlgmr.msra.gmra.mxu2 %vm111_vm1, %v286_v10  ;;  %280 = vmatmul.msk.bf16.vlgmr.msra.gmra.mxu3 %vm111_vm1, %v288_v11 }
  0x2a   :  { %275 = vmatmul.msk.bf16.gmra.mxu0 %vm111_vm1, %v283_v12  ;;  %277 = vmatmul.msk.bf16.gmra.mxu1 %vm111_vm1, %v285_v13 }
  0x2b   :  { %279 = vmatmul.msk.bf16.gmra.mxu2 %vm111_vm1, %v287_v14  ;;  %281 = vmatmul.msk.bf16.gmra.mxu3 %vm111_vm1, %v289_v15 }
  0x97   :  { %v149_v17 = vpop.f32.mrf.mxu0  ;;  %v159_v18 = vpop.f32.mrf.mxu1 }
  0x98   :  { %v150_v19 = vadd.f32 %v309_v16, %v149_v17  ;;  %v160_v20 = vadd.f32 %v309_v16, %v159_v18 }
  0x9a   :  { %v189_v21 = vmax.f32 %v150_v19, 0.0  ;;  %v193_v22 = vmax.f32 %v160_v20, 0.0 }
  0x9c   :  { %206 = vst.msk [vmem:[%s447_s3] sm:$0xff] %vm205_vm2, %v189_v21 }
  0x9d   :  { %210 = vst.msk [vmem:[%s447_s3 + $0x20] sm:$0xff] %vm205_vm2, %v193_v22 }
  0x9e   :  { %v169_v23 = vpop.f32.mrf.mxu2  ;;  %v179_v24 = vpop.f32.mrf.mxu3 }
  0x9f   :  { %v170_v25 = vadd.f32 %v309_v16, %v169_v23  ;;  %v180_v26 = vadd.f32 %v309_v16, %v179_v24  ;;  %v151_v27 = vpop.f32.mrf.mxu0  ;;  %v161_v28 = vpop.f32.mrf.mxu1 }
  0xa0   :  { %v152_v29 = vadd.f32 %v309_v16, %v151_v27  ;;  %v162_v30 = vadd.f32 %v309_v16, %v161_v28 }
  0xa1   :  { %v197_v31 = vmax.f32 %v170_v25, 0.0  ;;  %v201_v32 = vmax.f32 %v180_v26, 0.0 }
  0xa2   :  { %v190_v33 = vmax.f32 %v152_v29, 0.0  ;;  %v194_v34 = vmax.f32 %v162_v30, 0.0 }
  0xa3   :  { %214 = vst.msk [vmem:[%s447_s3 + $0x40] sm:$0xff] %vm205_vm2, %v197_v31 }
  0xa4   :  { %218 = vst.msk [vmem:[%s447_s3 + $0x60] sm:$0xff] %vm205_vm2, %v201_v32 }
  0xa5   :  { %207 = vst.msk [vmem:[%s447_s3 + $0x8] sm:$0xff] %vm205_vm2, %v190_v33 }
  0xa6   :  { %211 = vst.msk [vmem:[%s447_s3 + $0x28] sm:$0xff] %vm205_vm2, %v194_v34  ;;  %v171_v35 = vpop.f32.mrf.mxu2  ;;  %v181_v36 = vpop.f32.mrf.mxu3 }
  0xa7   :  { %v172_v37 = vadd.f32 %v309_v16, %v171_v35  ;;  %v182_v38 = vadd.f32 %v309_v16, %v181_v36  ;;  %v154_v39 = vpop.f32.mrf.mxu0  ;;  %v164_v40 = vpop.f32.mrf.mxu1 }
  0xa8   :  { %v155_v41 = vadd.f32 %v309_v16, %v154_v39  ;;  %v165_v42 = vadd.f32 %v309_v16, %v164_v40 }
  0xa9   :  { %v198_v43 = vmax.f32 %v172_v37, 0.0  ;;  %v202_v44 = vmax.f32 %v182_v38, 0.0 }
  0xaa   :  { %v191_v45 = vmax.f32 %v155_v41, 0.0  ;;  %v195_v46 = vmax.f32 %v165_v42, 0.0 }
  0xab   :  { %215 = vst.msk [vmem:[%s447_s3 + $0x48] sm:$0xff] %vm205_vm2, %v198_v43 }
  0xac   :  { %219 = vst.msk [vmem:[%s447_s3 + $0x68] sm:$0xff] %vm205_vm2, %v202_v44 }
  0xad   :  { %208 = vst.msk [vmem:[%s447_s3 + $0x10] sm:$0xff] %vm205_vm2, %v191_v45 }
  0xae   :  { %212 = vst.msk [vmem:[%s447_s3 + $0x30] sm:$0xff] %vm205_vm2, %v195_v46  ;;  %v174_v47 = vpop.f32.mrf.mxu2  ;;  %v184_v48 = vpop.f32.mrf.mxu3 }
  0xaf   :  { %v175_v49 = vadd.f32 %v309_v16, %v174_v47  ;;  %v185_v50 = vadd.f32 %v309_v16, %v184_v48  ;;  %v156_v51 = vpop.f32.mrf.mxu0  ;;  %v166_v52 = vpop.f32.mrf.mxu1 }
  0xb0   :  { %v157_v53 = vadd.f32 %v309_v16, %v156_v51  ;;  %v167_v54 = vadd.f32 %v309_v16, %v166_v52 }
  0xb1   :  { %v199_v55 = vmax.f32 %v175_v49, 0.0  ;;  %v203_v56 = vmax.f32 %v185_v50, 0.0 }
  0xb2   :  { %v192_v57 = vmax.f32 %v157_v53, 0.0  ;;  %v196_v58 = vmax.f32 %v167_v54, 0.0 }
  0xb3   :  { %216 = vst.msk [vmem:[%s447_s3 + $0x50] sm:$0xff] %vm205_vm2, %v199_v55 }
  0xb4   :  { %220 = vst.msk [vmem:[%s447_s3 + $0x70] sm:$0xff] %vm205_vm2, %v203_v56 }
  0xb5   :  { %209 = vst.msk [vmem:[%s447_s3 + $0x18] sm:$0xff] %vm205_vm2, %v192_v57 }
  0xb6   :  { %213 = vst.msk [vmem:[%s447_s3 + $0x38] sm:$0xff] %vm205_vm2, %v196_v58  ;;  %v176_v59 = vpop.f32.mrf.mxu2  ;;  %v186_v60 = vpop.f32.mrf.mxu3 }
  0xb7   :  { %v177_v61 = vadd.f32 %v309_v16, %v176_v59  ;;  %v187_v62 = vadd.f32 %v309_v16, %v186_v60 }
  0xb9   :  { %v200_v63 = vmax.f32 %v177_v61, 0.0  ;;  %v204_v0 = vmax.f32 %v187_v62, 0.0 }
  0xbb   :  { %217 = vst.msk [vmem:[%s447_s3 + $0x58] sm:$0xff] %vm205_vm2, %v200_v63 }
  0xbc   :  { %221 = vst.msk [vmem:[%s447_s3 + $0x78] sm:$0xff] %vm205_vm2, %v204_v0 }

// kernel: _lambda_.34
= control target key start
LH: loop header
LB: loop body
LE: loop exit
PB: predicated region body
PF: predicated region fallthrough
CT: control target
= control target key end

     0   :  { %vm376_vm0 = vcmask 1043456   ;;  %vm279_vm1 = vcmask 588800   ;;  %vm613_vm2 = vcmask 64512   ;;  %s1398_s1 = inlined_call_operand.vmem [shape: bf16[72,8], index: 1, kind: input, shape index: {}]   ;;  %s1399_s2 = inlined_call_operand.vmem [shape: f32[1,8], index: 2, kind: input, shape index: {}]   ;;  %s1400_s0 = inlined_call_operand.vmem [shape: bf16[512,72], index: 0, kind: input, shape index: {}]   ;;  %s1401_s3 = inlined_call_operand.vmem [shape: f32[512,8], index: 3, kind: output, shape index: {}]  }
   0x1   :  { %v87_v0 = vld [vmem:[%s1398_s1 + $0x20] sm:$0xf]  ;;  %v893_v4 = vld [vmem:[%s1398_s1 + $0x18] sm:$0xff]  ;;  %v892_v5 = vld [vmem:[%s1398_s1 + $0x10] sm:$0xff] }
   0x2   :  { %v269_v1 = vunpack.c.l.b16 %v87_v0  ;;  %v891_v6 = vld [vmem:[%s1398_s1 + $0x8] sm:$0xff]  ;;  %v890_v7 = vld [vmem:[%s1398_s1] sm:$0xff]  ;;  %v860_v16 = vld [vmem:[%s1400_s0 + $0x10] sm:$0xff] }
   0x3   :  { %v858_v8 = vld [vmem:[%s1400_s0] sm:$0xff]  ;;  %v859_v12 = vld [vmem:[%s1400_s0 + $0x8] sm:$0xff]  ;;  %v868_v17 = vld [vmem:[%s1400_s0 + $0x50] sm:$0xff] }
   0x4   :  { %v274_v2 = vpack.c.b16 %v269_v1, %v269_v1  ;;  %v866_v9 = vld [vmem:[%s1400_s0 + $0x40] sm:$0xff]  ;;  %v867_v13 = vld [vmem:[%s1400_s0 + $0x48] sm:$0xff]  ;;  %v876_v18 = vld [vmem:[%s1400_s0 + $0x90] sm:$0xff] }
   0x5   :  { %v874_v10 = vld [vmem:[%s1400_s0 + $0x80] sm:$0xff]  ;;  %v875_v14 = vld [vmem:[%s1400_s0 + $0x88] sm:$0xff]  ;;  %v884_v19 = vld [vmem:[%s1400_s0 + $0xd0] sm:$0xff] }
   0x6   :  { %v378_v3 = vsel %vm376_vm0, %v274_v2, 0  ;;  %v882_v11 = vld [vmem:[%s1400_s0 + $0xc0] sm:$0xff]  ;;  %v883_v15 = vld [vmem:[%s1400_s0 + $0xc8] sm:$0xff]  ;;  %v861_v20 = vld [vmem:[%s1400_s0 + $0x18] sm:$0xff] }
   0x7   :  { %383 = vmatpush.bf16.msra.mxu0 %v378_v3  ;;  %894 = vmatpush.bf16.msra.mxu1 %v378_v3  ;;  %v869_v21 = vld [vmem:[%s1400_s0 + $0x58] sm:$0xff]  ;;  %v862_v24 = vld [vmem:[%s1400_s0 + $0x20] sm:$0xff]  ;;  %v863_v28 = vld [vmem:[%s1400_s0 + $0x28] sm:$0xff] }
   0x8   :  { %895 = vmatpush.bf16.msra.mxu2 %v378_v3  ;;  %896 = vmatpush.bf16.msra.mxu3 %v378_v3  ;;  %v877_v22 = vld [vmem:[%s1400_s0 + $0x98] sm:$0xff]  ;;  %v870_v25 = vld [vmem:[%s1400_s0 + $0x60] sm:$0xff]  ;;  %v871_v29 = vld [vmem:[%s1400_s0 + $0x68] sm:$0xff] }
   0x9   :  { %v885_v23 = vld [vmem:[%s1400_s0 + $0xd8] sm:$0xff]  ;;  %v878_v26 = vld [vmem:[%s1400_s0 + $0xa0] sm:$0xff]  ;;  %v879_v30 = vld [vmem:[%s1400_s0 + $0xa8] sm:$0xff] }
   0xa   :  { %v886_v27 = vld [vmem:[%s1400_s0 + $0xe0] sm:$0xff]  ;;  %v887_v31 = vld [vmem:[%s1400_s0 + $0xe8] sm:$0xff]  ;;  %v864_v32 = vld [vmem:[%s1400_s0 + $0x30] sm:$0xff] }
   0xb   :  { %384 = vmatpush.bf16.msra.mxu0 %v893_v4  ;;  %897 = vmatpush.bf16.msra.mxu1 %v893_v4  ;;  %v872_v33 = vld [vmem:[%s1400_s0 + $0x70] sm:$0xff]  ;;  %v865_v36 = vld [vmem:[%s1400_s0 + $0x38] sm:$0xff]  ;;  %v1076_v40 = vld [vmem:[%s1399_s2] ss:$0 sm:$0xff] }
   0xc   :  { %898 = vmatpush.bf16.msra.mxu2 %v893_v4  ;;  %899 = vmatpush.bf16.msra.mxu3 %v893_v4  ;;  %v880_v34 = vld [vmem:[%s1400_s0 + $0xb0] sm:$0xff]  ;;  %v873_v37 = vld [vmem:[%s1400_s0 + $0x78] sm:$0xff] }
   0xd   :  { %v888_v35 = vld [vmem:[%s1400_s0 + $0xf0] sm:$0xff]  ;;  %v881_v38 = vld [vmem:[%s1400_s0 + $0xb8] sm:$0xff] }
   0xe   :  { %v889_v39 = vld [vmem:[%s1400_s0 + $0xf8] sm:$0xff] }
   0xf   :  { %385 = vmatpush.bf16.msra.mxu0 %v892_v5  ;;  %900 = vmatpush.bf16.msra.mxu1 %v892_v5 }
  0x10   :  { %901 = vmatpush.bf16.msra.mxu2 %v892_v5  ;;  %902 = vmatpush.bf16.msra.mxu3 %v892_v5 }
  0x13   :  { %386 = vmatpush.bf16.msra.mxu0 %v891_v6  ;;  %903 = vmatpush.bf16.msra.mxu1 %v891_v6 }
  0x14   :  { %904 = vmatpush.bf16.msra.mxu2 %v891_v6  ;;  %905 = vmatpush.bf16.msra.mxu3 %v891_v6 }
  0x17   :  { %387 = vmatpush.bf16.msra.mxu0 %v890_v7  ;;  %906 = vmatpush.bf16.msra.mxu1 %v890_v7 }
  0x18   :  { %907 = vmatpush.bf16.msra.mxu2 %v890_v7  ;;  %908 = vmatpush.bf16.msra.mxu3 %v890_v7 }
  0x1a   :  { %826 = vmatmul.msk.bf16.vlgmr.msra.gmra.mxu0 %vm279_vm1, %v858_v8  ;;  %834 = vmatmul.msk.bf16.vlgmr.msra.gmra.mxu1 %vm279_vm1, %v866_v9 }
  0x1b   :  { %842 = vmatmul.msk.bf16.vlgmr.msra.gmra.mxu2 %vm279_vm1, %v874_v10  ;;  %850 = vmatmul.msk.bf16.vlgmr.msra.gmra.mxu3 %vm279_vm1, %v882_v11 }
  0x2a   :  { %827 = vmatmul.msk.bf16.gmra.mxu0 %vm279_vm1, %v859_v12  ;;  %835 = vmatmul.msk.bf16.gmra.mxu1 %vm279_vm1, %v867_v13 }
  0x2b   :  { %843 = vmatmul.msk.bf16.gmra.mxu2 %vm279_vm1, %v875_v14  ;;  %851 = vmatmul.msk.bf16.gmra.mxu3 %vm279_vm1, %v883_v15 }
  0x3a   :  { %828 = vmatmul.msk.bf16.gmra.mxu0 %vm279_vm1, %v860_v16  ;;  %836 = vmatmul.msk.bf16.gmra.mxu1 %vm279_vm1, %v868_v17 }
  0x3b   :  { %844 = vmatmul.msk.bf16.gmra.mxu2 %vm279_vm1, %v876_v18  ;;  %852 = vmatmul.msk.bf16.gmra.mxu3 %vm279_vm1, %v884_v19 }
  0x4a   :  { %829 = vmatmul.msk.bf16.gmra.mxu0 %vm279_vm1, %v861_v20  ;;  %837 = vmatmul.msk.bf16.gmra.mxu1 %vm279_vm1, %v869_v21 }
  0x4b   :  { %845 = vmatmul.msk.bf16.gmra.mxu2 %vm279_vm1, %v877_v22  ;;  %853 = vmatmul.msk.bf16.gmra.mxu3 %vm279_vm1, %v885_v23 }
  0x5a   :  { %830 = vmatmul.msk.bf16.gmra.mxu0 %vm279_vm1, %v862_v24  ;;  %838 = vmatmul.msk.bf16.gmra.mxu1 %vm279_vm1, %v870_v25 }
  0x5b   :  { %846 = vmatmul.msk.bf16.gmra.mxu2 %vm279_vm1, %v878_v26  ;;  %854 = vmatmul.msk.bf16.gmra.mxu3 %vm279_vm1, %v886_v27 }
  0x6a   :  { %831 = vmatmul.msk.bf16.gmra.mxu0 %vm279_vm1, %v863_v28  ;;  %839 = vmatmul.msk.bf16.gmra.mxu1 %vm279_vm1, %v871_v29 }
  0x6b   :  { %847 = vmatmul.msk.bf16.gmra.mxu2 %vm279_vm1, %v879_v30  ;;  %855 = vmatmul.msk.bf16.gmra.mxu3 %vm279_vm1, %v887_v31 }
  0x7a   :  { %832 = vmatmul.msk.bf16.gmra.mxu0 %vm279_vm1, %v864_v32  ;;  %840 = vmatmul.msk.bf16.gmra.mxu1 %vm279_vm1, %v872_v33 }
  0x7b   :  { %848 = vmatmul.msk.bf16.gmra.mxu2 %vm279_vm1, %v880_v34  ;;  %856 = vmatmul.msk.bf16.gmra.mxu3 %vm279_vm1, %v888_v35 }
  0x8a   :  { %833 = vmatmul.msk.bf16.gmra.mxu0 %vm279_vm1, %v865_v36  ;;  %841 = vmatmul.msk.bf16.gmra.mxu1 %vm279_vm1, %v873_v37 }
  0x8b   :  { %849 = vmatmul.msk.bf16.gmra.mxu2 %vm279_vm1, %v881_v38  ;;  %857 = vmatmul.msk.bf16.gmra.mxu3 %vm279_vm1, %v889_v39 }
  0x97   :  { %v389_v41 = vpop.f32.mrf.mxu0  ;;  %v429_v42 = vpop.f32.mrf.mxu1 }
  0x98   :  { %v390_v43 = vadd.f32 %v1076_v40, %v389_v41  ;;  %v430_v44 = vadd.f32 %v1076_v40, %v429_v42 }
  0x9a   :  { %v549_v45 = vmax.f32 %v390_v43, 0.0  ;;  %v565_v46 = vmax.f32 %v430_v44, 0.0 }
  0x9c   :  { %614 = vst.msk [vmem:[%s1401_s3] sm:$0xff] %vm613_vm2, %v549_v45 }
  0x9d   :  { %630 = vst.msk [vmem:[%s1401_s3 + $0x80] sm:$0xff] %vm613_vm2, %v565_v46 }
  0x9e   :  { %v469_v47 = vpop.f32.mrf.mxu2  ;;  %v509_v48 = vpop.f32.mrf.mxu3 }
  0x9f   :  { %v470_v49 = vadd.f32 %v1076_v40, %v469_v47  ;;  %v510_v50 = vadd.f32 %v1076_v40, %v509_v48  ;;  %v391_v51 = vpop.f32.mrf.mxu0  ;;  %v431_v52 = vpop.f32.mrf.mxu1 }
  0xa0   :  { %v392_v53 = vadd.f32 %v1076_v40, %v391_v51  ;;  %v432_v54 = vadd.f32 %v1076_v40, %v431_v52 }
  0xa1   :  { %v581_v55 = vmax.f32 %v470_v49, 0.0  ;;  %v597_v56 = vmax.f32 %v510_v50, 0.0 }
  0xa2   :  { %v550_v57 = vmax.f32 %v392_v53, 0.0  ;;  %v566_v58 = vmax.f32 %v432_v54, 0.0 }
  0xa3   :  { %646 = vst.msk [vmem:[%s1401_s3 + $0x100] sm:$0xff] %vm613_vm2, %v581_v55 }
  0xa4   :  { %662 = vst.msk [vmem:[%s1401_s3 + $0x180] sm:$0xff] %vm613_vm2, %v597_v56 }
  0xa5   :  { %615 = vst.msk [vmem:[%s1401_s3 + $0x8] sm:$0xff] %vm613_vm2, %v550_v57 }
  0xa6   :  { %631 = vst.msk [vmem:[%s1401_s3 + $0x88] sm:$0xff] %vm613_vm2, %v566_v58  ;;  %v471_v59 = vpop.f32.mrf.mxu2  ;;  %v511_v60 = vpop.f32.mrf.mxu3 }
  0xa7   :  { %v472_v61 = vadd.f32 %v1076_v40, %v471_v59  ;;  %v512_v62 = vadd.f32 %v1076_v40, %v511_v60  ;;  %v394_v63 = vpop.f32.mrf.mxu0  ;;  %v434_v0 = vpop.f32.mrf.mxu1 }
  0xa8   :  { %v395_v1 = vadd.f32 %v1076_v40, %v394_v63  ;;  %v435_v2 = vadd.f32 %v1076_v40, %v434_v0 }
  0xa9   :  { %v582_v3 = vmax.f32 %v472_v61, 0.0  ;;  %v598_v4 = vmax.f32 %v512_v62, 0.0 }
  0xaa   :  { %v551_v5 = vmax.f32 %v395_v1, 0.0  ;;  %v567_v6 = vmax.f32 %v435_v2, 0.0 }
  0xab   :  { %647 = vst.msk [vmem:[%s1401_s3 + $0x108] sm:$0xff] %vm613_vm2, %v582_v3 }
  0xac   :  { %663 = vst.msk [vmem:[%s1401_s3 + $0x188] sm:$0xff] %vm613_vm2, %v598_v4 }
  0xad   :  { %616 = vst.msk [vmem:[%s1401_s3 + $0x10] sm:$0xff] %vm613_vm2, %v551_v5 }
  0xae   :  { %632 = vst.msk [vmem:[%s1401_s3 + $0x90] sm:$0xff] %vm613_vm2, %v567_v6  ;;  %v474_v7 = vpop.f32.mrf.mxu2  ;;  %v514_v8 = vpop.f32.mrf.mxu3 }
  0xaf   :  { %v475_v9 = vadd.f32 %v1076_v40, %v474_v7  ;;  %v515_v10 = vadd.f32 %v1076_v40, %v514_v8  ;;  %v396_v11 = vpop.f32.mrf.mxu0  ;;  %v436_v12 = vpop.f32.mrf.mxu1 }
  0xb0   :  { %v397_v13 = vadd.f32 %v1076_v40, %v396_v11  ;;  %v437_v14 = vadd.f32 %v1076_v40, %v436_v12 }
  0xb1   :  { %v583_v15 = vmax.f32 %v475_v9, 0.0  ;;  %v599_v16 = vmax.f32 %v515_v10, 0.0 }
  0xb2   :  { %v552_v17 = vmax.f32 %v397_v13, 0.0  ;;  %v568_v18 = vmax.f32 %v437_v14, 0.0 }
  0xb3   :  { %648 = vst.msk [vmem:[%s1401_s3 + $0x110] sm:$0xff] %vm613_vm2, %v583_v15 }
  0xb4   :  { %664 = vst.msk [vmem:[%s1401_s3 + $0x190] sm:$0xff] %vm613_vm2, %v599_v16 }
  0xb5   :  { %617 = vst.msk [vmem:[%s1401_s3 + $0x18] sm:$0xff] %vm613_vm2, %v552_v17 }
  0xb6   :  { %633 = vst.msk [vmem:[%s1401_s3 + $0x98] sm:$0xff] %vm613_vm2, %v568_v18  ;;  %v476_v19 = vpop.f32.mrf.mxu2  ;;  %v516_v20 = vpop.f32.mrf.mxu3 }
  0xb7   :  { %v477_v21 = vadd.f32 %v1076_v40, %v476_v19  ;;  %v517_v22 = vadd.f32 %v1076_v40, %v516_v20  ;;  %v399_v23 = vpop.f32.mrf.mxu0  ;;  %v439_v24 = vpop.f32.mrf.mxu1 }
  0xb8   :  { %v400_v25 = vadd.f32 %v1076_v40, %v399_v23  ;;  %v440_v26 = vadd.f32 %v1076_v40, %v439_v24 }
  0xb9   :  { %v584_v27 = vmax.f32 %v477_v21, 0.0  ;;  %v600_v28 = vmax.f32 %v517_v22, 0.0 }
  0xba   :  { %v553_v29 = vmax.f32 %v400_v25, 0.0  ;;  %v569_v30 = vmax.f32 %v440_v26, 0.0 }
  0xbb   :  { %649 = vst.msk [vmem:[%s1401_s3 + $0x118] sm:$0xff] %vm613_vm2, %v584_v27 }
  0xbc   :  { %665 = vst.msk [vmem:[%s1401_s3 + $0x198] sm:$0xff] %vm613_vm2, %v600_v28 }
  0xbd   :  { %618 = vst.msk [vmem:[%s1401_s3 + $0x20] sm:$0xff] %vm613_vm2, %v553_v29 }
  0xbe   :  { %634 = vst.msk [vmem:[%s1401_s3 + $0xa0] sm:$0xff] %vm613_vm2, %v569_v30  ;;  %v479_v31 = vpop.f32.mrf.mxu2  ;;  %v519_v32 = vpop.f32.mrf.mxu3 }
  0xbf   :  { %v480_v33 = vadd.f32 %v1076_v40, %v479_v31  ;;  %v520_v34 = vadd.f32 %v1076_v40, %v519_v32  ;;  %v401_v35 = vpop.f32.mrf.mxu0  ;;  %v441_v36 = vpop.f32.mrf.mxu1 }
  0xc0   :  { %v402_v37 = vadd.f32 %v1076_v40, %v401_v35  ;;  %v442_v38 = vadd.f32 %v1076_v40, %v441_v36 }
  0xc1   :  { %v585_v39 = vmax.f32 %v480_v33, 0.0  ;;  %v601_v41 = vmax.f32 %v520_v34, 0.0 }
  0xc2   :  { %v554_v42 = vmax.f32 %v402_v37, 0.0  ;;  %v570_v43 = vmax.f32 %v442_v38, 0.0 }
  0xc3   :  { %650 = vst.msk [vmem:[%s1401_s3 + $0x120] sm:$0xff] %vm613_vm2, %v585_v39 }
  0xc4   :  { %666 = vst.msk [vmem:[%s1401_s3 + $0x1a0] sm:$0xff] %vm613_vm2, %v601_v41 }
  0xc5   :  { %619 = vst.msk [vmem:[%s1401_s3 + $0x28] sm:$0xff] %vm613_vm2, %v554_v42 }
  0xc6   :  { %635 = vst.msk [vmem:[%s1401_s3 + $0xa8] sm:$0xff] %vm613_vm2, %v570_v43  ;;  %v481_v44 = vpop.f32.mrf.mxu2  ;;  %v521_v45 = vpop.f32.mrf.mxu3 }
  0xc7   :  { %v482_v46 = vadd.f32 %v1076_v40, %v481_v44  ;;  %v522_v47 = vadd.f32 %v1076_v40, %v521_v45  ;;  %v404_v48 = vpop.f32.mrf.mxu0  ;;  %v444_v49 = vpop.f32.mrf.mxu1 }
  0xc8   :  { %v405_v50 = vadd.f32 %v1076_v40, %v404_v48  ;;  %v445_v51 = vadd.f32 %v1076_v40, %v444_v49 }
  0xc9   :  { %v586_v52 = vmax.f32 %v482_v46, 0.0  ;;  %v602_v53 = vmax.f32 %v522_v47, 0.0 }
  0xca   :  { %v555_v54 = vmax.f32 %v405_v50, 0.0  ;;  %v571_v55 = vmax.f32 %v445_v51, 0.0 }
  0xcb   :  { %651 = vst.msk [vmem:[%s1401_s3 + $0x128] sm:$0xff] %vm613_vm2, %v586_v52 }
  0xcc   :  { %667 = vst.msk [vmem:[%s1401_s3 + $0x1a8] sm:$0xff] %vm613_vm2, %v602_v53 }
  0xcd   :  { %620 = vst.msk [vmem:[%s1401_s3 + $0x30] sm:$0xff] %vm613_vm2, %v555_v54 }
  0xce   :  { %636 = vst.msk [vmem:[%s1401_s3 + $0xb0] sm:$0xff] %vm613_vm2, %v571_v55  ;;  %v484_v56 = vpop.f32.mrf.mxu2  ;;  %v524_v57 = vpop.f32.mrf.mxu3 }
  0xcf   :  { %v485_v58 = vadd.f32 %v1076_v40, %v484_v56  ;;  %v525_v59 = vadd.f32 %v1076_v40, %v524_v57  ;;  %v406_v60 = vpop.f32.mrf.mxu0  ;;  %v446_v61 = vpop.f32.mrf.mxu1 }
  0xd0   :  { %v407_v62 = vadd.f32 %v1076_v40, %v406_v60  ;;  %v447_v63 = vadd.f32 %v1076_v40, %v446_v61 }
  0xd1   :  { %v587_v0 = vmax.f32 %v485_v58, 0.0  ;;  %v603_v1 = vmax.f32 %v525_v59, 0.0 }
  0xd2   :  { %v556_v2 = vmax.f32 %v407_v62, 0.0  ;;  %v572_v3 = vmax.f32 %v447_v63, 0.0 }
  0xd3   :  { %652 = vst.msk [vmem:[%s1401_s3 + $0x130] sm:$0xff] %vm613_vm2, %v587_v0 }
  0xd4   :  { %668 = vst.msk [vmem:[%s1401_s3 + $0x1b0] sm:$0xff] %vm613_vm2, %v603_v1 }
  0xd5   :  { %621 = vst.msk [vmem:[%s1401_s3 + $0x38] sm:$0xff] %vm613_vm2, %v556_v2 }
  0xd6   :  { %637 = vst.msk [vmem:[%s1401_s3 + $0xb8] sm:$0xff] %vm613_vm2, %v572_v3  ;;  %v486_v4 = vpop.f32.mrf.mxu2  ;;  %v526_v5 = vpop.f32.mrf.mxu3 }
  0xd7   :  { %v487_v6 = vadd.f32 %v1076_v40, %v486_v4  ;;  %v527_v7 = vadd.f32 %v1076_v40, %v526_v5  ;;  %v409_v8 = vpop.f32.mrf.mxu0  ;;  %v449_v9 = vpop.f32.mrf.mxu1 }
  0xd8   :  { %v410_v10 = vadd.f32 %v1076_v40, %v409_v8  ;;  %v450_v11 = vadd.f32 %v1076_v40, %v449_v9 }
  0xd9   :  { %v588_v12 = vmax.f32 %v487_v6, 0.0  ;;  %v604_v13 = vmax.f32 %v527_v7, 0.0 }
  0xda   :  { %v557_v14 = vmax.f32 %v410_v10, 0.0  ;;  %v573_v15 = vmax.f32 %v450_v11, 0.0 }
  0xdb   :  { %653 = vst.msk [vmem:[%s1401_s3 + $0x138] sm:$0xff] %vm613_vm2, %v588_v12 }
  0xdc   :  { %669 = vst.msk [vmem:[%s1401_s3 + $0x1b8] sm:$0xff] %vm613_vm2, %v604_v13 }
  0xdd   :  { %622 = vst.msk [vmem:[%s1401_s3 + $0x40] sm:$0xff] %vm613_vm2, %v557_v14 }
  0xde   :  { %638 = vst.msk [vmem:[%s1401_s3 + $0xc0] sm:$0xff] %vm613_vm2, %v573_v15  ;;  %v489_v16 = vpop.f32.mrf.mxu2  ;;  %v529_v17 = vpop.f32.mrf.mxu3 }
  0xdf   :  { %v490_v18 = vadd.f32 %v1076_v40, %v489_v16  ;;  %v530_v19 = vadd.f32 %v1076_v40, %v529_v17  ;;  %v411_v20 = vpop.f32.mrf.mxu0  ;;  %v451_v21 = vpop.f32.mrf.mxu1 }
  0xe0   :  { %v412_v22 = vadd.f32 %v1076_v40, %v411_v20  ;;  %v452_v23 = vadd.f32 %v1076_v40, %v451_v21 }
  0xe1   :  { %v589_v24 = vmax.f32 %v490_v18, 0.0  ;;  %v605_v25 = vmax.f32 %v530_v19, 0.0 }
  0xe2   :  { %v558_v26 = vmax.f32 %v412_v22, 0.0  ;;  %v574_v27 = vmax.f32 %v452_v23, 0.0 }
  0xe3   :  { %654 = vst.msk [vmem:[%s1401_s3 + $0x140] sm:$0xff] %vm613_vm2, %v589_v24 }
  0xe4   :  { %670 = vst.msk [vmem:[%s1401_s3 + $0x1c0] sm:$0xff] %vm613_vm2, %v605_v25 }
  0xe5   :  { %623 = vst.msk [vmem:[%s1401_s3 + $0x48] sm:$0xff] %vm613_vm2, %v558_v26 }
  0xe6   :  { %639 = vst.msk [vmem:[%s1401_s3 + $0xc8] sm:$0xff] %vm613_vm2, %v574_v27  ;;  %v491_v28 = vpop.f32.mrf.mxu2  ;;  %v531_v29 = vpop.f32.mrf.mxu3 }
  0xe7   :  { %v492_v30 = vadd.f32 %v1076_v40, %v491_v28  ;;  %v532_v31 = vadd.f32 %v1076_v40, %v531_v29  ;;  %v414_v32 = vpop.f32.mrf.mxu0  ;;  %v454_v33 = vpop.f32.mrf.mxu1 }
  0xe8   :  { %v415_v34 = vadd.f32 %v1076_v40, %v414_v32  ;;  %v455_v35 = vadd.f32 %v1076_v40, %v454_v33 }
  0xe9   :  { %v590_v36 = vmax.f32 %v492_v30, 0.0  ;;  %v606_v37 = vmax.f32 %v532_v31, 0.0 }
  0xea   :  { %v559_v38 = vmax.f32 %v415_v34, 0.0  ;;  %v575_v39 = vmax.f32 %v455_v35, 0.0 }
  0xeb   :  { %655 = vst.msk [vmem:[%s1401_s3 + $0x148] sm:$0xff] %vm613_vm2, %v590_v36 }
  0xec   :  { %671 = vst.msk [vmem:[%s1401_s3 + $0x1c8] sm:$0xff] %vm613_vm2, %v606_v37 }
  0xed   :  { %624 = vst.msk [vmem:[%s1401_s3 + $0x50] sm:$0xff] %vm613_vm2, %v559_v38 }
  0xee   :  { %640 = vst.msk [vmem:[%s1401_s3 + $0xd0] sm:$0xff] %vm613_vm2, %v575_v39  ;;  %v494_v41 = vpop.f32.mrf.mxu2  ;;  %v534_v42 = vpop.f32.mrf.mxu3 }
  0xef   :  { %v495_v43 = vadd.f32 %v1076_v40, %v494_v41  ;;  %v535_v44 = vadd.f32 %v1076_v40, %v534_v42  ;;  %v416_v45 = vpop.f32.mrf.mxu0  ;;  %v456_v46 = vpop.f32.mrf.mxu1 }
  0xf0   :  { %v417_v47 = vadd.f32 %v1076_v40, %v416_v45  ;;  %v457_v48 = vadd.f32 %v1076_v40, %v456_v46 }
  0xf1   :  { %v591_v49 = vmax.f32 %v495_v43, 0.0  ;;  %v607_v50 = vmax.f32 %v535_v44, 0.0 }
  0xf2   :  { %v560_v51 = vmax.f32 %v417_v47, 0.0  ;;  %v576_v52 = vmax.f32 %v457_v48, 0.0 }
  0xf3   :  { %656 = vst.msk [vmem:[%s1401_s3 + $0x150] sm:$0xff] %vm613_vm2, %v591_v49 }
  0xf4   :  { %672 = vst.msk [vmem:[%s1401_s3 + $0x1d0] sm:$0xff] %vm613_vm2, %v607_v50 }
  0xf5   :  { %625 = vst.msk [vmem:[%s1401_s3 + $0x58] sm:$0xff] %vm613_vm2, %v560_v51 }
  0xf6   :  { %641 = vst.msk [vmem:[%s1401_s3 + $0xd8] sm:$0xff] %vm613_vm2, %v576_v52  ;;  %v496_v53 = vpop.f32.mrf.mxu2  ;;  %v536_v54 = vpop.f32.mrf.mxu3 }
  0xf7   :  { %v497_v55 = vadd.f32 %v1076_v40, %v496_v53  ;;  %v537_v56 = vadd.f32 %v1076_v40, %v536_v54  ;;  %v419_v57 = vpop.f32.mrf.mxu0  ;;  %v459_v58 = vpop.f32.mrf.mxu1 }
  0xf8   :  { %v420_v59 = vadd.f32 %v1076_v40, %v419_v57  ;;  %v460_v60 = vadd.f32 %v1076_v40, %v459_v58 }
  0xf9   :  { %v592_v61 = vmax.f32 %v497_v55, 0.0  ;;  %v608_v62 = vmax.f32 %v537_v56, 0.0 }
  0xfa   :  { %v561_v63 = vmax.f32 %v420_v59, 0.0  ;;  %v577_v0 = vmax.f32 %v460_v60, 0.0 }
  0xfb   :  { %657 = vst.msk [vmem:[%s1401_s3 + $0x158] sm:$0xff] %vm613_vm2, %v592_v61 }
  0xfc   :  { %673 = vst.msk [vmem:[%s1401_s3 + $0x1d8] sm:$0xff] %vm613_vm2, %v608_v62 }
  0xfd   :  { %626 = vst.msk [vmem:[%s1401_s3 + $0x60] sm:$0xff] %vm613_vm2, %v561_v63 }
  0xfe   :  { %642 = vst.msk [vmem:[%s1401_s3 + $0xe0] sm:$0xff] %vm613_vm2, %v577_v0  ;;  %v499_v1 = vpop.f32.mrf.mxu2  ;;  %v539_v2 = vpop.f32.mrf.mxu3 }
  0xff   :  { %v500_v3 = vadd.f32 %v1076_v40, %v499_v1  ;;  %v540_v4 = vadd.f32 %v1076_v40, %v539_v2  ;;  %v421_v5 = vpop.f32.mrf.mxu0  ;;  %v461_v6 = vpop.f32.mrf.mxu1 }
 0x100   :  { %v422_v7 = vadd.f32 %v1076_v40, %v421_v5  ;;  %v462_v8 = vadd.f32 %v1076_v40, %v461_v6 }
 0x101   :  { %v593_v9 = vmax.f32 %v500_v3, 0.0  ;;  %v609_v10 = vmax.f32 %v540_v4, 0.0 }
 0x102   :  { %v562_v11 = vmax.f32 %v422_v7, 0.0  ;;  %v578_v12 = vmax.f32 %v462_v8, 0.0 }
 0x103   :  { %658 = vst.msk [vmem:[%s1401_s3 + $0x160] sm:$0xff] %vm613_vm2, %v593_v9 }
 0x104   :  { %674 = vst.msk [vmem:[%s1401_s3 + $0x1e0] sm:$0xff] %vm613_vm2, %v609_v10 }
 0x105   :  { %627 = vst.msk [vmem:[%s1401_s3 + $0x68] sm:$0xff] %vm613_vm2, %v562_v11 }
 0x106   :  { %643 = vst.msk [vmem:[%s1401_s3 + $0xe8] sm:$0xff] %vm613_vm2, %v578_v12  ;;  %v501_v13 = vpop.f32.mrf.mxu2  ;;  %v541_v14 = vpop.f32.mrf.mxu3 }
 0x107   :  { %v502_v15 = vadd.f32 %v1076_v40, %v501_v13  ;;  %v542_v16 = vadd.f32 %v1076_v40, %v541_v14  ;;  %v424_v17 = vpop.f32.mrf.mxu0  ;;  %v464_v18 = vpop.f32.mrf.mxu1 }
 0x108   :  { %v425_v19 = vadd.f32 %v1076_v40, %v424_v17  ;;  %v465_v20 = vadd.f32 %v1076_v40, %v464_v18 }
 0x109   :  { %v594_v21 = vmax.f32 %v502_v15, 0.0  ;;  %v610_v22 = vmax.f32 %v542_v16, 0.0 }
 0x10a   :  { %v563_v23 = vmax.f32 %v425_v19, 0.0  ;;  %v579_v24 = vmax.f32 %v465_v20, 0.0 }
 0x10b   :  { %659 = vst.msk [vmem:[%s1401_s3 + $0x168] sm:$0xff] %vm613_vm2, %v594_v21 }
 0x10c   :  { %675 = vst.msk [vmem:[%s1401_s3 + $0x1e8] sm:$0xff] %vm613_vm2, %v610_v22 }
 0x10d   :  { %628 = vst.msk [vmem:[%s1401_s3 + $0x70] sm:$0xff] %vm613_vm2, %v563_v23 }
 0x10e   :  { %644 = vst.msk [vmem:[%s1401_s3 + $0xf0] sm:$0xff] %vm613_vm2, %v579_v24  ;;  %v504_v25 = vpop.f32.mrf.mxu2  ;;  %v544_v26 = vpop.f32.mrf.mxu3 }
 0x10f   :  { %v505_v27 = vadd.f32 %v1076_v40, %v504_v25  ;;  %v545_v28 = vadd.f32 %v1076_v40, %v544_v26  ;;  %v426_v29 = vpop.f32.mrf.mxu0  ;;  %v466_v30 = vpop.f32.mrf.mxu1 }
 0x110   :  { %v427_v31 = vadd.f32 %v1076_v40, %v426_v29  ;;  %v467_v32 = vadd.f32 %v1076_v40, %v466_v30 }
 0x111   :  { %v595_v33 = vmax.f32 %v505_v27, 0.0  ;;  %v611_v34 = vmax.f32 %v545_v28, 0.0 }
 0x112   :  { %v564_v35 = vmax.f32 %v427_v31, 0.0  ;;  %v580_v36 = vmax.f32 %v467_v32, 0.0 }
 0x113   :  { %660 = vst.msk [vmem:[%s1401_s3 + $0x170] sm:$0xff] %vm613_vm2, %v595_v33 }
 0x114   :  { %676 = vst.msk [vmem:[%s1401_s3 + $0x1f0] sm:$0xff] %vm613_vm2, %v611_v34 }
 0x115   :  { %629 = vst.msk [vmem:[%s1401_s3 + $0x78] sm:$0xff] %vm613_vm2, %v564_v35 }
 0x116   :  { %645 = vst.msk [vmem:[%s1401_s3 + $0xf8] sm:$0xff] %vm613_vm2, %v580_v36  ;;  %v506_v37 = vpop.f32.mrf.mxu2  ;;  %v546_v38 = vpop.f32.mrf.mxu3 }
 0x117   :  { %v507_v39 = vadd.f32 %v1076_v40, %v506_v37  ;;  %v547_v41 = vadd.f32 %v1076_v40, %v546_v38 }
 0x119   :  { %v596_v42 = vmax.f32 %v507_v39, 0.0  ;;  %v612_v43 = vmax.f32 %v547_v41, 0.0 }
 0x11b   :  { %661 = vst.msk [vmem:[%s1401_s3 + $0x178] sm:$0xff] %vm613_vm2, %v596_v42 }
 0x11c   :  { %677 = vst.msk [vmem:[%s1401_s3 + $0x1f8] sm:$0xff] %vm613_vm2, %v612_v43 }

// kernel: _lambda_.37
= control target key start
LH: loop header
LB: loop body
LE: loop exit
PB: predicated region body
PF: predicated region fallthrough
CT: control target
= control target key end

     0   :  { %vm163_vm0 = vcmask 1043456   ;;  %vm138_vm1 = vcmask 588800   ;;  %vm232_vm2 = vcmask 64512   ;;  %s833_s1 = inlined_call_operand.vmem [shape: bf16[72,8], index: 1, kind: input, shape index: {}]   ;;  %s834_s3 = inlined_call_operand.vmem [shape: bf16[72,8], index: 3, kind: input, shape index: {}]   ;;  %s835_s2 = inlined_call_operand.vmem [shape: f32[1,8], index: 2, kind: input, shape index: {}, may-alias: {2,4}]   ;;  %s836_s0 = inlined_call_operand.vmem [shape: bf16[128,72], index: 0, kind: input, shape index: {}]   ;;  %s837_s4 = inlined_call_operand.vmem [shape: f32[1,8], index: 4, kind: input, shape index: {}, may-alias: {2,4}]   ;;  %s838_s5 = inlined_call_operand.vmem [shape: f32[128,8], index: 5, kind: input, shape index: {}]   ;;  %s839_s6 = inlined_call_operand.vmem [shape: f32[128,8], index: 6, kind: output, shape index: {0}]   ;;  %s840_s7 = inlined_call_operand.vmem [shape: f32[128,8], index: 7, kind: output, shape index: {1}]  }
   0x1   :  { %v66_v0 = vld [vmem:[%s833_s1 + $0x20] sm:$0xf]  ;;  %v488_v8 = vld [vmem:[%s833_s1 + $0x18] sm:$0xff]  ;;  %v487_v10 = vld [vmem:[%s833_s1 + $0x10] sm:$0xff] }
   0x2   :  { %v257_v1 = vld [vmem:[%s834_s3 + $0x20] sm:$0xf]  ;;  %v128_v2 = vunpack.c.l.b16 %v66_v0  ;;  %v492_v9 = vld [vmem:[%s834_s3 + $0x18] sm:$0xff]  ;;  %v491_v11 = vld [vmem:[%s834_s3 + $0x10] sm:$0xff] }
   0x3   :  { %v279_v3 = vunpack.c.l.b16 %v257_v1  ;;  %v486_v12 = vld [vmem:[%s833_s1 + $0x8] sm:$0xff]  ;;  %v485_v14 = vld [vmem:[%s833_s1] sm:$0xff]  ;;  %v479_v20 = vld [vmem:[%s836_s0 + $0x10] sm:$0xff] }
   0x4   :  { %v133_v4 = vpack.c.b16 %v128_v2, %v128_v2  ;;  %v490_v13 = vld [vmem:[%s834_s3 + $0x8] sm:$0xff]  ;;  %v489_v15 = vld [vmem:[%s834_s3] sm:$0xff]  ;;  %v483_v21 = vld [vmem:[%s836_s0 + $0x30] sm:$0xff] }
   0x5   :  { %v284_v5 = vpack.c.b16 %v279_v3, %v279_v3  ;;  %v477_v16 = vld [vmem:[%s836_s0] sm:$0xff]  ;;  %v478_v18 = vld [vmem:[%s836_s0 + $0x8] sm:$0xff]  ;;  %v480_v22 = vld [vmem:[%s836_s0 + $0x18] sm:$0xff] }
   0x6   :  { %v165_v6 = vsel %vm163_vm0, %v133_v4, 0  ;;  %v481_v17 = vld [vmem:[%s836_s0 + $0x20] sm:$0xff]  ;;  %v482_v19 = vld [vmem:[%s836_s0 + $0x28] sm:$0xff]  ;;  %v484_v23 = vld [vmem:[%s836_s0 + $0x38] sm:$0xff] }
   0x7   :  { %v290_v7 = vsel %vm163_vm0, %v284_v5, 0  ;;  %170 = vmatpush.bf16.msra.mxu0 %v165_v6  ;;  %493 = vmatpush.bf16.msra.mxu2 %v165_v6  ;;  %v618_v24 = vld [vmem:[%s835_s2] ss:$0 sm:$0xff]  ;;  %v43_v46 = vld [vmem:[%s838_s5 + $0x8] sm:$0xff]  ;;  %v44_v62 = vld [vmem:[%s838_s5 + $0x10] sm:$0xff] }
   0x8   :  { %295 = vmatpush.bf16.msra.mxu1 %v290_v7  ;;  %498 = vmatpush.bf16.msra.mxu3 %v290_v7  ;;  %v623_v25 = vld [vmem:[%s837_s4] ss:$0 sm:$0xff]  ;;  %v51_v56 = vld [vmem:[%s838_s5 + $0x48] sm:$0xff] }
   0x9   :  { %v42_v31 = vld [vmem:[%s838_s5] sm:$0xff] }
   0xa   :  { %v50_v40 = vld [vmem:[%s838_s5 + $0x40] sm:$0xff] }
   0xb   :  { %171 = vmatpush.bf16.msra.mxu0 %v488_v8  ;;  %494 = vmatpush.bf16.msra.mxu2 %v488_v8  ;;  %v52_v8 = vld [vmem:[%s838_s5 + $0x50] sm:$0xff] }
   0xc   :  { %296 = vmatpush.bf16.msra.mxu1 %v492_v9  ;;  %499 = vmatpush.bf16.msra.mxu3 %v492_v9 }
   0xf   :  { %172 = vmatpush.bf16.msra.mxu0 %v487_v10  ;;  %495 = vmatpush.bf16.msra.mxu2 %v487_v10 }
  0x10   :  { %297 = vmatpush.bf16.msra.mxu1 %v491_v11  ;;  %500 = vmatpush.bf16.msra.mxu3 %v491_v11 }
  0x13   :  { %173 = vmatpush.bf16.msra.mxu0 %v486_v12  ;;  %496 = vmatpush.bf16.msra.mxu2 %v486_v12 }
  0x14   :  { %298 = vmatpush.bf16.msra.mxu1 %v490_v13  ;;  %501 = vmatpush.bf16.msra.mxu3 %v490_v13 }
  0x17   :  { %174 = vmatpush.bf16.msra.mxu0 %v485_v14  ;;  %497 = vmatpush.bf16.msra.mxu2 %v485_v14  ;;  %v45_v14 = vld [vmem:[%s838_s5 + $0x18] sm:$0xff] }
  0x18   :  { %299 = vmatpush.bf16.msra.mxu1 %v489_v15  ;;  %502 = vmatpush.bf16.msra.mxu3 %v489_v15 }
  0x1a   :  { %445 = vmatmul.msk.bf16.vlgmr.msra.gmra.mxu0 %vm138_vm1, %v477_v16  ;;  %449 = vmatmul.msk.bf16.vlgmr.msra.gmra.mxu2 %vm138_vm1, %v481_v17 }
  0x1b   :  { %469 = vmatmul.msk.bf16.vlgmr.msra.gmra.mxu1 %vm138_vm1, %v477_v16  ;;  %473 = vmatmul.msk.bf16.vlgmr.msra.gmra.mxu3 %vm138_vm1, %v481_v17 }
  0x2a   :  { %446 = vmatmul.msk.bf16.gmra.mxu0 %vm138_vm1, %v478_v18  ;;  %450 = vmatmul.msk.bf16.gmra.mxu2 %vm138_vm1, %v482_v19 }
  0x2b   :  { %470 = vmatmul.msk.bf16.gmra.mxu1 %vm138_vm1, %v478_v18  ;;  %474 = vmatmul.msk.bf16.gmra.mxu3 %vm138_vm1, %v482_v19 }
  0x3a   :  { %447 = vmatmul.msk.bf16.gmra.mxu0 %vm138_vm1, %v479_v20  ;;  %451 = vmatmul.msk.bf16.gmra.mxu2 %vm138_vm1, %v483_v21 }
  0x3b   :  { %471 = vmatmul.msk.bf16.gmra.mxu1 %vm138_vm1, %v479_v20  ;;  %475 = vmatmul.msk.bf16.gmra.mxu3 %vm138_vm1, %v483_v21 }
  0x4a   :  { %448 = vmatmul.msk.bf16.gmra.mxu0 %vm138_vm1, %v480_v22  ;;  %452 = vmatmul.msk.bf16.gmra.mxu2 %vm138_vm1, %v484_v23 }
  0x4b   :  { %472 = vmatmul.msk.bf16.gmra.mxu1 %vm138_vm1, %v480_v22  ;;  %476 = vmatmul.msk.bf16.gmra.mxu3 %vm138_vm1, %v484_v23 }
  0x97   :  { %v176_v26 = vpop.f32.mrf.mxu0 }
  0x98   :  { %v177_v27 = vadd.f32 %v618_v24, %v176_v26  ;;  %v301_v28 = vpop.f32.mrf.mxu1  ;;  %v53_v26 = vld [vmem:[%s838_s5 + $0x58] sm:$0xff] }
  0x99   :  { %v302_v29 = vadd.f32 %v623_v25, %v301_v28 }
  0x9a   :  { %v216_v30 = vmax.f32 %v177_v27, 0.0 }
  0x9b   :  { %v341_v32 = vmax.f32 %v302_v29, 0.0 }
  0x9c   :  { %233 = vst.msk [vmem:[%s839_s6] sm:$0xff] %vm232_vm2, %v216_v30 }
  0x9d   :  { %v357_v33 = vadd.f32 %v341_v32, %v42_v31  ;;  %v196_v34 = vpop.f32.mrf.mxu2  ;;  %v46_v32 = vld [vmem:[%s838_s5 + $0x20] sm:$0xff] }
  0x9e   :  { %v197_v35 = vadd.f32 %v618_v24, %v196_v34  ;;  %v321_v36 = vpop.f32.mrf.mxu3 }
  0x9f   :  { %373 = vst.msk [vmem:[%s840_s7] sm:$0xff] %vm232_vm2, %v357_v33  ;;  %v322_v37 = vadd.f32 %v623_v25, %v321_v36  ;;  %v178_v38 = vpop.f32.mrf.mxu0 }
  0xa0   :  { %v224_v39 = vmax.f32 %v197_v35, 0.0  ;;  %v179_v41 = vadd.f32 %v618_v24, %v178_v38  ;;  %v303_v42 = vpop.f32.mrf.mxu1 }
  0xa1   :  { %v349_v43 = vmax.f32 %v322_v37, 0.0  ;;  %v304_v44 = vadd.f32 %v623_v25, %v303_v42  ;;  %v54_v42 = vld [vmem:[%s838_s5 + $0x60] sm:$0xff] }
  0xa2   :  { %241 = vst.msk [vmem:[%s839_s6 + $0x40] sm:$0xff] %vm232_vm2, %v224_v39  ;;  %v217_v45 = vmax.f32 %v179_v41, 0.0 }
  0xa3   :  { %v365_v47 = vadd.f32 %v349_v43, %v50_v40  ;;  %v342_v48 = vmax.f32 %v304_v44, 0.0 }
  0xa4   :  { %234 = vst.msk [vmem:[%s839_s6 + $0x8] sm:$0xff] %vm232_vm2, %v217_v45 }
  0xa5   :  { %381 = vst.msk [vmem:[%s840_s7 + $0x40] sm:$0xff] %vm232_vm2, %v365_v47  ;;  %v358_v49 = vadd.f32 %v342_v48, %v43_v46  ;;  %v198_v50 = vpop.f32.mrf.mxu2  ;;  %v47_v48 = vld [vmem:[%s838_s5 + $0x28] sm:$0xff] }
  0xa6   :  { %v199_v51 = vadd.f32 %v618_v24, %v198_v50  ;;  %v323_v52 = vpop.f32.mrf.mxu3 }
  0xa7   :  { %374 = vst.msk [vmem:[%s840_s7 + $0x8] sm:$0xff] %vm232_vm2, %v358_v49  ;;  %v324_v53 = vadd.f32 %v623_v25, %v323_v52  ;;  %v181_v54 = vpop.f32.mrf.mxu0 }
  0xa8   :  { %v225_v55 = vmax.f32 %v199_v51, 0.0  ;;  %v182_v57 = vadd.f32 %v618_v24, %v181_v54  ;;  %v306_v58 = vpop.f32.mrf.mxu1 }
  0xa9   :  { %v350_v59 = vmax.f32 %v324_v53, 0.0  ;;  %v307_v60 = vadd.f32 %v623_v25, %v306_v58  ;;  %v55_v58 = vld [vmem:[%s838_s5 + $0x68] sm:$0xff] }
  0xaa   :  { %242 = vst.msk [vmem:[%s839_s6 + $0x48] sm:$0xff] %vm232_vm2, %v225_v55  ;;  %v218_v61 = vmax.f32 %v182_v57, 0.0 }
  0xab   :  { %v366_v63 = vadd.f32 %v350_v59, %v51_v56  ;;  %v343_v0 = vmax.f32 %v307_v60, 0.0 }
  0xac   :  { %235 = vst.msk [vmem:[%s839_s6 + $0x10] sm:$0xff] %vm232_vm2, %v218_v61 }
  0xad   :  { %382 = vst.msk [vmem:[%s840_s7 + $0x48] sm:$0xff] %vm232_vm2, %v366_v63  ;;  %v359_v1 = vadd.f32 %v343_v0, %v44_v62  ;;  %v201_v2 = vpop.f32.mrf.mxu2  ;;  %v48_v0 = vld [vmem:[%s838_s5 + $0x30] sm:$0xff] }
  0xae   :  { %v202_v3 = vadd.f32 %v618_v24, %v201_v2  ;;  %v326_v4 = vpop.f32.mrf.mxu3 }
  0xaf   :  { %375 = vst.msk [vmem:[%s840_s7 + $0x10] sm:$0xff] %vm232_vm2, %v359_v1  ;;  %v327_v5 = vadd.f32 %v623_v25, %v326_v4  ;;  %v183_v6 = vpop.f32.mrf.mxu0 }
  0xb0   :  { %v226_v7 = vmax.f32 %v202_v3, 0.0  ;;  %v184_v9 = vadd.f32 %v618_v24, %v183_v6  ;;  %v308_v10 = vpop.f32.mrf.mxu1 }
  0xb1   :  { %v351_v11 = vmax.f32 %v327_v5, 0.0  ;;  %v309_v12 = vadd.f32 %v623_v25, %v308_v10  ;;  %v56_v10 = vld [vmem:[%s838_s5 + $0x70] sm:$0xff] }
  0xb2   :  { %243 = vst.msk [vmem:[%s839_s6 + $0x50] sm:$0xff] %vm232_vm2, %v226_v7  ;;  %v219_v13 = vmax.f32 %v184_v9, 0.0 }
  0xb3   :  { %v367_v15 = vadd.f32 %v351_v11, %v52_v8  ;;  %v344_v16 = vmax.f32 %v309_v12, 0.0 }
  0xb4   :  { %236 = vst.msk [vmem:[%s839_s6 + $0x18] sm:$0xff] %vm232_vm2, %v219_v13 }
  0xb5   :  { %383 = vst.msk [vmem:[%s840_s7 + $0x50] sm:$0xff] %vm232_vm2, %v367_v15  ;;  %v360_v17 = vadd.f32 %v344_v16, %v45_v14  ;;  %v203_v18 = vpop.f32.mrf.mxu2  ;;  %v49_v16 = vld [vmem:[%s838_s5 + $0x38] sm:$0xff] }
  0xb6   :  { %v204_v19 = vadd.f32 %v618_v24, %v203_v18  ;;  %v328_v20 = vpop.f32.mrf.mxu3 }
  0xb7   :  { %376 = vst.msk [vmem:[%s840_s7 + $0x18] sm:$0xff] %vm232_vm2, %v360_v17  ;;  %v329_v21 = vadd.f32 %v623_v25, %v328_v20  ;;  %v186_v22 = vpop.f32.mrf.mxu0 }
  0xb8   :  { %v227_v23 = vmax.f32 %v204_v19, 0.0  ;;  %v187_v27 = vadd.f32 %v618_v24, %v186_v22  ;;  %v311_v28 = vpop.f32.mrf.mxu1 }
  0xb9   :  { %v352_v29 = vmax.f32 %v329_v21, 0.0  ;;  %v312_v30 = vadd.f32 %v623_v25, %v311_v28 }
  0xba   :  { %244 = vst.msk [vmem:[%s839_s6 + $0x58] sm:$0xff] %vm232_vm2, %v227_v23  ;;  %v220_v31 = vmax.f32 %v187_v27, 0.0  ;;  %v57_v27 = vld [vmem:[%s838_s5 + $0x78] sm:$0xff] }
  0xbb   :  { %v368_v33 = vadd.f32 %v352_v29, %v53_v26  ;;  %v345_v34 = vmax.f32 %v312_v30, 0.0 }
  0xbc   :  { %237 = vst.msk [vmem:[%s839_s6 + $0x20] sm:$0xff] %vm232_vm2, %v220_v31 }
  0xbd   :  { %384 = vst.msk [vmem:[%s840_s7 + $0x58] sm:$0xff] %vm232_vm2, %v368_v33  ;;  %v361_v35 = vadd.f32 %v345_v34, %v46_v32  ;;  %v206_v36 = vpop.f32.mrf.mxu2 }
  0xbe   :  { %v207_v37 = vadd.f32 %v618_v24, %v206_v36  ;;  %v331_v38 = vpop.f32.mrf.mxu3 }
  0xbf   :  { %377 = vst.msk [vmem:[%s840_s7 + $0x20] sm:$0xff] %vm232_vm2, %v361_v35  ;;  %v332_v39 = vadd.f32 %v623_v25, %v331_v38  ;;  %v188_v40 = vpop.f32.mrf.mxu0 }
  0xc0   :  { %v228_v41 = vmax.f32 %v207_v37, 0.0  ;;  %v189_v43 = vadd.f32 %v618_v24, %v188_v40  ;;  %v313_v44 = vpop.f32.mrf.mxu1 }
  0xc1   :  { %v353_v45 = vmax.f32 %v332_v39, 0.0  ;;  %v314_v46 = vadd.f32 %v623_v25, %v313_v44 }
  0xc2   :  { %245 = vst.msk [vmem:[%s839_s6 + $0x60] sm:$0xff] %vm232_vm2, %v228_v41  ;;  %v221_v47 = vmax.f32 %v189_v43, 0.0 }
  0xc3   :  { %v369_v49 = vadd.f32 %v353_v45, %v54_v42  ;;  %v346_v50 = vmax.f32 %v314_v46, 0.0 }
  0xc4   :  { %238 = vst.msk [vmem:[%s839_s6 + $0x28] sm:$0xff] %vm232_vm2, %v221_v47 }
  0xc5   :  { %385 = vst.msk [vmem:[%s840_s7 + $0x60] sm:$0xff] %vm232_vm2, %v369_v49  ;;  %v362_v51 = vadd.f32 %v346_v50, %v47_v48  ;;  %v208_v52 = vpop.f32.mrf.mxu2 }
  0xc6   :  { %v209_v53 = vadd.f32 %v618_v24, %v208_v52  ;;  %v333_v54 = vpop.f32.mrf.mxu3 }
  0xc7   :  { %378 = vst.msk [vmem:[%s840_s7 + $0x28] sm:$0xff] %vm232_vm2, %v362_v51  ;;  %v334_v55 = vadd.f32 %v623_v25, %v333_v54  ;;  %v191_v56 = vpop.f32.mrf.mxu0 }
  0xc8   :  { %v229_v57 = vmax.f32 %v209_v53, 0.0  ;;  %v192_v59 = vadd.f32 %v618_v24, %v191_v56  ;;  %v316_v60 = vpop.f32.mrf.mxu1 }
  0xc9   :  { %v354_v61 = vmax.f32 %v334_v55, 0.0  ;;  %v317_v62 = vadd.f32 %v623_v25, %v316_v60 }
  0xca   :  { %246 = vst.msk [vmem:[%s839_s6 + $0x68] sm:$0xff] %vm232_vm2, %v229_v57  ;;  %v222_v63 = vmax.f32 %v192_v59, 0.0 }
  0xcb   :  { %v370_v1 = vadd.f32 %v354_v61, %v55_v58  ;;  %v347_v2 = vmax.f32 %v317_v62, 0.0 }
  0xcc   :  { %239 = vst.msk [vmem:[%s839_s6 + $0x30] sm:$0xff] %vm232_vm2, %v222_v63 }
  0xcd   :  { %386 = vst.msk [vmem:[%s840_s7 + $0x68] sm:$0xff] %vm232_vm2, %v370_v1  ;;  %v363_v3 = vadd.f32 %v347_v2, %v48_v0  ;;  %v211_v4 = vpop.f32.mrf.mxu2 }
  0xce   :  { %v212_v5 = vadd.f32 %v618_v24, %v211_v4  ;;  %v336_v6 = vpop.f32.mrf.mxu3 }
  0xcf   :  { %379 = vst.msk [vmem:[%s840_s7 + $0x30] sm:$0xff] %vm232_vm2, %v363_v3  ;;  %v337_v7 = vadd.f32 %v623_v25, %v336_v6  ;;  %v193_v8 = vpop.f32.mrf.mxu0 }
  0xd0   :  { %v230_v9 = vmax.f32 %v212_v5, 0.0  ;;  %v194_v11 = vadd.f32 %v618_v24, %v193_v8  ;;  %v318_v12 = vpop.f32.mrf.mxu1 }
  0xd1   :  { %v355_v13 = vmax.f32 %v337_v7, 0.0  ;;  %v319_v14 = vadd.f32 %v623_v25, %v318_v12 }
  0xd2   :  { %247 = vst.msk [vmem:[%s839_s6 + $0x70] sm:$0xff] %vm232_vm2, %v230_v9  ;;  %v223_v15 = vmax.f32 %v194_v11, 0.0 }
  0xd3   :  { %v371_v17 = vadd.f32 %v355_v13, %v56_v10  ;;  %v348_v18 = vmax.f32 %v319_v14, 0.0 }
  0xd4   :  { %240 = vst.msk [vmem:[%s839_s6 + $0x38] sm:$0xff] %vm232_vm2, %v223_v15 }
  0xd5   :  { %387 = vst.msk [vmem:[%s840_s7 + $0x70] sm:$0xff] %vm232_vm2, %v371_v17  ;;  %v364_v19 = vadd.f32 %v348_v18, %v49_v16  ;;  %v213_v20 = vpop.f32.mrf.mxu2 }
  0xd6   :  { %v214_v21 = vadd.f32 %v618_v24, %v213_v20  ;;  %v338_v22 = vpop.f32.mrf.mxu3 }
  0xd7   :  { %380 = vst.msk [vmem:[%s840_s7 + $0x38] sm:$0xff] %vm232_vm2, %v364_v19  ;;  %v339_v23 = vadd.f32 %v623_v25, %v338_v22 }
  0xd8   :  { %v231_v26 = vmax.f32 %v214_v21, 0.0 }
  0xd9   :  { %v356_v28 = vmax.f32 %v339_v23, 0.0 }
  0xda   :  { %248 = vst.msk [vmem:[%s839_s6 + $0x78] sm:$0xff] %vm232_vm2, %v231_v26 }
  0xdb   :  { %v372_v24 = vadd.f32 %v356_v28, %v57_v27 }
  0xdd   :  { %388 = vst.msk [vmem:[%s840_s7 + $0x78] sm:$0xff] %vm232_vm2, %v372_v24 }

// kernel: _lambda_.38
= control target key start
LH: loop header
LB: loop body
LE: loop exit
PB: predicated region body
PF: predicated region fallthrough
CT: control target
= control target key end

     0   :  { %vm76_vm0 = vcmask 1043456   ;;  %vm69_vm1 = vcmask 588800   ;;  %vm103_vm2 = vcmask 64512   ;;  %s206_s1 = inlined_call_operand.vmem [shape: bf16[72,8], index: 1, kind: input, shape index: {}]   ;;  %s207_s2 = inlined_call_operand.vmem [shape: f32[1,8], index: 2, kind: input, shape index: {}]   ;;  %s208_s0 = inlined_call_operand.vmem [shape: bf16[32,72], index: 0, kind: input, shape index: {}]   ;;  %s209_s3 = inlined_call_operand.vmem [shape: f32[32,8], index: 3, kind: output, shape index: {}]  }
   0x1   :  { %v27_v0 = vld [vmem:[%s206_s1 + $0x20] sm:$0xf]  ;;  %v143_v4 = vld [vmem:[%s206_s1 + $0x18] sm:$0xff]  ;;  %v142_v5 = vld [vmem:[%s206_s1 + $0x10] sm:$0xff] }
   0x2   :  { %v59_v1 = vunpack.c.l.b16 %v27_v0  ;;  %v141_v6 = vld [vmem:[%s206_s1 + $0x8] sm:$0xff]  ;;  %v140_v7 = vld [vmem:[%s206_s1] sm:$0xff] }
   0x3   :  { %v138_v8 = vld [vmem:[%s208_s0] sm:$0xff]  ;;  %v139_v9 = vld [vmem:[%s208_s0 + $0x8] sm:$0xff] }
   0x4   :  { %v64_v2 = vpack.c.b16 %v59_v1, %v59_v1  ;;  %v149_v10 = vld [vmem:[%s207_s2] ss:$0 sm:$0xff] }
   0x6   :  { %v78_v3 = vsel %vm76_vm0, %v64_v2, 0 }
   0x7   :  { %83 = vmatpush.bf16.msra.mxu0 %v78_v3  ;;  %144 = vmatpush.bf16.msra.mxu1 %v78_v3 }
   0xb   :  { %84 = vmatpush.bf16.msra.mxu0 %v143_v4  ;;  %145 = vmatpush.bf16.msra.mxu1 %v143_v4 }
   0xf   :  { %85 = vmatpush.bf16.msra.mxu0 %v142_v5  ;;  %146 = vmatpush.bf16.msra.mxu1 %v142_v5 }
  0x13   :  { %86 = vmatpush.bf16.msra.mxu0 %v141_v6  ;;  %147 = vmatpush.bf16.msra.mxu1 %v141_v6 }
  0x17   :  { %87 = vmatpush.bf16.msra.mxu0 %v140_v7  ;;  %148 = vmatpush.bf16.msra.mxu1 %v140_v7 }
  0x1a   :  { %136 = vmatmul.msk.bf16.vlgmr.msra.gmra.mxu0 %vm69_vm1, %v138_v8  ;;  %137 = vmatmul.msk.bf16.vlgmr.msra.gmra.mxu1 %vm69_vm1, %v139_v9 }
  0x97   :  { %v89_v11 = vpop.f32.mrf.mxu0  ;;  %v94_v12 = vpop.f32.mrf.mxu1 }
  0x98   :  { %v90_v13 = vadd.f32 %v149_v10, %v89_v11  ;;  %v95_v14 = vadd.f32 %v149_v10, %v94_v12 }
  0x9a   :  { %v99_v15 = vmax.f32 %v90_v13, 0.0  ;;  %v101_v16 = vmax.f32 %v95_v14, 0.0 }
  0x9c   :  { %104 = vst.msk [vmem:[%s209_s3] sm:$0xff] %vm103_vm2, %v99_v15 }
  0x9d   :  { %106 = vst.msk [vmem:[%s209_s3 + $0x10] sm:$0xff] %vm103_vm2, %v101_v16 }
  0x9f   :  { %v91_v17 = vpop.f32.mrf.mxu0  ;;  %v96_v18 = vpop.f32.mrf.mxu1 }
  0xa0   :  { %v92_v19 = vadd.f32 %v149_v10, %v91_v17  ;;  %v97_v20 = vadd.f32 %v149_v10, %v96_v18 }
  0xa2   :  { %v100_v21 = vmax.f32 %v92_v19, 0.0  ;;  %v102_v22 = vmax.f32 %v97_v20, 0.0 }
  0xa4   :  { %105 = vst.msk [vmem:[%s209_s3 + $0x8] sm:$0xff] %vm103_vm2, %v100_v21 }
  0xa5   :  { %107 = vst.msk [vmem:[%s209_s3 + $0x18] sm:$0xff] %vm103_vm2, %v102_v22 }

// kernel: _lambda_.39
= control target key start
LH: loop header
LB: loop body
LE: loop exit
PB: predicated region body
PF: predicated region fallthrough
CT: control target
= control target key end

     0   :  { %vm32_vm0 = vcmask 130048   ;;  %vm98_vm1 = vcmask 64512   ;;  %s395_s0 = inlined_call_operand.vmem [shape: f32[2,16,8], index: 0, kind: input, shape index: {}]   ;;  %s396_s1 = inlined_call_operand.vmem [shape: f32[64,16], index: 1, kind: input, shape index: {}]   ;;  %s397_s2 = inlined_call_operand.vmem [shape: f32[2,64,8], index: 2, kind: input, shape index: {}]   ;;  %s398_s3 = inlined_call_operand.vmem [shape: f32[2,64,8], index: 3, kind: output, shape index: {}]  }
   0x1   :  { %v23_v0 = vld [vmem:[%s395_s0 + $0x8] sm:$0xff]  ;;  %v182_v1 = vld [vmem:[%s395_s0 + $0x18] sm:$0xff]  ;;  %v22_v2 = vld [vmem:[%s395_s0] sm:$0xff] }
   0x2   :  { %207 = vmatpush.msra.mxu2 %v23_v0  ;;  %209 = vmatpush.msra.mxu3 %v182_v1  ;;  %v181_v3 = vld [vmem:[%s395_s0 + $0x10] sm:$0xff]  ;;  %v18_v4 = vld [vmem:[%s396_s1 + $0x20] sm:$0xff]  ;;  %v19_v6 = vld [vmem:[%s396_s1 + $0x28] sm:$0xff] }
   0x3   :  { %71 = vmatpush.msra.mxu0 %v23_v0  ;;  %133 = vmatpush.msra.mxu1 %v182_v1  ;;  %v14_v5 = vld [vmem:[%s396_s1] sm:$0xff]  ;;  %v15_v7 = vld [vmem:[%s396_s1 + $0x8] sm:$0xff]  ;;  %v20_v8 = vld [vmem:[%s396_s1 + $0x30] sm:$0xff] }
   0x4   :  { %208 = vmatpush.msra.mxu2 %v22_v2  ;;  %210 = vmatpush.msra.mxu3 %v181_v3  ;;  %v16_v9 = vld [vmem:[%s396_s1 + $0x10] sm:$0xff]  ;;  %v21_v10 = vld [vmem:[%s396_s1 + $0x38] sm:$0xff]  ;;  %v24_v12 = vld [vmem:[%s397_s2] sm:$0xff] }
   0x5   :  { %177 = vmatmul.msk.f32.vlgmr.msra.gmra.mxu2 %vm32_vm0, %v18_v4  ;;  %195 = vmatmul.msk.f32.vlgmr.msra.gmra.mxu3 %vm32_vm0, %v18_v4  ;;  %v17_v11 = vld [vmem:[%s396_s1 + $0x18] sm:$0xff]  ;;  %v183_v13 = vld [vmem:[%s397_s2 + $0x40] sm:$0xff]  ;;  %v25_v24 = vld [vmem:[%s397_s2 + $0x8] sm:$0xff] }
   0x6   :  { %72 = vmatpush.msra.mxu0 %v22_v2  ;;  %134 = vmatpush.msra.mxu1 %v181_v3  ;;  %v28_v18 = vld [vmem:[%s397_s2 + $0x20] sm:$0xff]  ;;  %v184_v25 = vld [vmem:[%s397_s2 + $0x48] sm:$0xff]  ;;  %v26_v36 = vld [vmem:[%s397_s2 + $0x10] sm:$0xff] }
   0x7   :  { %173 = vmatmul.msk.f32.vlgmr.msra.gmra.mxu0 %vm32_vm0, %v14_v5  ;;  %191 = vmatmul.msk.f32.vlgmr.msra.gmra.mxu1 %vm32_vm0, %v14_v5  ;;  %v187_v19 = vld [vmem:[%s397_s2 + $0x60] sm:$0xff]  ;;  %v29_v30 = vld [vmem:[%s397_s2 + $0x28] sm:$0xff]  ;;  %v185_v37 = vld [vmem:[%s397_s2 + $0x50] sm:$0xff] }
   0x8   :  { %v188_v31 = vld [vmem:[%s397_s2 + $0x68] sm:$0xff]  ;;  %v30_v42 = vld [vmem:[%s397_s2 + $0x30] sm:$0xff]  ;;  %v27_v48 = vld [vmem:[%s397_s2 + $0x18] sm:$0xff] }
   0x9   :  { %v189_v43 = vld [vmem:[%s397_s2 + $0x70] sm:$0xff]  ;;  %v186_v49 = vld [vmem:[%s397_s2 + $0x58] sm:$0xff] }
   0xa   :  { %v31_v54 = vld [vmem:[%s397_s2 + $0x38] sm:$0xff] }
   0xb   :  { %v190_v55 = vld [vmem:[%s397_s2 + $0x78] sm:$0xff] }
   0xd   :  { %178 = vmatmul.msk.f32.gmra.mxu2 %vm32_vm0, %v19_v6  ;;  %196 = vmatmul.msk.f32.gmra.mxu3 %vm32_vm0, %v19_v6 }
   0xf   :  { %174 = vmatmul.msk.f32.gmra.mxu0 %vm32_vm0, %v15_v7  ;;  %192 = vmatmul.msk.f32.gmra.mxu1 %vm32_vm0, %v15_v7 }
  0x15   :  { %179 = vmatmul.msk.f32.gmra.mxu2 %vm32_vm0, %v20_v8  ;;  %197 = vmatmul.msk.f32.gmra.mxu3 %vm32_vm0, %v20_v8 }
  0x17   :  { %175 = vmatmul.msk.f32.gmra.mxu0 %vm32_vm0, %v16_v9  ;;  %193 = vmatmul.msk.f32.gmra.mxu1 %vm32_vm0, %v16_v9 }
  0x1d   :  { %180 = vmatmul.msk.f32.gmra.mxu2 %vm32_vm0, %v21_v10  ;;  %198 = vmatmul.msk.f32.gmra.mxu3 %vm32_vm0, %v21_v10 }
  0x1f   :  { %176 = vmatmul.msk.f32.gmra.mxu0 %vm32_vm0, %v17_v11  ;;  %194 = vmatmul.msk.f32.gmra.mxu1 %vm32_vm0, %v17_v11 }
  0x84   :  { %v74_v14 = vpop.f32.mrf.mxu0  ;;  %v136_v15 = vpop.f32.mrf.mxu1 }
  0x85   :  { %v75_v16 = vadd.f32 %v74_v14, %v24_v12  ;;  %v137_v17 = vadd.f32 %v183_v13, %v136_v15 }
  0x87   :  { %99 = vst.msk [vmem:[%s398_s3] sm:$0xff] %vm98_vm1, %v75_v16 }
  0x88   :  { %v86_v20 = vpop.f32.mrf.mxu2  ;;  %199 = vst.msk [vmem:[%s398_s3 + $0x40] sm:$0xff] %vm98_vm1, %v137_v17  ;;  %v148_v21 = vpop.f32.mrf.mxu3 }
  0x89   :  { %v87_v22 = vadd.f32 %v86_v20, %v28_v18  ;;  %v149_v23 = vadd.f32 %v187_v19, %v148_v21 }
  0x8b   :  { %103 = vst.msk [vmem:[%s398_s3 + $0x20] sm:$0xff] %vm98_vm1, %v87_v22 }
  0x8c   :  { %203 = vst.msk [vmem:[%s398_s3 + $0x60] sm:$0xff] %vm98_vm1, %v149_v23  ;;  %v77_v26 = vpop.f32.mrf.mxu0  ;;  %v139_v27 = vpop.f32.mrf.mxu1 }
  0x8d   :  { %v78_v28 = vadd.f32 %v77_v26, %v25_v24  ;;  %v140_v29 = vadd.f32 %v184_v25, %v139_v27 }
  0x8f   :  { %100 = vst.msk [vmem:[%s398_s3 + $0x8] sm:$0xff] %vm98_vm1, %v78_v28 }
  0x90   :  { %v89_v32 = vpop.f32.mrf.mxu2  ;;  %200 = vst.msk [vmem:[%s398_s3 + $0x48] sm:$0xff] %vm98_vm1, %v140_v29  ;;  %v151_v33 = vpop.f32.mrf.mxu3 }
  0x91   :  { %v90_v34 = vadd.f32 %v89_v32, %v29_v30  ;;  %v152_v35 = vadd.f32 %v188_v31, %v151_v33 }
  0x93   :  { %104 = vst.msk [vmem:[%s398_s3 + $0x28] sm:$0xff] %vm98_vm1, %v90_v34 }
  0x94   :  { %204 = vst.msk [vmem:[%s398_s3 + $0x68] sm:$0xff] %vm98_vm1, %v152_v35  ;;  %v80_v38 = vpop.f32.mrf.mxu0  ;;  %v142_v39 = vpop.f32.mrf.mxu1 }
  0x95   :  { %v81_v40 = vadd.f32 %v80_v38, %v26_v36  ;;  %v143_v41 = vadd.f32 %v185_v37, %v142_v39 }
  0x97   :  { %101 = vst.msk [vmem:[%s398_s3 + $0x10] sm:$0xff] %vm98_vm1, %v81_v40 }
  0x98   :  { %v92_v44 = vpop.f32.mrf.mxu2  ;;  %201 = vst.msk [vmem:[%s398_s3 + $0x50] sm:$0xff] %vm98_vm1, %v143_v41  ;;  %v154_v45 = vpop.f32.mrf.mxu3 }
  0x99   :  { %v93_v46 = vadd.f32 %v92_v44, %v30_v42  ;;  %v155_v47 = vadd.f32 %v189_v43, %v154_v45 }
  0x9b   :  { %105 = vst.msk [vmem:[%s398_s3 + $0x30] sm:$0xff] %vm98_vm1, %v93_v46 }
  0x9c   :  { %205 = vst.msk [vmem:[%s398_s3 + $0x70] sm:$0xff] %vm98_vm1, %v155_v47  ;;  %v83_v50 = vpop.f32.mrf.mxu0  ;;  %v145_v51 = vpop.f32.mrf.mxu1 }
  0x9d   :  { %v84_v52 = vadd.f32 %v83_v50, %v27_v48  ;;  %v146_v53 = vadd.f32 %v186_v49, %v145_v51 }
  0x9f   :  { %102 = vst.msk [vmem:[%s398_s3 + $0x18] sm:$0xff] %vm98_vm1, %v84_v52 }
  0xa0   :  { %v95_v56 = vpop.f32.mrf.mxu2  ;;  %202 = vst.msk [vmem:[%s398_s3 + $0x58] sm:$0xff] %vm98_vm1, %v146_v53  ;;  %v157_v57 = vpop.f32.mrf.mxu3 }
  0xa1   :  { %v96_v58 = vadd.f32 %v95_v56, %v31_v54  ;;  %v158_v59 = vadd.f32 %v190_v55, %v157_v57 }
  0xa3   :  { %106 = vst.msk [vmem:[%s398_s3 + $0x38] sm:$0xff] %vm98_vm1, %v96_v58 }
  0xa4   :  { %206 = vst.msk [vmem:[%s398_s3 + $0x78] sm:$0xff] %vm98_vm1, %v158_v59 }

// kernel: _lambda_.43
= control target key start
LH: loop header
LB: loop body
LE: loop exit
PB: predicated region body
PF: predicated region fallthrough
CT: control target
= control target key end

     0   :  { %vm91_vm0 = vcmask 1043456   ;;  %vm84_vm1 = vcmask 588800   ;;  %vm118_vm2 = vcmask 64512   ;;  %s397_s1 = inlined_call_operand.vmem [shape: bf16[72,8], index: 1, kind: input, shape index: {}]   ;;  %s398_s3 = inlined_call_operand.vmem [shape: bf16[72,8], index: 3, kind: input, shape index: {}]   ;;  %s399_s2 = inlined_call_operand.vmem [shape: f32[1,8], index: 2, kind: input, shape index: {}, may-alias: {2,4}]   ;;  %s400_s0 = inlined_call_operand.vmem [shape: bf16[32,72], index: 0, kind: input, shape index: {}]   ;;  %s401_s4 = inlined_call_operand.vmem [shape: f32[1,8], index: 4, kind: input, shape index: {}, may-alias: {2,4}]   ;;  %s402_s5 = inlined_call_operand.vmem [shape: f32[32,8], index: 5, kind: input, shape index: {}]   ;;  %s403_s6 = inlined_call_operand.vmem [shape: f32[32,8], index: 6, kind: output, shape index: {0}]   ;;  %s404_s7 = inlined_call_operand.vmem [shape: f32[32,8], index: 7, kind: output, shape index: {1}]  }
   0x1   :  { %v42_v0 = vld [vmem:[%s397_s1 + $0x20] sm:$0xf]  ;;  %v254_v8 = vld [vmem:[%s397_s1 + $0x18] sm:$0xff]  ;;  %v253_v10 = vld [vmem:[%s397_s1 + $0x10] sm:$0xff] }
   0x2   :  { %v131_v1 = vld [vmem:[%s398_s3 + $0x20] sm:$0xf]  ;;  %v74_v2 = vunpack.c.l.b16 %v42_v0  ;;  %v258_v9 = vld [vmem:[%s398_s3 + $0x18] sm:$0xff]  ;;  %v257_v11 = vld [vmem:[%s398_s3 + $0x10] sm:$0xff] }
   0x3   :  { %v153_v3 = vunpack.c.l.b16 %v131_v1  ;;  %v252_v12 = vld [vmem:[%s397_s1 + $0x8] sm:$0xff]  ;;  %v251_v14 = vld [vmem:[%s397_s1] sm:$0xff]  ;;  %v32_v34 = vld [vmem:[%s402_s5 + $0x10] sm:$0xff] }
   0x4   :  { %v79_v4 = vpack.c.b16 %v74_v2, %v74_v2  ;;  %v256_v13 = vld [vmem:[%s398_s3 + $0x8] sm:$0xff]  ;;  %v255_v15 = vld [vmem:[%s398_s3] sm:$0xff]  ;;  %v33_v49 = vld [vmem:[%s402_s5 + $0x18] sm:$0xff] }
   0x5   :  { %v158_v5 = vpack.c.b16 %v153_v3, %v153_v3  ;;  %v249_v16 = vld [vmem:[%s400_s0] sm:$0xff]  ;;  %v250_v17 = vld [vmem:[%s400_s0 + $0x8] sm:$0xff] }
   0x6   :  { %v93_v6 = vsel %vm91_vm0, %v79_v4, 0  ;;  %v269_v18 = vld [vmem:[%s399_s2] ss:$0 sm:$0xff]  ;;  %v31_v40 = vld [vmem:[%s402_s5 + $0x8] sm:$0xff] }
   0x7   :  { %v164_v7 = vsel %vm91_vm0, %v158_v5, 0  ;;  %98 = vmatpush.bf16.msra.mxu0 %v93_v6  ;;  %259 = vmatpush.bf16.msra.mxu2 %v93_v6  ;;  %v270_v19 = vld [vmem:[%s401_s4] ss:$0 sm:$0xff] }
   0x8   :  { %169 = vmatpush.bf16.msra.mxu1 %v164_v7  ;;  %264 = vmatpush.bf16.msra.mxu3 %v164_v7  ;;  %v30_v25 = vld [vmem:[%s402_s5] sm:$0xff] }
   0xb   :  { %99 = vmatpush.bf16.msra.mxu0 %v254_v8  ;;  %260 = vmatpush.bf16.msra.mxu2 %v254_v8 }
   0xc   :  { %170 = vmatpush.bf16.msra.mxu1 %v258_v9  ;;  %265 = vmatpush.bf16.msra.mxu3 %v258_v9 }
   0xf   :  { %100 = vmatpush.bf16.msra.mxu0 %v253_v10  ;;  %261 = vmatpush.bf16.msra.mxu2 %v253_v10 }
  0x10   :  { %171 = vmatpush.bf16.msra.mxu1 %v257_v11  ;;  %266 = vmatpush.bf16.msra.mxu3 %v257_v11 }
  0x13   :  { %101 = vmatpush.bf16.msra.mxu0 %v252_v12  ;;  %262 = vmatpush.bf16.msra.mxu2 %v252_v12 }
  0x14   :  { %172 = vmatpush.bf16.msra.mxu1 %v256_v13  ;;  %267 = vmatpush.bf16.msra.mxu3 %v256_v13 }
  0x17   :  { %102 = vmatpush.bf16.msra.mxu0 %v251_v14  ;;  %263 = vmatpush.bf16.msra.mxu2 %v251_v14 }
  0x18   :  { %173 = vmatpush.bf16.msra.mxu1 %v255_v15  ;;  %268 = vmatpush.bf16.msra.mxu3 %v255_v15 }
  0x1a   :  { %229 = vmatmul.msk.bf16.vlgmr.msra.gmra.mxu0 %vm84_vm1, %v249_v16  ;;  %230 = vmatmul.msk.bf16.vlgmr.msra.gmra.mxu2 %vm84_vm1, %v250_v17 }
  0x1b   :  { %247 = vmatmul.msk.bf16.vlgmr.msra.gmra.mxu1 %vm84_vm1, %v249_v16  ;;  %248 = vmatmul.msk.bf16.vlgmr.msra.gmra.mxu3 %vm84_vm1, %v250_v17 }
  0x97   :  { %v104_v20 = vpop.f32.mrf.mxu0 }
  0x98   :  { %v105_v21 = vadd.f32 %v269_v18, %v104_v20  ;;  %v175_v22 = vpop.f32.mrf.mxu1 }
  0x99   :  { %v176_v23 = vadd.f32 %v270_v19, %v175_v22 }
  0x9a   :  { %v114_v24 = vmax.f32 %v105_v21, 0.0 }
  0x9b   :  { %v185_v26 = vmax.f32 %v176_v23, 0.0 }
  0x9c   :  { %119 = vst.msk [vmem:[%s403_s6] sm:$0xff] %vm118_vm2, %v114_v24 }
  0x9d   :  { %v189_v27 = vadd.f32 %v185_v26, %v30_v25  ;;  %v109_v28 = vpop.f32.mrf.mxu2 }
  0x9e   :  { %v110_v29 = vadd.f32 %v269_v18, %v109_v28  ;;  %v180_v30 = vpop.f32.mrf.mxu3 }
  0x9f   :  { %193 = vst.msk [vmem:[%s404_s7] sm:$0xff] %vm118_vm2, %v189_v27  ;;  %v181_v31 = vadd.f32 %v270_v19, %v180_v30  ;;  %v106_v32 = vpop.f32.mrf.mxu0 }
  0xa0   :  { %v116_v33 = vmax.f32 %v110_v29, 0.0  ;;  %v107_v35 = vadd.f32 %v269_v18, %v106_v32  ;;  %v177_v36 = vpop.f32.mrf.mxu1 }
  0xa1   :  { %v187_v37 = vmax.f32 %v181_v31, 0.0  ;;  %v178_v38 = vadd.f32 %v270_v19, %v177_v36 }
  0xa2   :  { %121 = vst.msk [vmem:[%s403_s6 + $0x10] sm:$0xff] %vm118_vm2, %v116_v33  ;;  %v115_v39 = vmax.f32 %v107_v35, 0.0 }
  0xa3   :  { %v191_v41 = vadd.f32 %v187_v37, %v32_v34  ;;  %v186_v42 = vmax.f32 %v178_v38, 0.0 }
  0xa4   :  { %120 = vst.msk [vmem:[%s403_s6 + $0x8] sm:$0xff] %vm118_vm2, %v115_v39 }
  0xa5   :  { %195 = vst.msk [vmem:[%s404_s7 + $0x10] sm:$0xff] %vm118_vm2, %v191_v41  ;;  %v190_v43 = vadd.f32 %v186_v42, %v31_v40  ;;  %v111_v44 = vpop.f32.mrf.mxu2 }
  0xa6   :  { %v112_v45 = vadd.f32 %v269_v18, %v111_v44  ;;  %v182_v46 = vpop.f32.mrf.mxu3 }
  0xa7   :  { %194 = vst.msk [vmem:[%s404_s7 + $0x8] sm:$0xff] %vm118_vm2, %v190_v43  ;;  %v183_v47 = vadd.f32 %v270_v19, %v182_v46 }
  0xa8   :  { %v117_v48 = vmax.f32 %v112_v45, 0.0 }
  0xa9   :  { %v188_v50 = vmax.f32 %v183_v47, 0.0 }
  0xaa   :  { %122 = vst.msk [vmem:[%s403_s6 + $0x18] sm:$0xff] %vm118_vm2, %v117_v48 }
  0xab   :  { %v192_v51 = vadd.f32 %v188_v50, %v33_v49 }
  0xad   :  { %196 = vst.msk [vmem:[%s404_s7 + $0x18] sm:$0xff] %vm118_vm2, %v192_v51 }

// kernel: _lambda_.45
= control target key start
LH: loop header
LB: loop body
LE: loop exit
PB: predicated region body
PF: predicated region fallthrough
CT: control target
= control target key end

     0   :  { %vm26_vm0 = vcmask 1043456   ;;  %vm19_vm1 = vcmask 31744   ;;  %vm53_vm2 = vcmask 64512   ;;  %s163_s0 = inlined_call_operand.vmem [shape: f32[2,4,8], index: 0, kind: input, shape index: {}]   ;;  %s164_s1 = inlined_call_operand.vmem [shape: f32[16,4], index: 1, kind: input, shape index: {}]   ;;  %s165_s2 = inlined_call_operand.vmem [shape: f32[2,16,8], index: 2, kind: input, shape index: {}]   ;;  %s166_s3 = inlined_call_operand.vmem [shape: f32[2,16,8], index: 3, kind: output, shape index: {}]  }
   0x1   :  { %v16_v0 = vld [vmem:[%s163_s0] sm:$0xf]  ;;  %v97_v1 = vld [vmem:[%s163_s0 + $0x4] sm:$0xf]  ;;  %v15_v2 = vld [vmem:[%s164_s1 + $0x8] sm:$0xff] }
   0x2   :  { %105 = vmatpush.msk.msra.mxu2 %vm26_vm0, %v16_v0  ;;  %106 = vmatpush.msk.msra.mxu3 %vm26_vm0, %v97_v1  ;;  %v14_v3 = vld [vmem:[%s164_s1] sm:$0xff]  ;;  %v98_v5 = vld [vmem:[%s165_s2 + $0x10] sm:$0xff]  ;;  %v18_v10 = vld [vmem:[%s165_s2 + $0x8] sm:$0xff] }
   0x3   :  { %96 = vmatmul.msk.f32.vlgmr.msra.gmra.mxu2 %vm19_vm1, %v15_v2  ;;  %102 = vmatmul.msk.f32.vlgmr.msra.gmra.mxu3 %vm19_vm1, %v15_v2  ;;  %v17_v4 = vld [vmem:[%s165_s2] sm:$0xff]  ;;  %v99_v11 = vld [vmem:[%s165_s2 + $0x18] sm:$0xff] }
   0x4   :  { %94 = vmatpush.msk.msra.mxu0 %vm26_vm0, %v16_v0  ;;  %100 = vmatpush.msk.msra.mxu1 %vm26_vm0, %v97_v1 }
   0x5   :  { %95 = vmatmul.msk.f32.vlgmr.msra.gmra.mxu0 %vm19_vm1, %v14_v3  ;;  %101 = vmatmul.msk.f32.vlgmr.msra.gmra.mxu1 %vm19_vm1, %v14_v3 }
  0x82   :  { %v47_v6 = vpop.f32.mrf.mxu0  ;;  %v81_v7 = vpop.f32.mrf.mxu1 }
  0x83   :  { %v48_v8 = vadd.f32 %v47_v6, %v17_v4  ;;  %v82_v9 = vadd.f32 %v98_v5, %v81_v7 }
  0x85   :  { %54 = vst.msk [vmem:[%s166_s3] sm:$0xff] %vm53_vm2, %v48_v8 }
  0x86   :  { %v50_v12 = vpop.f32.mrf.mxu2  ;;  %103 = vst.msk [vmem:[%s166_s3 + $0x10] sm:$0xff] %vm53_vm2, %v82_v9  ;;  %v84_v13 = vpop.f32.mrf.mxu3 }
  0x87   :  { %v51_v14 = vadd.f32 %v50_v12, %v18_v10  ;;  %v85_v15 = vadd.f32 %v99_v11, %v84_v13 }
  0x89   :  { %55 = vst.msk [vmem:[%s166_s3 + $0x8] sm:$0xff] %vm53_vm2, %v51_v14 }
  0x8a   :  { %104 = vst.msk [vmem:[%s166_s3 + $0x18] sm:$0xff] %vm53_vm2, %v85_v15 }

// kernel: _lambda_.44
= control target key start
LH: loop header
LB: loop body
LE: loop exit
PB: predicated region body
PF: predicated region fallthrough
CT: control target
= control target key end

     0   :  { %vm60_vm0 = vcmask 1043456   ;;  %vm56_vm1 = vcmask 588800   ;;  %vm78_vm2 = vcmask 64512   ;;  %s150_s1 = inlined_call_operand.vmem [shape: bf16[72,8], index: 1, kind: input, shape index: {}]   ;;  %s151_s2 = inlined_call_operand.vmem [shape: f32[1,8], index: 2, kind: input, shape index: {}]   ;;  %s152_s0 = inlined_call_operand.vmem [shape: bf16[8,72], index: 0, kind: input, shape index: {}]   ;;  %s153_s3 = inlined_call_operand.vmem [shape: f32[8,8], index: 3, kind: output, shape index: {}]  }
   0x1   :  { %v24_v0 = vld [vmem:[%s150_s1 + $0x20] sm:$0xf]  ;;  %v104_v4 = vld [vmem:[%s150_s1 + $0x18] sm:$0xff]  ;;  %v103_v5 = vld [vmem:[%s150_s1 + $0x10] sm:$0xff] }
   0x2   :  { %v46_v1 = vunpack.c.l.b16 %v24_v0  ;;  %v102_v6 = vld [vmem:[%s150_s1 + $0x8] sm:$0xff]  ;;  %v101_v7 = vld [vmem:[%s150_s1] sm:$0xff] }
   0x3   :  { %v15_v8 = vld [vmem:[%s152_s0] sm:$0xf] }
   0x4   :  { %v51_v2 = vpack.c.b16 %v46_v1, %v46_v1  ;;  %v105_v9 = vld [vmem:[%s151_s2] ss:$0 sm:$0xff] }
   0x6   :  { %v62_v3 = vsel %vm60_vm0, %v51_v2, 0 }
   0x7   :  { %67 = vmatpush.bf16.msra.mxu0 %v62_v3 }
   0xb   :  { %68 = vmatpush.bf16.msra.mxu0 %v104_v4 }
   0xf   :  { %69 = vmatpush.bf16.msra.mxu0 %v103_v5 }
  0x13   :  { %70 = vmatpush.bf16.msra.mxu0 %v102_v6 }
  0x17   :  { %71 = vmatpush.bf16.msra.mxu0 %v101_v7 }
  0x1a   :  { %100 = vmatmul.msk.bf16.vlgmr.msra.gmra.mxu0 %vm56_vm1, %v15_v8 }
  0x97   :  { %v73_v10 = vpop.f32.mrf.mxu0 }
  0x98   :  { %v74_v11 = vadd.f32 %v105_v9, %v73_v10 }
  0x9a   :  { %v77_v12 = vmax.f32 %v74_v11, 0.0 }
  0x9c   :  { %79 = vst.msk [vmem:[%s153_s3] sm:$0xff] %vm78_vm2, %v77_v12 }
  0x9f   :  { %v75_v13 = vpop.f32.mrf.mxu0 }

// kernel: _lambda_.50
= control target key start
LH: loop header
LB: loop body
LE: loop exit
PB: predicated region body
PF: predicated region fallthrough
CT: control target
= control target key end

     0   :  { %vm72_vm0 = vcmask 1043456   ;;  %vm68_vm1 = vcmask 588800   ;;  %vm90_vm2 = vcmask 64512   ;;  %s291_s1 = inlined_call_operand.vmem [shape: bf16[72,8], index: 1, kind: input, shape index: {}]   ;;  %s292_s3 = inlined_call_operand.vmem [shape: bf16[72,8], index: 3, kind: input, shape index: {}]   ;;  %s293_s2 = inlined_call_operand.vmem [shape: f32[1,8], index: 2, kind: input, shape index: {}, may-alias: {2,4}]   ;;  %s294_s0 = inlined_call_operand.vmem [shape: bf16[8,72], index: 0, kind: input, shape index: {}]   ;;  %s295_s4 = inlined_call_operand.vmem [shape: f32[1,8], index: 4, kind: input, shape index: {}, may-alias: {2,4}]   ;;  %s296_s5 = inlined_call_operand.vmem [shape: f32[8,8], index: 5, kind: input, shape index: {}]   ;;  %s297_s6 = inlined_call_operand.vmem [shape: f32[8,8], index: 6, kind: output, shape index: {0}]   ;;  %s298_s7 = inlined_call_operand.vmem [shape: f32[8,8], index: 7, kind: output, shape index: {1}]  }
   0x1   :  { %v36_v0 = vld [vmem:[%s291_s1 + $0x20] sm:$0xf]  ;;  %v196_v8 = vld [vmem:[%s291_s1 + $0x18] sm:$0xff]  ;;  %v195_v10 = vld [vmem:[%s291_s1 + $0x10] sm:$0xff] }
   0x2   :  { %v100_v1 = vld [vmem:[%s292_s3 + $0x20] sm:$0xf]  ;;  %v58_v2 = vunpack.c.l.b16 %v36_v0  ;;  %v200_v9 = vld [vmem:[%s292_s3 + $0x18] sm:$0xff]  ;;  %v199_v11 = vld [vmem:[%s292_s3 + $0x10] sm:$0xff] }
   0x3   :  { %v122_v3 = vunpack.c.l.b16 %v100_v1  ;;  %v194_v12 = vld [vmem:[%s291_s1 + $0x8] sm:$0xff]  ;;  %v193_v14 = vld [vmem:[%s291_s1] sm:$0xff] }
   0x4   :  { %v63_v4 = vpack.c.b16 %v58_v2, %v58_v2  ;;  %v198_v13 = vld [vmem:[%s292_s3 + $0x8] sm:$0xff]  ;;  %v197_v15 = vld [vmem:[%s292_s3] sm:$0xff] }
   0x5   :  { %v127_v5 = vpack.c.b16 %v122_v3, %v122_v3  ;;  %v26_v16 = vld [vmem:[%s294_s0] sm:$0xf] }
   0x6   :  { %v74_v6 = vsel %vm72_vm0, %v63_v4, 0  ;;  %v201_v17 = vld [vmem:[%s293_s2] ss:$0 sm:$0xff] }
   0x7   :  { %v133_v7 = vsel %vm72_vm0, %v127_v5, 0  ;;  %79 = vmatpush.bf16.msra.mxu0 %v74_v6  ;;  %v202_v18 = vld [vmem:[%s295_s4] ss:$0 sm:$0xff] }
   0x8   :  { %138 = vmatpush.bf16.msra.mxu1 %v133_v7  ;;  %v27_v23 = vld [vmem:[%s296_s5] sm:$0xff] }
   0xb   :  { %80 = vmatpush.bf16.msra.mxu0 %v196_v8 }
   0xc   :  { %139 = vmatpush.bf16.msra.mxu1 %v200_v9 }
   0xf   :  { %81 = vmatpush.bf16.msra.mxu0 %v195_v10 }
  0x10   :  { %140 = vmatpush.bf16.msra.mxu1 %v199_v11 }
  0x13   :  { %82 = vmatpush.bf16.msra.mxu0 %v194_v12 }
  0x14   :  { %141 = vmatpush.bf16.msra.mxu1 %v198_v13 }
  0x17   :  { %83 = vmatpush.bf16.msra.mxu0 %v193_v14 }
  0x18   :  { %142 = vmatpush.bf16.msra.mxu1 %v197_v15 }
  0x1a   :  { %175 = vmatmul.msk.bf16.vlgmr.msra.gmra.mxu0 %vm68_vm1, %v26_v16 }
  0x1b   :  { %192 = vmatmul.msk.bf16.vlgmr.msra.gmra.mxu1 %vm68_vm1, %v26_v16 }
  0x97   :  { %v85_v19 = vpop.f32.mrf.mxu0 }
  0x98   :  { %v144_v20 = vpop.f32.mrf.mxu1  ;;  %v86_v21 = vadd.f32 %v201_v17, %v85_v19 }
  0x99   :  { %v145_v22 = vadd.f32 %v202_v18, %v144_v20 }
  0x9a   :  { %v89_v24 = vmax.f32 %v86_v21, 0.0 }
  0x9b   :  { %v148_v25 = vmax.f32 %v145_v22, 0.0 }
  0x9c   :  { %91 = vst.msk [vmem:[%s297_s6] sm:$0xff] %vm90_vm2, %v89_v24 }
  0x9d   :  { %v149_v26 = vadd.f32 %v148_v25, %v27_v23 }
  0x9f   :  { %150 = vst.msk [vmem:[%s298_s7] sm:$0xff] %vm90_vm2, %v149_v26  ;;  %v87_v27 = vpop.f32.mrf.mxu0 }
  0xa0   :  { %v146_v28 = vpop.f32.mrf.mxu1 }

// kernel: _lambda_.52
= control target key start
LH: loop header
LB: loop body
LE: loop exit
PB: predicated region body
PF: predicated region fallthrough
CT: control target
= control target key end

     0   :  { %v51_v0 = vmov 0   ;;  %vm27_vm0 = vcmask 60416   ;;  %s93_s1 = inlined_call_operand.vmem [shape: f32[4,1], index: 1, kind: input, shape index: {}]   ;;  %s94_s0 = inlined_call_operand.vmem [shape: f32[2,1,8], index: 0, kind: input, shape index: {}]   ;;  %s95_s2 = inlined_call_operand.vmem [shape: f32[2,4,8], index: 2, kind: input, shape index: {}]   ;;  %s96_s3 = inlined_call_operand.vmem [shape: f32[2,4,8], index: 3, kind: output, shape index: {}]  }
   0x1   :  { %48 = vset.pattern.permute.xlu0 %v51_v0  ;;  %v14_v1 = vld [vmem:[%s93_s1] sm:$0xf]  ;;  %v45_v5 = vld [vmem:[%s95_s2 + $0x4] sm:$0xf] }
   0x2   :  { %18 = vperm.xlu0 %48, %v14_v1   ;;  %v49_v2 = vld [vmem:[%s94_s0] ss:$0 sm:$0xff]  ;;  %v50_v3 = vld [vmem:[%s94_s0 + $0x1] ss:$0 sm:$0xff] }
   0x3   :  { %v25_v4 = vld [vmem:[%s95_s2] sm:$0xf] }
  0x74   :  { %v19_v6 = vpop.permute.xlu0 %18 }
  0x75   :  { %v24_v7 = vmul.f32 %v49_v2, %v19_v6  ;;  %v34_v8 = vmul.f32 %v50_v3, %v19_v6 }
  0x77   :  { %v26_v9 = vadd.f32 %v25_v4, %v24_v7  ;;  %v37_v10 = vadd.f32 %v45_v5, %v34_v8 }
  0x79   :  { %28 = vst.msk [vmem:[%s96_s3] sm:$0xf] %vm27_vm0, %v26_v9 }
  0x7a   :  { %46 = vst.msk [vmem:[%s96_s3 + $0x4] sm:$0xf] %vm27_vm0, %v37_v10 }

// kernel: _lambda_.51
= control target key start
LH: loop header
LB: loop body
LE: loop exit
PB: predicated region body
PF: predicated region fallthrough
CT: control target
= control target key end

     0   :  { %vm60_vm0 = vcmask 1043456   ;;  %vm56_vm1 = vcmask 588800   ;;  %vm78_vm2 = vcmask 58368   ;;  %s150_s1 = inlined_call_operand.vmem [shape: bf16[72,8], index: 1, kind: input, shape index: {}]   ;;  %s151_s2 = inlined_call_operand.vmem [shape: f32[1,8], index: 2, kind: input, shape index: {}]   ;;  %s152_s0 = inlined_call_operand.vmem [shape: bf16[2,72], index: 0, kind: input, shape index: {}]   ;;  %s153_s3 = inlined_call_operand.vmem [shape: f32[2,8], index: 3, kind: output, shape index: {}]  }
   0x1   :  { %v24_v0 = vld [vmem:[%s150_s1 + $0x20] sm:$0xf]  ;;  %v104_v4 = vld [vmem:[%s150_s1 + $0x18] sm:$0xff]  ;;  %v103_v5 = vld [vmem:[%s150_s1 + $0x10] sm:$0xff] }
   0x2   :  { %v46_v1 = vunpack.c.l.b16 %v24_v0  ;;  %v102_v6 = vld [vmem:[%s150_s1 + $0x8] sm:$0xff]  ;;  %v101_v7 = vld [vmem:[%s150_s1] sm:$0xff] }
   0x3   :  { %v15_v8 = vld [vmem:[%s152_s0] sm:$0x1] }
   0x4   :  { %v51_v2 = vpack.c.b16 %v46_v1, %v46_v1  ;;  %v105_v9 = vld [vmem:[%s151_s2] ss:$0 sm:$0xff] }
   0x6   :  { %v62_v3 = vsel %vm60_vm0, %v51_v2, 0 }
   0x7   :  { %67 = vmatpush.bf16.msra.mxu0 %v62_v3 }
   0xb   :  { %68 = vmatpush.bf16.msra.mxu0 %v104_v4 }
   0xf   :  { %69 = vmatpush.bf16.msra.mxu0 %v103_v5 }
  0x13   :  { %70 = vmatpush.bf16.msra.mxu0 %v102_v6 }
  0x17   :  { %71 = vmatpush.bf16.msra.mxu0 %v101_v7 }
  0x1a   :  { %100 = vmatmul.msk.bf16.vlgmr.msra.gmra.mxu0 %vm56_vm1, %v15_v8 }
  0x97   :  { %v73_v10 = vpop.f32.mrf.mxu0 }
  0x98   :  { %v74_v11 = vadd.f32 %v105_v9, %v73_v10 }
  0x9a   :  { %v77_v12 = vmax.f32 %v74_v11, 0.0 }
  0x9c   :  { %79 = vst.msk [vmem:[%s153_s3] sm:$0x3] %vm78_vm2, %v77_v12 }
  0x9f   :  { %v75_v13 = vpop.f32.mrf.mxu0 }

// kernel: _lambda_.57
= control target key start
LH: loop header
LB: loop body
LE: loop exit
PB: predicated region body
PF: predicated region fallthrough
CT: control target
= control target key end

     0   :  { %vm68_vm0 = vcmask 1043456   ;;  %vm64_vm1 = vcmask 588800   ;;  %vm85_vm2 = vcmask 64512   ;;  %vm143_vm3 = vcmask 48128   ;;  %s277_s1 = inlined_call_operand.vmem [shape: bf16[72,8], index: 1, kind: input, shape index: {}]   ;;  %s278_s3 = inlined_call_operand.vmem [shape: bf16[72,6], index: 3, kind: input, shape index: {}]   ;;  %s279_s2 = inlined_call_operand.vmem [shape: f32[1,8], index: 2, kind: input, shape index: {}]   ;;  %s280_s0 = inlined_call_operand.vmem [shape: bf16[8,72], index: 0, kind: input, shape index: {}]   ;;  %s281_s4 = inlined_call_operand.vmem [shape: f32[1,6], index: 4, kind: input, shape index: {}]   ;;  %s282_s5 = inlined_call_operand.vmem [shape: f32[8,8], index: 5, kind: output, shape index: {0}]   ;;  %s283_s6 = inlined_call_operand.vmem [shape: f32[8,6], index: 6, kind: output, shape index: {1}]  }
   0x1   :  { %v32_v0 = vld [vmem:[%s277_s1 + $0x20] sm:$0xf]  ;;  %v190_v8 = vld [vmem:[%s277_s1 + $0x18] sm:$0xff]  ;;  %v189_v10 = vld [vmem:[%s277_s1 + $0x10] sm:$0xff] }
   0x2   :  { %v95_v1 = vld [vmem:[%s278_s3 + $0x20] sm:$0xf]  ;;  %v54_v2 = vunpack.c.l.b16 %v32_v0  ;;  %v194_v9 = vld [vmem:[%s278_s3 + $0x18] sm:$0xff]  ;;  %v193_v11 = vld [vmem:[%s278_s3 + $0x10] sm:$0xff] }
   0x3   :  { %v117_v3 = vunpack.c.l.b16 %v95_v1  ;;  %v188_v12 = vld [vmem:[%s277_s1 + $0x8] sm:$0xff]  ;;  %v187_v14 = vld [vmem:[%s277_s1] sm:$0xff] }
   0x4   :  { %v59_v4 = vpack.c.b16 %v54_v2, %v54_v2  ;;  %v192_v13 = vld [vmem:[%s278_s3 + $0x8] sm:$0xff]  ;;  %v191_v15 = vld [vmem:[%s278_s3] sm:$0xff] }
   0x5   :  { %v122_v5 = vpack.c.b16 %v117_v3, %v117_v3  ;;  %v23_v16 = vld [vmem:[%s280_s0] sm:$0xf] }
   0x6   :  { %v70_v6 = vsel %vm68_vm0, %v59_v4, 0  ;;  %v195_v17 = vld [vmem:[%s279_s2] ss:$0 sm:$0xff] }
   0x7   :  { %v128_v7 = vsel %vm68_vm0, %v122_v5, 0  ;;  %75 = vmatpush.bf16.msra.mxu0 %v70_v6  ;;  %v196_v18 = vld [vmem:[%s281_s4] ss:$0 sm:$0xff] }
   0x8   :  { %133 = vmatpush.bf16.msra.mxu1 %v128_v7 }
   0xb   :  { %76 = vmatpush.bf16.msra.mxu0 %v190_v8 }
   0xc   :  { %134 = vmatpush.bf16.msra.mxu1 %v194_v9 }
   0xf   :  { %77 = vmatpush.bf16.msra.mxu0 %v189_v10 }
  0x10   :  { %135 = vmatpush.bf16.msra.mxu1 %v193_v11 }
  0x13   :  { %78 = vmatpush.bf16.msra.mxu0 %v188_v12 }
  0x14   :  { %136 = vmatpush.bf16.msra.mxu1 %v192_v13 }
  0x17   :  { %79 = vmatpush.bf16.msra.mxu0 %v187_v14 }
  0x18   :  { %137 = vmatpush.bf16.msra.mxu1 %v191_v15 }
  0x1a   :  { %169 = vmatmul.msk.bf16.vlgmr.msra.gmra.mxu0 %vm64_vm1, %v23_v16 }
  0x1b   :  { %186 = vmatmul.msk.bf16.vlgmr.msra.gmra.mxu1 %vm64_vm1, %v23_v16 }
  0x97   :  { %v81_v19 = vpop.f32.mrf.mxu0 }
  0x98   :  { %v139_v20 = vpop.f32.mrf.mxu1  ;;  %v82_v21 = vadd.f32 %v195_v17, %v81_v19 }
  0x99   :  { %v140_v22 = vadd.f32 %v196_v18, %v139_v20 }
  0x9a   :  { %86 = vst.msk [vmem:[%s282_s5] sm:$0xff] %vm85_vm2, %v82_v21 }
  0x9b   :  { %144 = vst.msk [vmem:[%s283_s6] sm:$0xff] %vm143_vm3, %v140_v22 }
  0x9f   :  { %v83_v23 = vpop.f32.mrf.mxu0 }
  0xa0   :  { %v141_v24 = vpop.f32.mrf.mxu1 }

// kernel: _lambda_.61
= control target key start
LH: loop header
LB: loop body
LE: loop exit
PB: predicated region body
PF: predicated region fallthrough
CT: control target
= control target key end

     0   :  { %vm68_vm0 = vcmask 1043456   ;;  %vm64_vm1 = vcmask 588800   ;;  %vm85_vm2 = vcmask 58368   ;;  %vm143_vm3 = vcmask 41984   ;;  %s277_s1 = inlined_call_operand.vmem [shape: bf16[72,8], index: 1, kind: input, shape index: {}]   ;;  %s278_s3 = inlined_call_operand.vmem [shape: bf16[72,6], index: 3, kind: input, shape index: {}]   ;;  %s279_s2 = inlined_call_operand.vmem [shape: f32[1,8], index: 2, kind: input, shape index: {}]   ;;  %s280_s0 = inlined_call_operand.vmem [shape: bf16[2,72], index: 0, kind: input, shape index: {}]   ;;  %s281_s4 = inlined_call_operand.vmem [shape: f32[1,6], index: 4, kind: input, shape index: {}]   ;;  %s282_s5 = inlined_call_operand.vmem [shape: f32[2,8], index: 5, kind: output, shape index: {0}]   ;;  %s283_s6 = inlined_call_operand.vmem [shape: f32[2,6], index: 6, kind: output, shape index: {1}]  }
   0x1   :  { %v32_v0 = vld [vmem:[%s277_s1 + $0x20] sm:$0xf]  ;;  %v190_v8 = vld [vmem:[%s277_s1 + $0x18] sm:$0xff]  ;;  %v189_v10 = vld [vmem:[%s277_s1 + $0x10] sm:$0xff] }
   0x2   :  { %v95_v1 = vld [vmem:[%s278_s3 + $0x20] sm:$0xf]  ;;  %v54_v2 = vunpack.c.l.b16 %v32_v0  ;;  %v194_v9 = vld [vmem:[%s278_s3 + $0x18] sm:$0xff]  ;;  %v193_v11 = vld [vmem:[%s278_s3 + $0x10] sm:$0xff] }
   0x3   :  { %v117_v3 = vunpack.c.l.b16 %v95_v1  ;;  %v188_v12 = vld [vmem:[%s277_s1 + $0x8] sm:$0xff]  ;;  %v187_v14 = vld [vmem:[%s277_s1] sm:$0xff] }
   0x4   :  { %v59_v4 = vpack.c.b16 %v54_v2, %v54_v2  ;;  %v192_v13 = vld [vmem:[%s278_s3 + $0x8] sm:$0xff]  ;;  %v191_v15 = vld [vmem:[%s278_s3] sm:$0xff] }
   0x5   :  { %v122_v5 = vpack.c.b16 %v117_v3, %v117_v3  ;;  %v23_v16 = vld [vmem:[%s280_s0] sm:$0x1] }
   0x6   :  { %v70_v6 = vsel %vm68_vm0, %v59_v4, 0  ;;  %v195_v17 = vld [vmem:[%s279_s2] ss:$0 sm:$0xff] }
   0x7   :  { %v128_v7 = vsel %vm68_vm0, %v122_v5, 0  ;;  %75 = vmatpush.bf16.msra.mxu0 %v70_v6  ;;  %v196_v18 = vld [vmem:[%s281_s4] ss:$0 sm:$0xff] }
   0x8   :  { %133 = vmatpush.bf16.msra.mxu1 %v128_v7 }
   0xb   :  { %76 = vmatpush.bf16.msra.mxu0 %v190_v8 }
   0xc   :  { %134 = vmatpush.bf16.msra.mxu1 %v194_v9 }
   0xf   :  { %77 = vmatpush.bf16.msra.mxu0 %v189_v10 }
  0x10   :  { %135 = vmatpush.bf16.msra.mxu1 %v193_v11 }
  0x13   :  { %78 = vmatpush.bf16.msra.mxu0 %v188_v12 }
  0x14   :  { %136 = vmatpush.bf16.msra.mxu1 %v192_v13 }
  0x17   :  { %79 = vmatpush.bf16.msra.mxu0 %v187_v14 }
  0x18   :  { %137 = vmatpush.bf16.msra.mxu1 %v191_v15 }
  0x1a   :  { %169 = vmatmul.msk.bf16.vlgmr.msra.gmra.mxu0 %vm64_vm1, %v23_v16 }
  0x1b   :  { %186 = vmatmul.msk.bf16.vlgmr.msra.gmra.mxu1 %vm64_vm1, %v23_v16 }
  0x97   :  { %v81_v19 = vpop.f32.mrf.mxu0 }
  0x98   :  { %v139_v20 = vpop.f32.mrf.mxu1  ;;  %v82_v21 = vadd.f32 %v195_v17, %v81_v19 }
  0x99   :  { %v140_v22 = vadd.f32 %v196_v18, %v139_v20 }
  0x9a   :  { %86 = vst.msk [vmem:[%s282_s5] sm:$0x3] %vm85_vm2, %v82_v21 }
  0x9b   :  { %144 = vst.msk [vmem:[%s283_s6] sm:$0x3] %vm143_vm3, %v140_v22 }
  0x9f   :  { %v83_v23 = vpop.f32.mrf.mxu0 }
  0xa0   :  { %v141_v24 = vpop.f32.mrf.mxu1 }

// kernel: _lambda_.49
= control target key start
LH: loop header
LB: loop body
LE: loop exit
PB: predicated region body
PF: predicated region fallthrough
CT: control target
= control target key end

     0   :  { %vm84_vm0 = vcmask 1043456   ;;  %vm77_vm1 = vcmask 588800   ;;  %vm107_vm2 = vcmask 64512   ;;  %vm174_vm3 = vcmask 48128   ;;  %s362_s1 = inlined_call_operand.vmem [shape: bf16[72,8], index: 1, kind: input, shape index: {}]   ;;  %s363_s3 = inlined_call_operand.vmem [shape: bf16[72,6], index: 3, kind: input, shape index: {}]   ;;  %s364_s2 = inlined_call_operand.vmem [shape: f32[1,8], index: 2, kind: input, shape index: {}]   ;;  %s365_s0 = inlined_call_operand.vmem [shape: bf16[32,72], index: 0, kind: input, shape index: {}]   ;;  %s366_s4 = inlined_call_operand.vmem [shape: f32[1,6], index: 4, kind: input, shape index: {}]   ;;  %s367_s5 = inlined_call_operand.vmem [shape: f32[32,8], index: 5, kind: output, shape index: {0}]   ;;  %s368_s6 = inlined_call_operand.vmem [shape: f32[32,6], index: 6, kind: output, shape index: {1}]  }
   0x1   :  { %v35_v0 = vld [vmem:[%s362_s1 + $0x20] sm:$0xf]  ;;  %v236_v8 = vld [vmem:[%s362_s1 + $0x18] sm:$0xff]  ;;  %v235_v10 = vld [vmem:[%s362_s1 + $0x10] sm:$0xff] }
   0x2   :  { %v120_v1 = vld [vmem:[%s363_s3 + $0x20] sm:$0xf]  ;;  %v67_v2 = vunpack.c.l.b16 %v35_v0  ;;  %v240_v9 = vld [vmem:[%s363_s3 + $0x18] sm:$0xff]  ;;  %v239_v11 = vld [vmem:[%s363_s3 + $0x10] sm:$0xff] }
   0x3   :  { %v142_v3 = vunpack.c.l.b16 %v120_v1  ;;  %v234_v12 = vld [vmem:[%s362_s1 + $0x8] sm:$0xff]  ;;  %v233_v14 = vld [vmem:[%s362_s1] sm:$0xff] }
   0x4   :  { %v72_v4 = vpack.c.b16 %v67_v2, %v67_v2  ;;  %v238_v13 = vld [vmem:[%s363_s3 + $0x8] sm:$0xff]  ;;  %v237_v15 = vld [vmem:[%s363_s3] sm:$0xff] }
   0x5   :  { %v147_v5 = vpack.c.b16 %v142_v3, %v142_v3  ;;  %v231_v16 = vld [vmem:[%s365_s0] sm:$0xff]  ;;  %v232_v17 = vld [vmem:[%s365_s0 + $0x8] sm:$0xff] }
   0x6   :  { %v86_v6 = vsel %vm84_vm0, %v72_v4, 0  ;;  %v251_v18 = vld [vmem:[%s364_s2] ss:$0 sm:$0xff] }
   0x7   :  { %v153_v7 = vsel %vm84_vm0, %v147_v5, 0  ;;  %91 = vmatpush.bf16.msra.mxu0 %v86_v6  ;;  %241 = vmatpush.bf16.msra.mxu2 %v86_v6  ;;  %v252_v19 = vld [vmem:[%s366_s4] ss:$0 sm:$0xff] }
   0x8   :  { %158 = vmatpush.bf16.msra.mxu1 %v153_v7  ;;  %246 = vmatpush.bf16.msra.mxu3 %v153_v7 }
   0xb   :  { %92 = vmatpush.bf16.msra.mxu0 %v236_v8  ;;  %242 = vmatpush.bf16.msra.mxu2 %v236_v8 }
   0xc   :  { %159 = vmatpush.bf16.msra.mxu1 %v240_v9  ;;  %247 = vmatpush.bf16.msra.mxu3 %v240_v9 }
   0xf   :  { %93 = vmatpush.bf16.msra.mxu0 %v235_v10  ;;  %243 = vmatpush.bf16.msra.mxu2 %v235_v10 }
  0x10   :  { %160 = vmatpush.bf16.msra.mxu1 %v239_v11  ;;  %248 = vmatpush.bf16.msra.mxu3 %v239_v11 }
  0x13   :  { %94 = vmatpush.bf16.msra.mxu0 %v234_v12  ;;  %244 = vmatpush.bf16.msra.mxu2 %v234_v12 }
  0x14   :  { %161 = vmatpush.bf16.msra.mxu1 %v238_v13  ;;  %249 = vmatpush.bf16.msra.mxu3 %v238_v13 }
  0x17   :  { %95 = vmatpush.bf16.msra.mxu0 %v233_v14  ;;  %245 = vmatpush.bf16.msra.mxu2 %v233_v14 }
  0x18   :  { %162 = vmatpush.bf16.msra.mxu1 %v237_v15  ;;  %250 = vmatpush.bf16.msra.mxu3 %v237_v15 }
  0x1a   :  { %211 = vmatmul.msk.bf16.vlgmr.msra.gmra.mxu0 %vm77_vm1, %v231_v16  ;;  %212 = vmatmul.msk.bf16.vlgmr.msra.gmra.mxu2 %vm77_vm1, %v232_v17 }
  0x1b   :  { %229 = vmatmul.msk.bf16.vlgmr.msra.gmra.mxu1 %vm77_vm1, %v231_v16  ;;  %230 = vmatmul.msk.bf16.vlgmr.msra.gmra.mxu3 %vm77_vm1, %v232_v17 }
  0x97   :  { %v97_v20 = vpop.f32.mrf.mxu0 }
  0x98   :  { %v98_v21 = vadd.f32 %v251_v18, %v97_v20  ;;  %v164_v22 = vpop.f32.mrf.mxu1 }
  0x99   :  { %v165_v23 = vadd.f32 %v252_v19, %v164_v22 }
  0x9a   :  { %108 = vst.msk [vmem:[%s367_s5] sm:$0xff] %vm107_vm2, %v98_v21 }
  0x9b   :  { %175 = vst.msk [vmem:[%s368_s6] sm:$0xff] %vm174_vm3, %v165_v23 }
  0x9d   :  { %v102_v24 = vpop.f32.mrf.mxu2 }
  0x9e   :  { %v103_v25 = vadd.f32 %v251_v18, %v102_v24  ;;  %v169_v26 = vpop.f32.mrf.mxu3 }
  0x9f   :  { %v170_v27 = vadd.f32 %v252_v19, %v169_v26  ;;  %v99_v28 = vpop.f32.mrf.mxu0 }
  0xa0   :  { %110 = vst.msk [vmem:[%s367_s5 + $0x10] sm:$0xff] %vm107_vm2, %v103_v25  ;;  %v100_v29 = vadd.f32 %v251_v18, %v99_v28  ;;  %v166_v30 = vpop.f32.mrf.mxu1 }
  0xa1   :  { %177 = vst.msk [vmem:[%s368_s6 + $0x10] sm:$0xff] %vm174_vm3, %v170_v27  ;;  %v167_v31 = vadd.f32 %v252_v19, %v166_v30 }
  0xa2   :  { %109 = vst.msk [vmem:[%s367_s5 + $0x8] sm:$0xff] %vm107_vm2, %v100_v29 }
  0xa3   :  { %176 = vst.msk [vmem:[%s368_s6 + $0x8] sm:$0xff] %vm174_vm3, %v167_v31 }
  0xa5   :  { %v104_v32 = vpop.f32.mrf.mxu2 }
  0xa6   :  { %v105_v33 = vadd.f32 %v251_v18, %v104_v32  ;;  %v171_v34 = vpop.f32.mrf.mxu3 }
  0xa7   :  { %v172_v35 = vadd.f32 %v252_v19, %v171_v34 }
  0xa8   :  { %111 = vst.msk [vmem:[%s367_s5 + $0x18] sm:$0xff] %vm107_vm2, %v105_v33 }
  0xa9   :  { %178 = vst.msk [vmem:[%s368_s6 + $0x18] sm:$0xff] %vm174_vm3, %v172_v35 }

</bundles_post_ra>
